<compile_context>
chip_gen: v7x
topology: tpu7x:2x2x1
jax: 0.10.0
libtpu: 0.0.40
codegen_flags: <defaults>
</compile_context>

<pallas_src>
import functools
import math

import jax
import jax.numpy as jnp
from jax.experimental import pallas as pl
from jax.experimental.pallas import tpu as pltpu

NEG_INF = -1e9
LN_EPS = 1e-5


def _vmem_limit_bytes():
    """Per-generation scoped-VMEM budget (None -> let the compiler decide)."""
    try:
        kind = jax.devices()[0].device_kind.lower()
    except Exception:
        return None
    if "v7" in kind or "7x" in kind:
        return 56 * 1024 * 1024      # v7x: 64 MiB physical, leave headroom
    if "v5" in kind or "v6" in kind:
        return 100 * 1024 * 1024     # v5e/v6e: 128 MiB physical
    return None


VMEM_LIMIT = _vmem_limit_bytes()


def _compiler_params(dims):
    kw = dict(dimension_semantics=dims)
    if VMEM_LIMIT is not None:
        kw["vmem_limit_bytes"] = VMEM_LIMIT
    return pltpu.CompilerParams(**kw)


def _pick_tile(dim, candidates):
    """Largest candidate tile that evenly divides `dim`, else the full dim."""
    for c in candidates:
        if dim >= c and dim % c == 0:
            return c
    return dim


# --------------------------------------------------------------------------
# Tiled linear (x @ W + b) — canonical accumulator pattern (bf16 in/out)
# --------------------------------------------------------------------------

def _matmul_bias_kernel(x_ref, w_ref, b_ref, o_ref, acc_ref):
    @pl.when(pl.program_id(2) == 0)
    def _():
        acc_ref[...] = jnp.zeros_like(acc_ref)

    acc_ref[...] += jnp.dot(x_ref[...], w_ref[...],
                            preferred_element_type=jnp.float32)

    @pl.when(pl.program_id(2) == pl.num_programs(2) - 1)
    def _():
        o_ref[...] = (acc_ref[...] + b_ref[...]).astype(o_ref.dtype)


def linear(x2d, w, b):
    """x2d: (M, K) bf16 @ w: (K, N) bf16 + b: (N,) f32 -> (M, N) bf16."""
    M, K = x2d.shape
    N = w.shape[1]
    tm = _pick_tile(M, (256, 128, 64, 32, 16))   # bf16 sublane packing: x16
    tn = _pick_tile(N, (256, 128))
    tk = _pick_tile(K, (512, 256, 128))
    grid = (M // tm, N // tn, K // tk)
    return pl.pallas_call(
        _matmul_bias_kernel,
        grid=grid,
        in_specs=[
            pl.BlockSpec((tm, tk), lambda i, j, k: (i, k)),
            pl.BlockSpec((tk, tn), lambda i, j, k: (k, j)),
            pl.BlockSpec((1, tn), lambda i, j, k: (0, j)),
        ],
        out_specs=pl.BlockSpec((tm, tn), lambda i, j, k: (i, j)),
        out_shape=jax.ShapeDtypeStruct((M, N), jnp.bfloat16),
        scratch_shapes=[pltpu.VMEM((tm, tn), jnp.float32)],
        compiler_params=_compiler_params(("parallel", "parallel", "arbitrary")),
    )(x2d, w, b.reshape(1, N))


# --------------------------------------------------------------------------
# Fused attention block:
#   multi-head attention (mask built in-kernel from lengths)
#   + output projection + residual add + LayerNorm.
# One batch element per grid step, all heads in-kernel, lane-dense output.
# --------------------------------------------------------------------------

def _attn_block_kernel(lens_ref, *refs, n_heads, dk, d_model, causal,
                       fused_qkv, with_attn):
    if fused_qkv:
        (qkv_ref, wo_ref, bo_ref, res_ref, g_ref, be_ref) = refs[:6]
        out_refs = refs[6:]
        q_all = qkv_ref[0]            # (Lq, 3D) bf16: [Q(scaled) | K | V]
        kv_all = q_all
        k_base = d_model
    else:
        (q_ref, kv_ref, wo_ref, bo_ref, res_ref, g_ref, be_ref) = refs[:7]
        out_refs = refs[7:]
        q_all = q_ref[0]              # (Lq, D) bf16, Q already scaled
        kv_all = kv_ref[0]            # (Lk, 2D) bf16: [K | V]
        k_base = 0
    o_ref = out_refs[0]
    a_ref = out_refs[1] if with_attn else None

    Lq = q_all.shape[0]
    Lk = kv_all.shape[0]
    b = pl.program_id(0)
    klen = lens_ref[b]

    # Additive mask built in-kernel (no HBM mask tensor).
    k_idx = jax.lax.broadcasted_iota(jnp.int32, (Lq, Lk), 1)
    valid = k_idx < klen
    if causal:
        q_idx = jax.lax.broadcasted_iota(jnp.int32, (Lq, Lk), 0)
        valid = jnp.logical_and(valid, k_idx <= q_idx)
    mask = jnp.where(valid, 0.0, NEG_INF).astype(jnp.float32)

    # TODO(synk): at production Lq/Lk add flash-style online-softmax tiling over
    # the key axis so the (Lq, Lk) scores never exceed the v7x VMEM budget.
    ctx_parts = []
    for h in range(n_heads):
        q_h = q_all[:, h * dk:(h + 1) * dk]
        k_h = kv_all[:, k_base + h * dk:
                        k_base + (h + 1) * dk]
        v_h = kv_all[:, k_base + d_model + h * dk:
                        k_base + d_model + (h + 1) * dk]

        s = jax.lax.dot_general(q_h, k_h, (((1,), (1,)), ((), ())),
                                preferred_element_type=jnp.float32)
        s = s + mask
        s = s - jnp.max(s, axis=-1, keepdims=True)
        p = jnp.exp(s)
        p = p * pl.reciprocal(jnp.sum(p, axis=-1, keepdims=True), approx=True)

        o_h = jnp.dot(p.astype(jnp.bfloat16), v_h,
                      preferred_element_type=jnp.float32)
        ctx_parts.append(o_h)
        if with_attn:
            a_ref[0, h] = p.astype(a_ref.dtype)

    # Lane-dense (Lq, D) context -> single full-depth output projection.
    ctx = jnp.concatenate(ctx_parts, axis=-1).astype(jnp.bfloat16)
    proj = jnp.dot(ctx, wo_ref[...], preferred_element_type=jnp.float32)

    x = res_ref[0].astype(jnp.float32) + proj + bo_ref[...]
    mu = jnp.mean(x, axis=-1, keepdims=True)
    var = jnp.mean(jnp.square(x - mu), axis=-1, keepdims=True)
    y = (x - mu) * jax.lax.rsqrt(var + LN_EPS)
    o_ref[0] = (y * g_ref[...] + be_ref[...]).astype(o_ref.dtype)


def attention_block(q_in, kv_in, klens, residual, wo, bo, gamma, beta,
                    n_heads, *, causal, return_attn):
    """Fused MHA + out-proj + residual + LayerNorm.

    q_in: (B,Lq,3D) bf16 if kv_in is None (fused self-attn QKV, Q pre-scaled)
          else (B,Lq,D) bf16 (Q pre-scaled).
    kv_in: None or (B,Lk,2D) bf16 [K | V].
    klens: (B,) int32 valid key lengths (scalar-prefetched to SMEM).
    Returns (B,Lq,D) bf16 (post-LN) and optional (B,H,Lq,Lk) f32 attention."""
    B, Lq, _ = q_in.shape
    D = residual.shape[2]
    fused_qkv = kv_in is None
    Lk = Lq if fused_qkv else kv_in.shape[1]
    dk = D // n_heads

    kernel = functools.partial(_attn_block_kernel, n_heads=n_heads, dk=dk,
                               d_model=D, causal=causal, fused_qkv=fused_qkv,
                               with_attn=return_attn)

    if fused_qkv:
        tensor_inputs = (q_in,)
        in_specs = [pl.BlockSpec((1, Lq, 3 * D), lambda b, lens: (b, 0, 0))]
    else:
        tensor_inputs = (q_in, kv_in)
        in_specs = [pl.BlockSpec((1, Lq, D), lambda b, lens: (b, 0, 0)),
                    pl.BlockSpec((1, Lk, 2 * D), lambda b, lens: (b, 0, 0))]
    in_specs += [
        pl.BlockSpec((D, D), lambda b, lens: (0, 0)),          # wo
        pl.BlockSpec((1, D), lambda b, lens: (0, 0)),          # bo
        pl.BlockSpec((1, Lq, D), lambda b, lens: (b, 0, 0)),   # residual
        pl.BlockSpec((1, D), lambda b, lens: (0, 0)),          # gamma
        pl.BlockSpec((1, D), lambda b, lens: (0, 0)),          # beta
    ]

    out_specs = [pl.BlockSpec((1, Lq, D), lambda b, lens: (b, 0, 0))]
    out_shape = [jax.ShapeDtypeStruct((B, Lq, D), jnp.bfloat16)]
    if return_attn:
        out_specs.append(
            pl.BlockSpec((1, n_heads, Lq, Lk), lambda b, lens: (b, 0, 0, 0)))
        out_shape.append(
            jax.ShapeDtypeStruct((B, n_heads, Lq, Lk), jnp.float32))

    res = pl.pallas_call(
        kernel,
        grid_spec=pltpu.PrefetchScalarGridSpec(
            num_scalar_prefetch=1, grid=(B,),
            in_specs=in_specs, out_specs=out_specs),
        out_shape=out_shape,
        compiler_params=_compiler_params(("parallel",)),
    )(klens, *tensor_inputs, wo, bo.reshape(1, D), residual,
      gamma.reshape(1, D), beta.reshape(1, D))

    out = res[0]
    attn = res[1] if return_attn else None
    return out, attn


# --------------------------------------------------------------------------
# Fused FFN + residual add + LayerNorm (row-tiled, Dff reduction tiled)
# --------------------------------------------------------------------------

def _ffn_add_ln_kernel(x_ref, w1_ref, b1_ref, w2_ref, b2_ref, g_ref, be_ref,
                       o_ref, acc_ref):
    @pl.when(pl.program_id(1) == 0)
    def _():
        acc_ref[...] = jnp.zeros_like(acc_ref)

    h = jnp.dot(x_ref[...], w1_ref[...], preferred_element_type=jnp.float32)
    h = jnp.maximum(h + b1_ref[...], 0.0)
    acc_ref[...] += jnp.dot(h.astype(jnp.bfloat16), w2_ref[...],
                            preferred_element_type=jnp.float32)

    @pl.when(pl.program_id(1) == pl.num_programs(1) - 1)
    def _():
        x32 = x_ref[...].astype(jnp.float32) + acc_ref[...] + b2_ref[...]
        mu = jnp.mean(x32, axis=-1, keepdims=True)
        var = jnp.mean(jnp.square(x32 - mu), axis=-1, keepdims=True)
        y = (x32 - mu) * jax.lax.rsqrt(var + LN_EPS)
        o_ref[...] = (y * g_ref[...] + be_ref[...]).astype(o_ref.dtype)


def ffn_add_residual_ln(x2d, w1, b1, w2, b2, gamma, beta):
    M, D = x2d.shape
    Dff = w1.shape[1]
    tm = _pick_tile(M, (256, 128, 64, 32, 16))
    tff = _pick_tile(Dff, (1024, 512, 256, 128))
    grid = (M // tm, Dff // tff)
    return pl.pallas_call(
        _ffn_add_ln_kernel,
        grid=grid,
        in_specs=[
            pl.BlockSpec((tm, D), lambda i, j: (i, 0)),
            pl.BlockSpec((D, tff), lambda i, j: (0, j)),
            pl.BlockSpec((1, tff), lambda i, j: (0, j)),
            pl.BlockSpec((tff, D), lambda i, j: (j, 0)),
            pl.BlockSpec((1, D), lambda i, j: (0, 0)),
            pl.BlockSpec((1, D), lambda i, j: (0, 0)),
            pl.BlockSpec((1, D), lambda i, j: (0, 0)),
        ],
        out_specs=pl.BlockSpec((tm, D), lambda i, j: (i, 0)),
        out_shape=jax.ShapeDtypeStruct((M, D), jnp.bfloat16),
        scratch_shapes=[pltpu.VMEM((tm, D), jnp.float32)],
        compiler_params=_compiler_params(("parallel", "arbitrary")),
    )(x2d, w1, b1.reshape(1, Dff), w2, b2.reshape(1, D), gamma.reshape(1, D),
      beta.reshape(1, D))


# --------------------------------------------------------------------------
# Parameter init (deterministic, in-script); bf16 weights, QKV/KV pre-fused,
# 1/sqrt(dk) folded into the Q projection columns.
# --------------------------------------------------------------------------

def _init_w(key, d_in, d_out):
    w = jax.random.normal(key, (d_in, d_out), jnp.float32) / math.sqrt(d_in)
    return w.astype(jnp.bfloat16)


def _init_w_qkv(key, d, n_heads):
    scale = 1.0 / math.sqrt(d // n_heads)
    w = jax.random.normal(key, (d, 3 * d), jnp.float32) / math.sqrt(d)
    w = jnp.concatenate([w[:, :d] * scale, w[:, d:]], axis=1)
    return w.astype(jnp.bfloat16)


def _init_wq_scaled(key, d, n_heads):
    scale = 1.0 / math.sqrt(d // n_heads)
    w = jax.random.normal(key, (d, d), jnp.float32) / math.sqrt(d)
    return (w * scale).astype(jnp.bfloat16)


def _zeros(n):
    return jnp.zeros((n,), jnp.float32)


def _ones(n):
    return jnp.ones((n,), jnp.float32)


def _init_enc_block(key, d, n_heads):
    ks = jax.random.split(key, 4)
    return {
        "w_qkv": _init_w_qkv(ks[0], d, n_heads), "b_qkv": _zeros(3 * d),
        "wo": _init_w(ks[1], d, d), "bo": _zeros(d),
        "ln1_g": _ones(d), "ln1_b": _zeros(d),
        "w1": _init_w(ks[2], d, 4 * d), "b1": _zeros(4 * d),
        "w2": _init_w(ks[3], 4 * d, d), "b2": _zeros(d),
        "ln2_g": _ones(d), "ln2_b": _zeros(d),
    }


def _init_dec_block(key, d, n_heads):
    ks = jax.random.split(key, 7)
    return {
        "self_w_qkv": _init_w_qkv(ks[0], d, n_heads), "self_b_qkv": _zeros(3 * d),
        "self_wo": _init_w(ks[1], d, d), "self_bo": _zeros(d),
        "ln1_g": _ones(d), "ln1_b": _zeros(d),
        "cross_wq": _init_wq_scaled(ks[2], d, n_heads), "cross_bq": _zeros(d),
        "cross_w_kv": _init_w(ks[3], d, 2 * d), "cross_b_kv": _zeros(2 * d),
        "cross_wo": _init_w(ks[4], d, d), "cross_bo": _zeros(d),
        "ln2_g": _ones(d), "ln2_b": _zeros(d),
        "w1": _init_w(ks[5], d, 4 * d), "b1": _zeros(4 * d),
        "w2": _init_w(ks[6], 4 * d, d), "b2": _zeros(d),
        "ln3_g": _ones(d), "ln3_b": _zeros(d),
    }


def init_transformer(key, enc_in_d, enc_n_blocks, enc_n_heads,
                     dec_in_d, dec_n_blocks, dec_n_heads):
    keys = jax.random.split(key, enc_n_blocks + dec_n_blocks)
    enc = [_init_enc_block(keys[i], enc_in_d, enc_n_heads)
           for i in range(enc_n_blocks)]
    dec = [_init_dec_block(keys[enc_n_blocks + i], dec_in_d, dec_n_heads)
           for i in range(dec_n_blocks)]
    return {"encoder": enc, "decoder": dec}


# --------------------------------------------------------------------------
# Model forward
# --------------------------------------------------------------------------

def encoder_forward(blocks, src, src_lens, n_heads, return_attn):
    B, L, D = src.shape
    x = src
    attns = []
    for blk in blocks:
        qkv = linear(x.reshape(B * L, D), blk["w_qkv"],
                     blk["b_qkv"]).reshape(B, L, 3 * D)
        x, aw = attention_block(qkv, None, src_lens, x, blk["wo"], blk["bo"],
                                blk["ln1_g"], blk["ln1_b"], n_heads,
                                causal=False, return_attn=return_attn)
        x = ffn_add_residual_ln(x.reshape(B * L, D), blk["w1"], blk["b1"],
                                blk["w2"], blk["b2"], blk["ln2_g"],
                                blk["ln2_b"]).reshape(B, L, D)
        attns.append(aw)
    return x, attns


def decoder_forward(blocks, tgt, enc_out, src_lens, tgt_lens, n_heads,
                    return_attn):
    B, Lt, D = tgt.shape
    Ls = enc_out.shape[1]
    x = tgt
    attns = []
    enc2d = enc_out.reshape(B * Ls, D)
    for blk in blocks:
        # masked self-attention (fused QKV, causal + tgt padding mask in-kernel)
        qkv = linear(x.reshape(B * Lt, D), blk["self_w_qkv"],
                     blk["self_b_qkv"]).reshape(B, Lt, 3 * D)
        x, sa_w = attention_block(qkv, None, tgt_lens, x, blk["self_wo"],
                                  blk["self_bo"], blk["ln1_g"], blk["ln1_b"],
                                  n_heads, causal=True, return_attn=return_attn)
        # cross-attention (q from decoder, fused KV from encoder output)
        q = linear(x.reshape(B * Lt, D), blk["cross_wq"],
                   blk["cross_bq"]).reshape(B, Lt, D)
        kv = linear(enc2d, blk["cross_w_kv"],
                    blk["cross_b_kv"]).reshape(B, Ls, 2 * D)
        x, ca_w = attention_block(q, kv, src_lens, x, blk["cross_wo"],
                                  blk["cross_bo"], blk["ln2_g"], blk["ln2_b"],
                                  n_heads, causal=False,
                                  return_attn=return_attn)
        # position-wise FFN
        x = ffn_add_residual_ln(x.reshape(B * Lt, D), blk["w1"], blk["b1"],
                                blk["w2"], blk["b2"], blk["ln3_g"],
                                blk["ln3_b"]).reshape(B, Lt, D)
        attns.append((sa_w, ca_w))
    return x, attns


def transformer_forward(params, src, tgt, src_lens, tgt_lens,
                        enc_n_heads, dec_n_heads, return_attn=False):
    enc_out, enc_attn = encoder_forward(params["encoder"], src, src_lens,
                                        enc_n_heads, return_attn)
    dec_out, dec_attn = decoder_forward(params["decoder"], tgt, enc_out,
                                        src_lens, tgt_lens, dec_n_heads,
                                        return_attn)
    if return_attn:
        return enc_out, enc_attn, dec_out, dec_attn
    return enc_out, dec_out


# --------------------------------------------------------------------------
# Main
# --------------------------------------------------------------------------

if __name__ == "__main__":
    B, L_SRC, L_TGT, D, H = 2, 8, 8, 32, 4
    ENC_BLOCKS, DEC_BLOCKS = 2, 2
    PAD_TOKEN = 0  # interface parity; masks are built from lengths.

    key = jax.random.PRNGKey(0)
    k_param, k_src, k_tgt = jax.random.split(key, 3)

    params = init_transformer(k_param, D, ENC_BLOCKS, H, D, DEC_BLOCKS, H)
    src = jax.random.normal(k_src, (B, L_SRC, D), jnp.float32).astype(jnp.bfloat16)
    tgt = jax.random.normal(k_tgt, (B, L_TGT, D), jnp.float32).astype(jnp.bfloat16)
    src_lens = jnp.array([8, 5], jnp.int32)
    tgt_lens = jnp.array([6, 8], jnp.int32)

    fwd = jax.jit(functools.partial(transformer_forward,
                                    enc_n_heads=H, dec_n_heads=H,
                                    return_attn=False))
    enc_out, dec_out = fwd(params, src, tgt, src_lens, tgt_lens)
    jax.block_until_ready((enc_out, dec_out))

    assert enc_out.shape == (B, L_SRC, D)
    assert dec_out.shape == (B, L_TGT, D)
    assert bool(jnp.all(jnp.isfinite(enc_out.astype(jnp.float32))))
    assert bool(jnp.all(jnp.isfinite(dec_out.astype(jnp.float32))))
    print("KERNEL_OK")
</pallas_src>

<mosaic_0001>
module attributes {stable_mosaic.version = 11 : i64} {
  func.func @_ffn_add_ln_kernel(%arg0: i32, %arg1: i32, %arg2: memref<16x32xbf16, #tpu.memory_space<vmem>>, %arg3: memref<32x128xbf16, #tpu.memory_space<vmem>>, %arg4: memref<1x128xf32, #tpu.memory_space<vmem>>, %arg5: memref<128x32xbf16, #tpu.memory_space<vmem>>, %arg6: memref<1x32xf32, #tpu.memory_space<vmem>>, %arg7: memref<1x32xf32, #tpu.memory_space<vmem>>, %arg8: memref<1x32xf32, #tpu.memory_space<vmem>>, %arg9: memref<16x32xbf16, #tpu.memory_space<vmem>>, %arg10: memref<16x32xf32, #tpu.memory_space<vmem>>) attributes {dimension_semantics = [#tpu.dimension_semantics<parallel>, #tpu.dimension_semantics<arbitrary>], iteration_bounds = array<i64: 1, 1>, scalar_prefetch = 0 : i64, scratch_operands = 1 : i64, tpu.core_type = #tpu.core_type<tc>, window_params = [{transform_indices = @transform_0, window_bounds = array<i64: 16, 32>}, {transform_indices = @transform_1, window_bounds = array<i64: 32, 128>}, {transform_indices = @transform_2, window_bounds = array<i64: 1, 128>}, {transform_indices = @transform_3, window_bounds = array<i64: 128, 32>}, {pipeline_mode = #tpu.pipeline_mode<synchronous>, transform_indices = @transform_4, window_bounds = array<i64: 1, 32>}, {pipeline_mode = #tpu.pipeline_mode<synchronous>, transform_indices = @transform_5, window_bounds = array<i64: 1, 32>}, {pipeline_mode = #tpu.pipeline_mode<synchronous>, transform_indices = @transform_6, window_bounds = array<i64: 1, 32>}, {transform_indices = @transform_7, window_bounds = array<i64: 16, 32>}]} {
    %c0_i32 = arith.constant 0 : i32
    %0 = arith.cmpi eq, %arg1, %c0_i32 : i32
    %1 = arith.extui %0 : i1 to i32
    %c0_i32_0 = arith.constant 0 : i32
    %2 = arith.cmpi ne, %1, %c0_i32_0 : i32
    scf.if %2 {
      %cst_16 = arith.constant 0.000000e+00 : f32
      %20 = vector.broadcast %cst_16 : f32 to vector<16x32xf32>
      %c0_17 = arith.constant 0 : index
      %c0_18 = arith.constant 0 : index
      %21 = vector.load %arg10[%c0_17, %c0_18] : memref<16x32xf32, #tpu.memory_space<vmem>>, vector<16x32xf32>
      tpu.vector_store %arg10[%c0_17, %c0_18], %20 {strides = array<i32>} : memref<16x32xf32, #tpu.memory_space<vmem>>, vector<16x32xf32>,
    } else {
    }
    %c0 = arith.constant 0 : index
    %c0_1 = arith.constant 0 : index
    %3 = vector.load %arg2[%c0, %c0_1] : memref<16x32xbf16, #tpu.memory_space<vmem>>, vector<16x32xbf16>
    %c0_2 = arith.constant 0 : index
    %c0_3 = arith.constant 0 : index
    %4 = vector.load %arg3[%c0_2, %c0_3] : memref<32x128xbf16, #tpu.memory_space<vmem>>, vector<32x128xbf16>
    %cst = arith.constant dense<0.000000e+00> : vector<16x128xf32>
    %5 = tpu.matmul %3, %4, %cst {dimension_numbers = #tpu.dot_dimension_numbers<[1], [0], [0], [1], [0, 0, 1, 1], [], []>} : vector<16x32xbf16>, vector<32x128xbf16>, vector<16x128xf32> -> vector<16x128xf32>
    %c0_4 = arith.constant 0 : index
    %c0_5 = arith.constant 0 : index
    %6 = vector.load %arg4[%c0_4, %c0_5] : memref<1x128xf32, #tpu.memory_space<vmem>>, vector<1x128xf32>
    %7 = vector.broadcast %6 : vector<1x128xf32> to vector<16x128xf32>
    %8 = arith.addf %5, %7 : vector<16x128xf32>
    %cst_6 = arith.constant 0.000000e+00 : f32
    %9 = vector.broadcast %cst_6 : f32 to vector<16x128xf32>
    %10 = arith.maximumf %8, %9 : vector<16x128xf32>
    %c0_7 = arith.constant 0 : index
    %c0_8 = arith.constant 0 : index
    %11 = vector.load %arg10[%c0_7, %c0_8] : memref<16x32xf32, #tpu.memory_space<vmem>>, vector<16x32xf32>
    %12 = arith.truncf %10 : vector<16x128xf32> to vector<16x128xbf16>
    %c0_9 = arith.constant 0 : index
    %c0_10 = arith.constant 0 : index
    %13 = vector.load %arg5[%c0_9, %c0_10] : memref<128x32xbf16, #tpu.memory_space<vmem>>, vector<128x32xbf16>
    %cst_11 = arith.constant dense<0.000000e+00> : vector<16x32xf32>
    %14 = tpu.matmul %12, %13, %cst_11 {dimension_numbers = #tpu.dot_dimension_numbers<[1], [0], [0], [1], [0, 0, 1, 1], [], []>} : vector<16x128xbf16>, vector<128x32xbf16>, vector<16x32xf32> -> vector<16x32xf32>
    %15 = arith.addf %11, %14 : vector<16x32xf32>
    %c0_12 = arith.constant 0 : index
    %c0_13 = arith.constant 0 : index
    %16 = vector.load %arg10[%c0_12, %c0_13] : memref<16x32xf32, #tpu.memory_space<vmem>>, vector<16x32xf32>
    tpu.vector_store %arg10[%c0_12, %c0_13], %15 {strides = array<i32>} : memref<16x32xf32, #tpu.memory_space<vmem>>, vector<16x32xf32>,
    %c0_i32_14 = arith.constant 0 : i32
    %17 = arith.cmpi eq, %arg1, %c0_i32_14 : i32
    %18 = arith.extui %17 : i1 to i32
    %c0_i32_15 = arith.constant 0 : i32
    %19 = arith.cmpi ne, %18, %c0_i32_15 : i32
    scf.if %19 {
      %c0_16 = arith.constant 0 : index
      %c0_17 = arith.constant 0 : index
      %20 = vector.load %arg2[%c0_16, %c0_17] : memref<16x32xbf16, #tpu.memory_space<vmem>>, vector<16x32xbf16>
      %21 = arith.extf %20 : vector<16x32xbf16> to vector<16x32xf32>
      %c0_18 = arith.constant 0 : index
      %c0_19 = arith.constant 0 : index
      %22 = vector.load %arg10[%c0_18, %c0_19] : memref<16x32xf32, #tpu.memory_space<vmem>>, vector<16x32xf32>
      %23 = arith.addf %21, %22 : vector<16x32xf32>
      %c0_20 = arith.constant 0 : index
      %c0_21 = arith.constant 0 : index
      %24 = vector.load %arg6[%c0_20, %c0_21] : memref<1x32xf32, #tpu.memory_space<vmem>>, vector<1x32xf32>
      %25 = vector.broadcast %24 : vector<1x32xf32> to vector<16x32xf32>
      %26 = arith.addf %23, %25 : vector<16x32xf32>
      %cst_22 = arith.constant dense<0.000000e+00> : vector<16xf32>
      %27 = vector.multi_reduction <add>, %26, %cst_22 [1] : vector<16x32xf32> to vector<16xf32>
      %28 = vector.shape_cast %27 : vector<16xf32> to vector<16x1xf32>
      %cst_23 = arith.constant 3.200000e+01 : f32
      %29 = vector.broadcast %cst_23 : f32 to vector<16x1xf32>
      %30 = arith.divf %28, %29 : vector<16x1xf32>
      %31 = vector.broadcast %30 : vector<16x1xf32> to vector<16x32xf32>
      %32 = arith.subf %26, %31 : vector<16x32xf32>
      %33 = arith.mulf %32, %32 : vector<16x32xf32>
      %cst_24 = arith.constant dense<0.000000e+00> : vector<16xf32>
      %34 = vector.multi_reduction <add>, %33, %cst_24 [1] : vector<16x32xf32> to vector<16xf32>
      %35 = vector.shape_cast %34 : vector<16xf32> to vector<16x1xf32>
      %cst_25 = arith.constant 3.200000e+01 : f32
      %36 = vector.broadcast %cst_25 : f32 to vector<16x1xf32>
      %37 = arith.divf %35, %36 : vector<16x1xf32>
      %38 = vector.broadcast %30 : vector<16x1xf32> to vector<16x32xf32>
      %39 = arith.subf %26, %38 : vector<16x32xf32>
      %cst_26 = arith.constant 9.99999974E-6 : f32
      %40 = vector.broadcast %cst_26 : f32 to vector<16x1xf32>
      %41 = arith.addf %37, %40 : vector<16x1xf32>
      %42 = math.rsqrt %41 : vector<16x1xf32>
      %43 = vector.broadcast %42 : vector<16x1xf32> to vector<16x32xf32>
      %44 = arith.mulf %39, %43 : vector<16x32xf32>
      %c0_27 = arith.constant 0 : index
      %c0_28 = arith.constant 0 : index
      %45 = vector.load %arg7[%c0_27, %c0_28] : memref<1x32xf32, #tpu.memory_space<vmem>>, vector<1x32xf32>
      %46 = vector.broadcast %45 : vector<1x32xf32> to vector<16x32xf32>
      %47 = arith.mulf %44, %46 : vector<16x32xf32>
      %c0_29 = arith.constant 0 : index
      %c0_30 = arith.constant 0 : index
      %48 = vector.load %arg8[%c0_29, %c0_30] : memref<1x32xf32, #tpu.memory_space<vmem>>, vector<1x32xf32>
      %49 = vector.broadcast %48 : vector<1x32xf32> to vector<16x32xf32>
      %50 = arith.addf %47, %49 : vector<16x32xf32>
      %51 = arith.truncf %50 : vector<16x32xf32> to vector<16x32xbf16>
      %c0_31 = arith.constant 0 : index
      %c0_32 = arith.constant 0 : index
      %52 = vector.load %arg9[%c0_31, %c0_32] : memref<16x32xbf16, #tpu.memory_space<vmem>>, vector<16x32xbf16>
      tpu.vector_store %arg9[%c0_31, %c0_32], %51 {strides = array<i32>} : memref<16x32xbf16, #tpu.memory_space<vmem>>, vector<16x32xbf16>,
    } else {
    }
    return
  }
  func.func @transform_0(%arg0: i32, %arg1: i32) -> (i32, i32) {
    %c0_i32 = arith.constant 0 : i32
    %c0_i32_0 = arith.constant 0 : i32
    return %arg0, %c0_i32 : i32, i32
  }
  func.func @transform_1(%arg0: i32, %arg1: i32) -> (i32, i32) {
    %c0_i32 = arith.constant 0 : i32
    %c0_i32_0 = arith.constant 0 : i32
    return %c0_i32, %arg1 : i32, i32
  }
  func.func @transform_2(%arg0: i32, %arg1: i32) -> (i32, i32) {
    %c0_i32 = arith.constant 0 : i32
    %c0_i32_0 = arith.constant 0 : i32
    return %c0_i32, %arg1 : i32, i32
  }
  func.func @transform_3(%arg0: i32, %arg1: i32) -> (i32, i32) {
    %c0_i32 = arith.constant 0 : i32
    %c0_i32_0 = arith.constant 0 : i32
    return %arg1, %c0_i32 : i32, i32
  }
  func.func @transform_4(%arg0: i32, %arg1: i32) -> (i32, i32) {
    %c0_i32 = arith.constant 0 : i32
    %c0_i32_0 = arith.constant 0 : i32
    %c0_i32_1 = arith.constant 0 : i32
    return %c0_i32, %c0_i32_0 : i32, i32
  }
  func.func @transform_5(%arg0: i32, %arg1: i32) -> (i32, i32) {
    %c0_i32 = arith.constant 0 : i32
    %c0_i32_0 = arith.constant 0 : i32
    %c0_i32_1 = arith.constant 0 : i32
    return %c0_i32, %c0_i32_0 : i32, i32
  }
  func.func @transform_6(%arg0: i32, %arg1: i32) -> (i32, i32) {
    %c0_i32 = arith.constant 0 : i32
    %c0_i32_0 = arith.constant 0 : i32
    %c0_i32_1 = arith.constant 0 : i32
    return %c0_i32, %c0_i32_0 : i32, i32
  }
  func.func @transform_7(%arg0: i32, %arg1: i32) -> (i32, i32) {
    %c0_i32 = arith.constant 0 : i32
    %c0_i32_0 = arith.constant 0 : i32
    return %arg0, %c0_i32 : i32, i32
  }
}

module attributes {stable_mosaic.version = 11 : i64} {
  func.func @_matmul_bias_kernel(%arg0: i32, %arg1: i32, %arg2: i32, %arg3: memref<16x32xbf16, #tpu.memory_space<vmem>>, %arg4: memref<32x96xbf16, #tpu.memory_space<vmem>>, %arg5: memref<1x96xf32, #tpu.memory_space<vmem>>, %arg6: memref<16x96xbf16, #tpu.memory_space<vmem>>, %arg7: memref<16x96xf32, #tpu.memory_space<vmem>>) attributes {dimension_semantics = [#tpu.dimension_semantics<parallel>, #tpu.dimension_semantics<parallel>, #tpu.dimension_semantics<arbitrary>], iteration_bounds = array<i64: 1, 1, 1>, scalar_prefetch = 0 : i64, scratch_operands = 1 : i64, tpu.core_type = #tpu.core_type<tc>, window_params = [{transform_indices = @transform_0, window_bounds = array<i64: 16, 32>}, {transform_indices = @transform_1, window_bounds = array<i64: 32, 96>}, {transform_indices = @transform_2, window_bounds = array<i64: 1, 96>}, {transform_indices = @transform_3, window_bounds = array<i64: 16, 96>}]} {
    %c0_i32 = arith.constant 0 : i32
    %0 = arith.cmpi eq, %arg2, %c0_i32 : i32
    %1 = arith.extui %0 : i1 to i32
    %c0_i32_0 = arith.constant 0 : i32
    %2 = arith.cmpi ne, %1, %c0_i32_0 : i32
    scf.if %2 {
      %cst_10 = arith.constant 0.000000e+00 : f32
      %12 = vector.broadcast %cst_10 : f32 to vector<16x96xf32>
      %c0_11 = arith.constant 0 : index
      %c0_12 = arith.constant 0 : index
      %13 = vector.load %arg7[%c0_11, %c0_12] : memref<16x96xf32, #tpu.memory_space<vmem>>, vector<16x96xf32>
      tpu.vector_store %arg7[%c0_11, %c0_12], %12 {strides = array<i32>} : memref<16x96xf32, #tpu.memory_space<vmem>>, vector<16x96xf32>,
    } else {
    }
    %c0 = arith.constant 0 : index
    %c0_1 = arith.constant 0 : index
    %3 = vector.load %arg7[%c0, %c0_1] : memref<16x96xf32, #tpu.memory_space<vmem>>, vector<16x96xf32>
    %c0_2 = arith.constant 0 : index
    %c0_3 = arith.constant 0 : index
    %4 = vector.load %arg3[%c0_2, %c0_3] : memref<16x32xbf16, #tpu.memory_space<vmem>>, vector<16x32xbf16>
    %c0_4 = arith.constant 0 : index
    %c0_5 = arith.constant 0 : index
    %5 = vector.load %arg4[%c0_4, %c0_5] : memref<32x96xbf16, #tpu.memory_space<vmem>>, vector<32x96xbf16>
    %cst = arith.constant dense<0.000000e+00> : vector<16x96xf32>
    %6 = tpu.matmul %4, %5, %cst {dimension_numbers = #tpu.dot_dimension_numbers<[1], [0], [0], [1], [0, 0, 1, 1], [], []>} : vector<16x32xbf16>, vector<32x96xbf16>, vector<16x96xf32> -> vector<16x96xf32>
    %7 = arith.addf %3, %6 : vector<16x96xf32>
    %c0_6 = arith.constant 0 : index
    %c0_7 = arith.constant 0 : index
    %8 = vector.load %arg7[%c0_6, %c0_7] : memref<16x96xf32, #tpu.memory_space<vmem>>, vector<16x96xf32>
    tpu.vector_store %arg7[%c0_6, %c0_7], %7 {strides = array<i32>} : memref<16x96xf32, #tpu.memory_space<vmem>>, vector<16x96xf32>,
    %c0_i32_8 = arith.constant 0 : i32
    %9 = arith.cmpi eq, %arg2, %c0_i32_8 : i32
    %10 = arith.extui %9 : i1 to i32
    %c0_i32_9 = arith.constant 0 : i32
    %11 = arith.cmpi ne, %10, %c0_i32_9 : i32
    scf.if %11 {
      %c0_10 = arith.constant 0 : index
      %c0_11 = arith.constant 0 : index
      %12 = vector.load %arg7[%c0_10, %c0_11] : memref<16x96xf32, #tpu.memory_space<vmem>>, vector<16x96xf32>
      %c0_12 = arith.constant 0 : index
      %c0_13 = arith.constant 0 : index
      %13 = vector.load %arg5[%c0_12, %c0_13] : memref<1x96xf32, #tpu.memory_space<vmem>>, vector<1x96xf32>
      %14 = vector.broadcast %13 : vector<1x96xf32> to vector<16x96xf32>
      %15 = arith.addf %12, %14 : vector<16x96xf32>
      %16 = arith.truncf %15 : vector<16x96xf32> to vector<16x96xbf16>
      %c0_14 = arith.constant 0 : index
      %c0_15 = arith.constant 0 : index
      %17 = vector.load %arg6[%c0_14, %c0_15] : memref<16x96xbf16, #tpu.memory_space<vmem>>, vector<16x96xbf16>
      tpu.vector_store %arg6[%c0_14, %c0_15], %16 {strides = array<i32>} : memref<16x96xbf16, #tpu.memory_space<vmem>>, vector<16x96xbf16>,
    } else {
    }
    return
  }
  func.func @transform_0(%arg0: i32, %arg1: i32, %arg2: i32) -> (i32, i32) {
    %c0_i32 = arith.constant 0 : i32
    return %arg0, %arg2 : i32, i32
  }
  func.func @transform_1(%arg0: i32, %arg1: i32, %arg2: i32) -> (i32, i32) {
    %c0_i32 = arith.constant 0 : i32
    return %arg2, %arg1 : i32, i32
  }
  func.func @transform_2(%arg0: i32, %arg1: i32, %arg2: i32) -> (i32, i32) {
    %c0_i32 = arith.constant 0 : i32
    %c0_i32_0 = arith.constant 0 : i32
    return %c0_i32, %arg1 : i32, i32
  }
  func.func @transform_3(%arg0: i32, %arg1: i32, %arg2: i32) -> (i32, i32) {
    %c0_i32 = arith.constant 0 : i32
    return %arg0, %arg1 : i32, i32
  }
}

module attributes {stable_mosaic.version = 11 : i64} {
  func.func @_attn_block_kernel(%arg0: i32, %arg1: memref<2xi32, #tpu.memory_space<smem>>, %arg2: memref<1x8x96xbf16, #tpu.memory_space<vmem>>, %arg3: memref<32x32xbf16, #tpu.memory_space<vmem>>, %arg4: memref<1x32xf32, #tpu.memory_space<vmem>>, %arg5: memref<1x8x32xbf16, #tpu.memory_space<vmem>>, %arg6: memref<1x32xf32, #tpu.memory_space<vmem>>, %arg7: memref<1x32xf32, #tpu.memory_space<vmem>>, %arg8: memref<1x8x32xbf16, #tpu.memory_space<vmem>>) attributes {dimension_semantics = [#tpu.dimension_semantics<parallel>], iteration_bounds = array<i64: 2>, scalar_prefetch = 1 : i64, scratch_operands = 0 : i64, tpu.core_type = #tpu.core_type<tc>, window_params = [{transform_indices = @transform_0, window_bounds = array<i64: 1, 8, 96>}, {pipeline_mode = #tpu.pipeline_mode<synchronous>, transform_indices = @transform_1, window_bounds = array<i64: 32, 32>}, {pipeline_mode = #tpu.pipeline_mode<synchronous>, transform_indices = @transform_2, window_bounds = array<i64: 1, 32>}, {transform_indices = @transform_3, window_bounds = array<i64: 1, 8, 32>}, {pipeline_mode = #tpu.pipeline_mode<synchronous>, transform_indices = @transform_4, window_bounds = array<i64: 1, 32>}, {pipeline_mode = #tpu.pipeline_mode<synchronous>, transform_indices = @transform_5, window_bounds = array<i64: 1, 32>}, {transform_indices = @transform_6, window_bounds = array<i64: 1, 8, 32>}]} {
    %c0 = arith.constant 0 : index
    %c0_0 = arith.constant 0 : index
    %c0_1 = arith.constant 0 : index
    %0 = vector.load %arg2[%c0, %c0_0, %c0_1] : memref<1x8x96xbf16, #tpu.memory_space<vmem>>, vector<1x8x96xbf16>
    %1 = vector.shape_cast %0 : vector<1x8x96xbf16> to vector<8x96xbf16>
    %2 = arith.index_cast %arg0 : i32 to index
    %3 = memref.load %arg1[%2] : memref<2xi32, #tpu.memory_space<smem>>
    %4 = tpu.iota {dimensions = array<i32: 1>} : vector<8x8xi32>
    %5 = vector.broadcast %3 : i32 to vector<8x8xi32>
    %6 = arith.cmpi slt, %4, %5 : vector<8x8xi32>
    %cst = arith.constant 0.000000e+00 : f32
    %cst_2 = arith.constant -1.000000e+09 : f32
    %7 = vector.broadcast %cst : f32 to vector<8x8xf32>
    %8 = vector.broadcast %cst_2 : f32 to vector<8x8xf32>
    %9 = arith.select %6, %7, %8 : vector<8x8xi1>, vector<8x8xf32>
    %10 = vector.extract_strided_slice %1 {offsets = [0, 0], sizes = [8, 8], strides = [1, 1]} : vector<8x96xbf16> to vector<8x8xbf16>
    %11 = vector.extract_strided_slice %1 {offsets = [0, 32], sizes = [8, 8], strides = [1, 1]} : vector<8x96xbf16> to vector<8x8xbf16>
    %12 = vector.extract_strided_slice %1 {offsets = [0, 64], sizes = [8, 8], strides = [1, 1]} : vector<8x96xbf16> to vector<8x8xbf16>
    %cst_3 = arith.constant dense<0.000000e+00> : vector<8x8xf32>
    %13 = tpu.matmul %10, %11, %cst_3 {dimension_numbers = #tpu.dot_dimension_numbers<[1], [1], [0], [0], [0, 0, 1, 0], [], []>} : vector<8x8xbf16>, vector<8x8xbf16>, vector<8x8xf32> -> vector<8x8xf32>
    %14 = arith.addf %13, %9 : vector<8x8xf32>
    %cst_4 = arith.constant dense<0xFF800000> : vector<8xf32>
    %15 = vector.multi_reduction <maximumf>, %14, %cst_4 [1] : vector<8x8xf32> to vector<8xf32>
    %16 = vector.shape_cast %15 : vector<8xf32> to vector<8x1xf32>
    %17 = vector.broadcast %16 : vector<8x1xf32> to vector<8x8xf32>
    %18 = arith.subf %14, %17 : vector<8x8xf32>
    %19 = math.exp %18 : vector<8x8xf32>
    %cst_5 = arith.constant dense<0.000000e+00> : vector<8xf32>
    %20 = vector.multi_reduction <add>, %19, %cst_5 [1] : vector<8x8xf32> to vector<8xf32>
    %21 = vector.shape_cast %20 : vector<8xf32> to vector<8x1xf32>
    %22 = tpu.reciprocal %21 {approx = true} : vector<8x1xf32> -> vector<8x1xf32>
    %23 = vector.broadcast %22 : vector<8x1xf32> to vector<8x8xf32>
    %24 = arith.mulf %19, %23 : vector<8x8xf32>
    %25 = arith.truncf %24 : vector<8x8xf32> to vector<8x8xbf16>
    %cst_6 = arith.constant dense<0.000000e+00> : vector<8x8xf32>
    %26 = tpu.matmul %25, %12, %cst_6 {dimension_numbers = #tpu.dot_dimension_numbers<[1], [0], [0], [1], [0, 0, 1, 1], [], []>} : vector<8x8xbf16>, vector<8x8xbf16>, vector<8x8xf32> -> vector<8x8xf32>
    %27 = vector.extract_strided_slice %1 {offsets = [0, 8], sizes = [8, 8], strides = [1, 1]} : vector<8x96xbf16> to vector<8x8xbf16>
    %28 = vector.extract_strided_slice %1 {offsets = [0, 40], sizes = [8, 8], strides = [1, 1]} : vector<8x96xbf16> to vector<8x8xbf16>
    %29 = vector.extract_strided_slice %1 {offsets = [0, 72], sizes = [8, 8], strides = [1, 1]} : vector<8x96xbf16> to vector<8x8xbf16>
    %cst_7 = arith.constant dense<0.000000e+00> : vector<8x8xf32>
    %30 = tpu.matmul %27, %28, %cst_7 {dimension_numbers = #tpu.dot_dimension_numbers<[1], [1], [0], [0], [0, 0, 1, 0], [], []>} : vector<8x8xbf16>, vector<8x8xbf16>, vector<8x8xf32> -> vector<8x8xf32>
    %31 = arith.addf %30, %9 : vector<8x8xf32>
    %cst_8 = arith.constant dense<0xFF800000> : vector<8xf32>
    %32 = vector.multi_reduction <maximumf>, %31, %cst_8 [1] : vector<8x8xf32> to vector<8xf32>
    %33 = vector.shape_cast %32 : vector<8xf32> to vector<8x1xf32>
    %34 = vector.broadcast %33 : vector<8x1xf32> to vector<8x8xf32>
    %35 = arith.subf %31, %34 : vector<8x8xf32>
    %36 = math.exp %35 : vector<8x8xf32>
    %cst_9 = arith.constant dense<0.000000e+00> : vector<8xf32>
    %37 = vector.multi_reduction <add>, %36, %cst_9 [1] : vector<8x8xf32> to vector<8xf32>
    %38 = vector.shape_cast %37 : vector<8xf32> to vector<8x1xf32>
    %39 = tpu.reciprocal %38 {approx = true} : vector<8x1xf32> -> vector<8x1xf32>
    %40 = vector.broadcast %39 : vector<8x1xf32> to vector<8x8xf32>
    %41 = arith.mulf %36, %40 : vector<8x8xf32>
    %42 = arith.truncf %41 : vector<8x8xf32> to vector<8x8xbf16>
    %cst_10 = arith.constant dense<0.000000e+00> : vector<8x8xf32>
    %43 = tpu.matmul %42, %29, %cst_10 {dimension_numbers = #tpu.dot_dimension_numbers<[1], [0], [0], [1], [0, 0, 1, 1], [], []>} : vector<8x8xbf16>, vector<8x8xbf16>, vector<8x8xf32> -> vector<8x8xf32>
    %44 = vector.extract_strided_slice %1 {offsets = [0, 16], sizes = [8, 8], strides = [1, 1]} : vector<8x96xbf16> to vector<8x8xbf16>
    %45 = vector.extract_strided_slice %1 {offsets = [0, 48], sizes = [8, 8], strides = [1, 1]} : vector<8x96xbf16> to vector<8x8xbf16>
    %46 = vector.extract_strided_slice %1 {offsets = [0, 80], sizes = [8, 8], strides = [1, 1]} : vector<8x96xbf16> to vector<8x8xbf16>
    %cst_11 = arith.constant dense<0.000000e+00> : vector<8x8xf32>
    %47 = tpu.matmul %44, %45, %cst_11 {dimension_numbers = #tpu.dot_dimension_numbers<[1], [1], [0], [0], [0, 0, 1, 0], [], []>} : vector<8x8xbf16>, vector<8x8xbf16>, vector<8x8xf32> -> vector<8x8xf32>
    %48 = arith.addf %47, %9 : vector<8x8xf32>
    %cst_12 = arith.constant dense<0xFF800000> : vector<8xf32>
    %49 = vector.multi_reduction <maximumf>, %48, %cst_12 [1] : vector<8x8xf32> to vector<8xf32>
    %50 = vector.shape_cast %49 : vector<8xf32> to vector<8x1xf32>
    %51 = vector.broadcast %50 : vector<8x1xf32> to vector<8x8xf32>
    %52 = arith.subf %48, %51 : vector<8x8xf32>
    %53 = math.exp %52 : vector<8x8xf32>
    %cst_13 = arith.constant dense<0.000000e+00> : vector<8xf32>
    %54 = vector.multi_reduction <add>, %53, %cst_13 [1] : vector<8x8xf32> to vector<8xf32>
    %55 = vector.shape_cast %54 : vector<8xf32> to vector<8x1xf32>
    %56 = tpu.reciprocal %55 {approx = true} : vector<8x1xf32> -> vector<8x1xf32>
    %57 = vector.broadcast %56 : vector<8x1xf32> to vector<8x8xf32>
    %58 = arith.mulf %53, %57 : vector<8x8xf32>
    %59 = arith.truncf %58 : vector<8x8xf32> to vector<8x8xbf16>
    %cst_14 = arith.constant dense<0.000000e+00> : vector<8x8xf32>
    %60 = tpu.matmul %59, %46, %cst_14 {dimension_numbers = #tpu.dot_dimension_numbers<[1], [0], [0], [1], [0, 0, 1, 1], [], []>} : vector<8x8xbf16>, vector<8x8xbf16>, vector<8x8xf32> -> vector<8x8xf32>
    %61 = vector.extract_strided_slice %1 {offsets = [0, 24], sizes = [8, 8], strides = [1, 1]} : vector<8x96xbf16> to vector<8x8xbf16>
    %62 = vector.extract_strided_slice %1 {offsets = [0, 56], sizes = [8, 8], strides = [1, 1]} : vector<8x96xbf16> to vector<8x8xbf16>
    %63 = vector.extract_strided_slice %1 {offsets = [0, 88], sizes = [8, 8], strides = [1, 1]} : vector<8x96xbf16> to vector<8x8xbf16>
    %cst_15 = arith.constant dense<0.000000e+00> : vector<8x8xf32>
    %64 = tpu.matmul %61, %62, %cst_15 {dimension_numbers = #tpu.dot_dimension_numbers<[1], [1], [0], [0], [0, 0, 1, 0], [], []>} : vector<8x8xbf16>, vector<8x8xbf16>, vector<8x8xf32> -> vector<8x8xf32>
    %65 = arith.addf %64, %9 : vector<8x8xf32>
    %cst_16 = arith.constant dense<0xFF800000> : vector<8xf32>
    %66 = vector.multi_reduction <maximumf>, %65, %cst_16 [1] : vector<8x8xf32> to vector<8xf32>
    %67 = vector.shape_cast %66 : vector<8xf32> to vector<8x1xf32>
    %68 = vector.broadcast %67 : vector<8x1xf32> to vector<8x8xf32>
    %69 = arith.subf %65, %68 : vector<8x8xf32>
    %70 = math.exp %69 : vector<8x8xf32>
    %cst_17 = arith.constant dense<0.000000e+00> : vector<8xf32>
    %71 = vector.multi_reduction <add>, %70, %cst_17 [1] : vector<8x8xf32> to vector<8xf32>
    %72 = vector.shape_cast %71 : vector<8xf32> to vector<8x1xf32>
    %73 = tpu.reciprocal %72 {approx = true} : vector<8x1xf32> -> vector<8x1xf32>
    %74 = vector.broadcast %73 : vector<8x1xf32> to vector<8x8xf32>
    %75 = arith.mulf %70, %74 : vector<8x8xf32>
    %76 = arith.truncf %75 : vector<8x8xf32> to vector<8x8xbf16>
    %cst_18 = arith.constant dense<0.000000e+00> : vector<8x8xf32>
    %77 = tpu.matmul %76, %63, %cst_18 {dimension_numbers = #tpu.dot_dimension_numbers<[1], [0], [0], [1], [0, 0, 1, 1], [], []>} : vector<8x8xbf16>, vector<8x8xbf16>, vector<8x8xf32> -> vector<8x8xf32>
    %78 = tpu.concatenate %26, %43, %60, %77 in 1 : vector<8x8xf32>, vector<8x8xf32>, vector<8x8xf32>, vector<8x8xf32> -> vector<8x32xf32>
    %79 = arith.truncf %78 : vector<8x32xf32> to vector<8x32xbf16>
    %c0_19 = arith.constant 0 : index
    %c0_20 = arith.constant 0 : index
    %80 = vector.load %arg3[%c0_19, %c0_20] : memref<32x32xbf16, #tpu.memory_space<vmem>>, vector<32x32xbf16>
    %cst_21 = arith.constant dense<0.000000e+00> : vector<8x32xf32>
    %81 = tpu.matmul %79, %80, %cst_21 {dimension_numbers = #tpu.dot_dimension_numbers<[1], [0], [0], [1], [0, 0, 1, 1], [], []>} : vector<8x32xbf16>, vector<32x32xbf16>, vector<8x32xf32> -> vector<8x32xf32>
    %c0_22 = arith.constant 0 : index
    %c0_23 = arith.constant 0 : index
    %c0_24 = arith.constant 0 : index
    %82 = vector.load %arg5[%c0_22, %c0_23, %c0_24] : memref<1x8x32xbf16, #tpu.memory_space<vmem>>, vector<1x8x32xbf16>
    %83 = vector.shape_cast %82 : vector<1x8x32xbf16> to vector<8x32xbf16>
    %84 = arith.extf %83 : vector<8x32xbf16> to vector<8x32xf32>
    %85 = arith.addf %84, %81 : vector<8x32xf32>
    %c0_25 = arith.constant 0 : index
    %c0_26 = arith.constant 0 : index
    %86 = vector.load %arg4[%c0_25, %c0_26] : memref<1x32xf32, #tpu.memory_space<vmem>>, vector<1x32xf32>
    %87 = vector.broadcast %86 : vector<1x32xf32> to vector<8x32xf32>
    %88 = arith.addf %85, %87 : vector<8x32xf32>
    %cst_27 = arith.constant dense<0.000000e+00> : vector<8xf32>
    %89 = vector.multi_reduction <add>, %88, %cst_27 [1] : vector<8x32xf32> to vector<8xf32>
    %90 = vector.shape_cast %89 : vector<8xf32> to vector<8x1xf32>
    %cst_28 = arith.constant 3.200000e+01 : f32
    %91 = vector.broadcast %cst_28 : f32 to vector<8x1xf32>
    %92 = arith.divf %90, %91 : vector<8x1xf32>
    %93 = vector.broadcast %92 : vector<8x1xf32> to vector<8x32xf32>
    %94 = arith.subf %88, %93 : vector<8x32xf32>
    %95 = arith.mulf %94, %94 : vector<8x32xf32>
    %cst_29 = arith.constant dense<0.000000e+00> : vector<8xf32>
    %96 = vector.multi_reduction <add>, %95, %cst_29 [1] : vector<8x32xf32> to vector<8xf32>
    %97 = vector.shape_cast %96 : vector<8xf32> to vector<8x1xf32>
    %cst_30 = arith.constant 3.200000e+01 : f32
    %98 = vector.broadcast %cst_30 : f32 to vector<8x1xf32>
    %99 = arith.divf %97, %98 : vector<8x1xf32>
    %100 = vector.broadcast %92 : vector<8x1xf32> to vector<8x32xf32>
    %101 = arith.subf %88, %100 : vector<8x32xf32>
    %cst_31 = arith.constant 9.99999974E-6 : f32
    %102 = vector.broadcast %cst_31 : f32 to vector<8x1xf32>
    %103 = arith.addf %99, %102 : vector<8x1xf32>
    %104 = math.rsqrt %103 : vector<8x1xf32>
    %105 = vector.broadcast %104 : vector<8x1xf32> to vector<8x32xf32>
    %106 = arith.mulf %101, %105 : vector<8x32xf32>
    %c0_32 = arith.constant 0 : index
    %c0_33 = arith.constant 0 : index
    %107 = vector.load %arg6[%c0_32, %c0_33] : memref<1x32xf32, #tpu.memory_space<vmem>>, vector<1x32xf32>
    %108 = vector.broadcast %107 : vector<1x32xf32> to vector<8x32xf32>
    %109 = arith.mulf %106, %108 : vector<8x32xf32>
    %c0_34 = arith.constant 0 : index
    %c0_35 = arith.constant 0 : index
    %110 = vector.load %arg7[%c0_34, %c0_35] : memref<1x32xf32, #tpu.memory_space<vmem>>, vector<1x32xf32>
    %111 = vector.broadcast %110 : vector<1x32xf32> to vector<8x32xf32>
    %112 = arith.addf %109, %111 : vector<8x32xf32>
    %113 = arith.truncf %112 : vector<8x32xf32> to vector<8x32xbf16>
    %c0_36 = arith.constant 0 : index
    %c0_37 = arith.constant 0 : index
    %c0_38 = arith.constant 0 : index
    %114 = vector.load %arg8[%c0_36, %c0_37, %c0_38] : memref<1x8x32xbf16, #tpu.memory_space<vmem>>, vector<1x8x32xbf16>
    %115 = vector.shape_cast %114 : vector<1x8x32xbf16> to vector<8x32xbf16>
    %116 = vector.shape_cast %113 : vector<8x32xbf16> to vector<1x8x32xbf16>
    tpu.vector_store %arg8[%c0_36, %c0_37, %c0_38], %116 {strides = array<i32>} : memref<1x8x32xbf16, #tpu.memory_space<vmem>>, vector<1x8x32xbf16>,
    return
  }
  func.func @transform_0(%arg0: i32, %arg1: memref<2xi32, #tpu.memory_space<smem>>) -> (i32, i32, i32) {
    %c0_i32 = arith.constant 0 : i32
    %c0_i32_0 = arith.constant 0 : i32
    %c0_i32_1 = arith.constant 0 : i32
    return %arg0, %c0_i32, %c0_i32_0 : i32, i32, i32
  }
  func.func @transform_1(%arg0: i32, %arg1: memref<2xi32, #tpu.memory_space<smem>>) -> (i32, i32) {
    %c0_i32 = arith.constant 0 : i32
    %c0_i32_0 = arith.constant 0 : i32
    %c0_i32_1 = arith.constant 0 : i32
    return %c0_i32, %c0_i32_0 : i32, i32
  }
  func.func @transform_2(%arg0: i32, %arg1: memref<2xi32, #tpu.memory_space<smem>>) -> (i32, i32) {
    %c0_i32 = arith.constant 0 : i32
    %c0_i32_0 = arith.constant 0 : i32
    %c0_i32_1 = arith.constant 0 : i32
    return %c0_i32, %c0_i32_0 : i32, i32
  }
  func.func @transform_3(%arg0: i32, %arg1: memref<2xi32, #tpu.memory_space<smem>>) -> (i32, i32, i32) {
    %c0_i32 = arith.constant 0 : i32
    %c0_i32_0 = arith.constant 0 : i32
    %c0_i32_1 = arith.constant 0 : i32
    return %arg0, %c0_i32, %c0_i32_0 : i32, i32, i32
  }
  func.func @transform_4(%arg0: i32, %arg1: memref<2xi32, #tpu.memory_space<smem>>) -> (i32, i32) {
    %c0_i32 = arith.constant 0 : i32
    %c0_i32_0 = arith.constant 0 : i32
    %c0_i32_1 = arith.constant 0 : i32
    return %c0_i32, %c0_i32_0 : i32, i32
  }
  func.func @transform_5(%arg0: i32, %arg1: memref<2xi32, #tpu.memory_space<smem>>) -> (i32, i32) {
    %c0_i32 = arith.constant 0 : i32
    %c0_i32_0 = arith.constant 0 : i32
    %c0_i32_1 = arith.constant 0 : i32
    return %c0_i32, %c0_i32_0 : i32, i32
  }
  func.func @transform_6(%arg0: i32, %arg1: memref<2xi32, #tpu.memory_space<smem>>) -> (i32, i32, i32) {
    %c0_i32 = arith.constant 0 : i32
    %c0_i32_0 = arith.constant 0 : i32
    %c0_i32_1 = arith.constant 0 : i32
    return %arg0, %c0_i32, %c0_i32_0 : i32, i32, i32
  }
}

module attributes {stable_mosaic.version = 11 : i64} {
  func.func @_matmul_bias_kernel(%arg0: i32, %arg1: i32, %arg2: i32, %arg3: memref<16x32xbf16, #tpu.memory_space<vmem>>, %arg4: memref<32x64xbf16, #tpu.memory_space<vmem>>, %arg5: memref<1x64xf32, #tpu.memory_space<vmem>>, %arg6: memref<16x64xbf16, #tpu.memory_space<vmem>>, %arg7: memref<16x64xf32, #tpu.memory_space<vmem>>) attributes {dimension_semantics = [#tpu.dimension_semantics<parallel>, #tpu.dimension_semantics<parallel>, #tpu.dimension_semantics<arbitrary>], iteration_bounds = array<i64: 1, 1, 1>, scalar_prefetch = 0 : i64, scratch_operands = 1 : i64, tpu.core_type = #tpu.core_type<tc>, window_params = [{transform_indices = @transform_0, window_bounds = array<i64: 16, 32>}, {transform_indices = @transform_1, window_bounds = array<i64: 32, 64>}, {transform_indices = @transform_2, window_bounds = array<i64: 1, 64>}, {transform_indices = @transform_3, window_bounds = array<i64: 16, 64>}]} {
    %c0_i32 = arith.constant 0 : i32
    %0 = arith.cmpi eq, %arg2, %c0_i32 : i32
    %1 = arith.extui %0 : i1 to i32
    %c0_i32_0 = arith.constant 0 : i32
    %2 = arith.cmpi ne, %1, %c0_i32_0 : i32
    scf.if %2 {
      %cst_10 = arith.constant 0.000000e+00 : f32
      %12 = vector.broadcast %cst_10 : f32 to vector<16x64xf32>
      %c0_11 = arith.constant 0 : index
      %c0_12 = arith.constant 0 : index
      %13 = vector.load %arg7[%c0_11, %c0_12] : memref<16x64xf32, #tpu.memory_space<vmem>>, vector<16x64xf32>
      tpu.vector_store %arg7[%c0_11, %c0_12], %12 {strides = array<i32>} : memref<16x64xf32, #tpu.memory_space<vmem>>, vector<16x64xf32>,
    } else {
    }
    %c0 = arith.constant 0 : index
    %c0_1 = arith.constant 0 : index
    %3 = vector.load %arg7[%c0, %c0_1] : memref<16x64xf32, #tpu.memory_space<vmem>>, vector<16x64xf32>
    %c0_2 = arith.constant 0 : index
    %c0_3 = arith.constant 0 : index
    %4 = vector.load %arg3[%c0_2, %c0_3] : memref<16x32xbf16, #tpu.memory_space<vmem>>, vector<16x32xbf16>
    %c0_4 = arith.constant 0 : index
    %c0_5 = arith.constant 0 : index
    %5 = vector.load %arg4[%c0_4, %c0_5] : memref<32x64xbf16, #tpu.memory_space<vmem>>, vector<32x64xbf16>
    %cst = arith.constant dense<0.000000e+00> : vector<16x64xf32>
    %6 = tpu.matmul %4, %5, %cst {dimension_numbers = #tpu.dot_dimension_numbers<[1], [0], [0], [1], [0, 0, 1, 1], [], []>} : vector<16x32xbf16>, vector<32x64xbf16>, vector<16x64xf32> -> vector<16x64xf32>
    %7 = arith.addf %3, %6 : vector<16x64xf32>
    %c0_6 = arith.constant 0 : index
    %c0_7 = arith.constant 0 : index
    %8 = vector.load %arg7[%c0_6, %c0_7] : memref<16x64xf32, #tpu.memory_space<vmem>>, vector<16x64xf32>
    tpu.vector_store %arg7[%c0_6, %c0_7], %7 {strides = array<i32>} : memref<16x64xf32, #tpu.memory_space<vmem>>, vector<16x64xf32>,
    %c0_i32_8 = arith.constant 0 : i32
    %9 = arith.cmpi eq, %arg2, %c0_i32_8 : i32
    %10 = arith.extui %9 : i1 to i32
    %c0_i32_9 = arith.constant 0 : i32
    %11 = arith.cmpi ne, %10, %c0_i32_9 : i32
    scf.if %11 {
      %c0_10 = arith.constant 0 : index
      %c0_11 = arith.constant 0 : index
      %12 = vector.load %arg7[%c0_10, %c0_11] : memref<16x64xf32, #tpu.memory_space<vmem>>, vector<16x64xf32>
      %c0_12 = arith.constant 0 : index
      %c0_13 = arith.constant 0 : index
      %13 = vector.load %arg5[%c0_12, %c0_13] : memref<1x64xf32, #tpu.memory_space<vmem>>, vector<1x64xf32>
      %14 = vector.broadcast %13 : vector<1x64xf32> to vector<16x64xf32>
      %15 = arith.addf %12, %14 : vector<16x64xf32>
      %16 = arith.truncf %15 : vector<16x64xf32> to vector<16x64xbf16>
      %c0_14 = arith.constant 0 : index
      %c0_15 = arith.constant 0 : index
      %17 = vector.load %arg6[%c0_14, %c0_15] : memref<16x64xbf16, #tpu.memory_space<vmem>>, vector<16x64xbf16>
      tpu.vector_store %arg6[%c0_14, %c0_15], %16 {strides = array<i32>} : memref<16x64xbf16, #tpu.memory_space<vmem>>, vector<16x64xbf16>,
    } else {
    }
    return
  }
  func.func @transform_0(%arg0: i32, %arg1: i32, %arg2: i32) -> (i32, i32) {
    %c0_i32 = arith.constant 0 : i32
    return %arg0, %arg2 : i32, i32
  }
  func.func @transform_1(%arg0: i32, %arg1: i32, %arg2: i32) -> (i32, i32) {
    %c0_i32 = arith.constant 0 : i32
    return %arg2, %arg1 : i32, i32
  }
  func.func @transform_2(%arg0: i32, %arg1: i32, %arg2: i32) -> (i32, i32) {
    %c0_i32 = arith.constant 0 : i32
    %c0_i32_0 = arith.constant 0 : i32
    return %c0_i32, %arg1 : i32, i32
  }
  func.func @transform_3(%arg0: i32, %arg1: i32, %arg2: i32) -> (i32, i32) {
    %c0_i32 = arith.constant 0 : i32
    return %arg0, %arg1 : i32, i32
  }
}

module attributes {stable_mosaic.version = 11 : i64} {
  func.func @_attn_block_kernel(%arg0: i32, %arg1: memref<2xi32, #tpu.memory_space<smem>>, %arg2: memref<1x8x96xbf16, #tpu.memory_space<vmem>>, %arg3: memref<32x32xbf16, #tpu.memory_space<vmem>>, %arg4: memref<1x32xf32, #tpu.memory_space<vmem>>, %arg5: memref<1x8x32xbf16, #tpu.memory_space<vmem>>, %arg6: memref<1x32xf32, #tpu.memory_space<vmem>>, %arg7: memref<1x32xf32, #tpu.memory_space<vmem>>, %arg8: memref<1x8x32xbf16, #tpu.memory_space<vmem>>) attributes {dimension_semantics = [#tpu.dimension_semantics<parallel>], iteration_bounds = array<i64: 2>, scalar_prefetch = 1 : i64, scratch_operands = 0 : i64, tpu.core_type = #tpu.core_type<tc>, window_params = [{transform_indices = @transform_0, window_bounds = array<i64: 1, 8, 96>}, {pipeline_mode = #tpu.pipeline_mode<synchronous>, transform_indices = @transform_1, window_bounds = array<i64: 32, 32>}, {pipeline_mode = #tpu.pipeline_mode<synchronous>, transform_indices = @transform_2, window_bounds = array<i64: 1, 32>}, {transform_indices = @transform_3, window_bounds = array<i64: 1, 8, 32>}, {pipeline_mode = #tpu.pipeline_mode<synchronous>, transform_indices = @transform_4, window_bounds = array<i64: 1, 32>}, {pipeline_mode = #tpu.pipeline_mode<synchronous>, transform_indices = @transform_5, window_bounds = array<i64: 1, 32>}, {transform_indices = @transform_6, window_bounds = array<i64: 1, 8, 32>}]} {
    %c0 = arith.constant 0 : index
    %c0_0 = arith.constant 0 : index
    %c0_1 = arith.constant 0 : index
    %0 = vector.load %arg2[%c0, %c0_0, %c0_1] : memref<1x8x96xbf16, #tpu.memory_space<vmem>>, vector<1x8x96xbf16>
    %1 = vector.shape_cast %0 : vector<1x8x96xbf16> to vector<8x96xbf16>
    %2 = arith.index_cast %arg0 : i32 to index
    %3 = memref.load %arg1[%2] : memref<2xi32, #tpu.memory_space<smem>>
    %4 = tpu.iota {dimensions = array<i32: 1>} : vector<8x8xi32>
    %5 = vector.broadcast %3 : i32 to vector<8x8xi32>
    %6 = arith.cmpi slt, %4, %5 : vector<8x8xi32>
    %7 = tpu.iota {dimensions = array<i32: 0>} : vector<8x8xi32>
    %8 = arith.cmpi sle, %4, %7 : vector<8x8xi32>
    %9 = arith.andi %6, %8 : vector<8x8xi1>
    %cst = arith.constant 0.000000e+00 : f32
    %cst_2 = arith.constant -1.000000e+09 : f32
    %10 = vector.broadcast %cst : f32 to vector<8x8xf32>
    %11 = vector.broadcast %cst_2 : f32 to vector<8x8xf32>
    %12 = arith.select %9, %10, %11 : vector<8x8xi1>, vector<8x8xf32>
    %13 = vector.extract_strided_slice %1 {offsets = [0, 0], sizes = [8, 8], strides = [1, 1]} : vector<8x96xbf16> to vector<8x8xbf16>
    %14 = vector.extract_strided_slice %1 {offsets = [0, 32], sizes = [8, 8], strides = [1, 1]} : vector<8x96xbf16> to vector<8x8xbf16>
    %15 = vector.extract_strided_slice %1 {offsets = [0, 64], sizes = [8, 8], strides = [1, 1]} : vector<8x96xbf16> to vector<8x8xbf16>
    %cst_3 = arith.constant dense<0.000000e+00> : vector<8x8xf32>
    %16 = tpu.matmul %13, %14, %cst_3 {dimension_numbers = #tpu.dot_dimension_numbers<[1], [1], [0], [0], [0, 0, 1, 0], [], []>} : vector<8x8xbf16>, vector<8x8xbf16>, vector<8x8xf32> -> vector<8x8xf32>
    %17 = arith.addf %16, %12 : vector<8x8xf32>
    %cst_4 = arith.constant dense<0xFF800000> : vector<8xf32>
    %18 = vector.multi_reduction <maximumf>, %17, %cst_4 [1] : vector<8x8xf32> to vector<8xf32>
    %19 = vector.shape_cast %18 : vector<8xf32> to vector<8x1xf32>
    %20 = vector.broadcast %19 : vector<8x1xf32> to vector<8x8xf32>
    %21 = arith.subf %17, %20 : vector<8x8xf32>
    %22 = math.exp %21 : vector<8x8xf32>
    %cst_5 = arith.constant dense<0.000000e+00> : vector<8xf32>
    %23 = vector.multi_reduction <add>, %22, %cst_5 [1] : vector<8x8xf32> to vector<8xf32>
    %24 = vector.shape_cast %23 : vector<8xf32> to vector<8x1xf32>
    %25 = tpu.reciprocal %24 {approx = true} : vector<8x1xf32> -> vector<8x1xf32>
    %26 = vector.broadcast %25 : vector<8x1xf32> to vector<8x8xf32>
    %27 = arith.mulf %22, %26 : vector<8x8xf32>
    %28 = arith.truncf %27 : vector<8x8xf32> to vector<8x8xbf16>
    %cst_6 = arith.constant dense<0.000000e+00> : vector<8x8xf32>
    %29 = tpu.matmul %28, %15, %cst_6 {dimension_numbers = #tpu.dot_dimension_numbers<[1], [0], [0], [1], [0, 0, 1, 1], [], []>} : vector<8x8xbf16>, vector<8x8xbf16>, vector<8x8xf32> -> vector<8x8xf32>
    %30 = vector.extract_strided_slice %1 {offsets = [0, 8], sizes = [8, 8], strides = [1, 1]} : vector<8x96xbf16> to vector<8x8xbf16>
    %31 = vector.extract_strided_slice %1 {offsets = [0, 40], sizes = [8, 8], strides = [1, 1]} : vector<8x96xbf16> to vector<8x8xbf16>
    %32 = vector.extract_strided_slice %1 {offsets = [0, 72], sizes = [8, 8], strides = [1, 1]} : vector<8x96xbf16> to vector<8x8xbf16>
    %cst_7 = arith.constant dense<0.000000e+00> : vector<8x8xf32>
    %33 = tpu.matmul %30, %31, %cst_7 {dimension_numbers = #tpu.dot_dimension_numbers<[1], [1], [0], [0], [0, 0, 1, 0], [], []>} : vector<8x8xbf16>, vector<8x8xbf16>, vector<8x8xf32> -> vector<8x8xf32>
    %34 = arith.addf %33, %12 : vector<8x8xf32>
    %cst_8 = arith.constant dense<0xFF800000> : vector<8xf32>
    %35 = vector.multi_reduction <maximumf>, %34, %cst_8 [1] : vector<8x8xf32> to vector<8xf32>
    %36 = vector.shape_cast %35 : vector<8xf32> to vector<8x1xf32>
    %37 = vector.broadcast %36 : vector<8x1xf32> to vector<8x8xf32>
    %38 = arith.subf %34, %37 : vector<8x8xf32>
    %39 = math.exp %38 : vector<8x8xf32>
    %cst_9 = arith.constant dense<0.000000e+00> : vector<8xf32>
    %40 = vector.multi_reduction <add>, %39, %cst_9 [1] : vector<8x8xf32> to vector<8xf32>
    %41 = vector.shape_cast %40 : vector<8xf32> to vector<8x1xf32>
    %42 = tpu.reciprocal %41 {approx = true} : vector<8x1xf32> -> vector<8x1xf32>
    %43 = vector.broadcast %42 : vector<8x1xf32> to vector<8x8xf32>
    %44 = arith.mulf %39, %43 : vector<8x8xf32>
    %45 = arith.truncf %44 : vector<8x8xf32> to vector<8x8xbf16>
    %cst_10 = arith.constant dense<0.000000e+00> : vector<8x8xf32>
    %46 = tpu.matmul %45, %32, %cst_10 {dimension_numbers = #tpu.dot_dimension_numbers<[1], [0], [0], [1], [0, 0, 1, 1], [], []>} : vector<8x8xbf16>, vector<8x8xbf16>, vector<8x8xf32> -> vector<8x8xf32>
    %47 = vector.extract_strided_slice %1 {offsets = [0, 16], sizes = [8, 8], strides = [1, 1]} : vector<8x96xbf16> to vector<8x8xbf16>
    %48 = vector.extract_strided_slice %1 {offsets = [0, 48], sizes = [8, 8], strides = [1, 1]} : vector<8x96xbf16> to vector<8x8xbf16>
    %49 = vector.extract_strided_slice %1 {offsets = [0, 80], sizes = [8, 8], strides = [1, 1]} : vector<8x96xbf16> to vector<8x8xbf16>
    %cst_11 = arith.constant dense<0.000000e+00> : vector<8x8xf32>
    %50 = tpu.matmul %47, %48, %cst_11 {dimension_numbers = #tpu.dot_dimension_numbers<[1], [1], [0], [0], [0, 0, 1, 0], [], []>} : vector<8x8xbf16>, vector<8x8xbf16>, vector<8x8xf32> -> vector<8x8xf32>
    %51 = arith.addf %50, %12 : vector<8x8xf32>
    %cst_12 = arith.constant dense<0xFF800000> : vector<8xf32>
    %52 = vector.multi_reduction <maximumf>, %51, %cst_12 [1] : vector<8x8xf32> to vector<8xf32>
    %53 = vector.shape_cast %52 : vector<8xf32> to vector<8x1xf32>
    %54 = vector.broadcast %53 : vector<8x1xf32> to vector<8x8xf32>
    %55 = arith.subf %51, %54 : vector<8x8xf32>
    %56 = math.exp %55 : vector<8x8xf32>
    %cst_13 = arith.constant dense<0.000000e+00> : vector<8xf32>
    %57 = vector.multi_reduction <add>, %56, %cst_13 [1] : vector<8x8xf32> to vector<8xf32>
    %58 = vector.shape_cast %57 : vector<8xf32> to vector<8x1xf32>
    %59 = tpu.reciprocal %58 {approx = true} : vector<8x1xf32> -> vector<8x1xf32>
    %60 = vector.broadcast %59 : vector<8x1xf32> to vector<8x8xf32>
    %61 = arith.mulf %56, %60 : vector<8x8xf32>
    %62 = arith.truncf %61 : vector<8x8xf32> to vector<8x8xbf16>
    %cst_14 = arith.constant dense<0.000000e+00> : vector<8x8xf32>
    %63 = tpu.matmul %62, %49, %cst_14 {dimension_numbers = #tpu.dot_dimension_numbers<[1], [0], [0], [1], [0, 0, 1, 1], [], []>} : vector<8x8xbf16>, vector<8x8xbf16>, vector<8x8xf32> -> vector<8x8xf32>
    %64 = vector.extract_strided_slice %1 {offsets = [0, 24], sizes = [8, 8], strides = [1, 1]} : vector<8x96xbf16> to vector<8x8xbf16>
    %65 = vector.extract_strided_slice %1 {offsets = [0, 56], sizes = [8, 8], strides = [1, 1]} : vector<8x96xbf16> to vector<8x8xbf16>
    %66 = vector.extract_strided_slice %1 {offsets = [0, 88], sizes = [8, 8], strides = [1, 1]} : vector<8x96xbf16> to vector<8x8xbf16>
    %cst_15 = arith.constant dense<0.000000e+00> : vector<8x8xf32>
    %67 = tpu.matmul %64, %65, %cst_15 {dimension_numbers = #tpu.dot_dimension_numbers<[1], [1], [0], [0], [0, 0, 1, 0], [], []>} : vector<8x8xbf16>, vector<8x8xbf16>, vector<8x8xf32> -> vector<8x8xf32>
    %68 = arith.addf %67, %12 : vector<8x8xf32>
    %cst_16 = arith.constant dense<0xFF800000> : vector<8xf32>
    %69 = vector.multi_reduction <maximumf>, %68, %cst_16 [1] : vector<8x8xf32> to vector<8xf32>
    %70 = vector.shape_cast %69 : vector<8xf32> to vector<8x1xf32>
    %71 = vector.broadcast %70 : vector<8x1xf32> to vector<8x8xf32>
    %72 = arith.subf %68, %71 : vector<8x8xf32>
    %73 = math.exp %72 : vector<8x8xf32>
    %cst_17 = arith.constant dense<0.000000e+00> : vector<8xf32>
    %74 = vector.multi_reduction <add>, %73, %cst_17 [1] : vector<8x8xf32> to vector<8xf32>
    %75 = vector.shape_cast %74 : vector<8xf32> to vector<8x1xf32>
    %76 = tpu.reciprocal %75 {approx = true} : vector<8x1xf32> -> vector<8x1xf32>
    %77 = vector.broadcast %76 : vector<8x1xf32> to vector<8x8xf32>
    %78 = arith.mulf %73, %77 : vector<8x8xf32>
    %79 = arith.truncf %78 : vector<8x8xf32> to vector<8x8xbf16>
    %cst_18 = arith.constant dense<0.000000e+00> : vector<8x8xf32>
    %80 = tpu.matmul %79, %66, %cst_18 {dimension_numbers = #tpu.dot_dimension_numbers<[1], [0], [0], [1], [0, 0, 1, 1], [], []>} : vector<8x8xbf16>, vector<8x8xbf16>, vector<8x8xf32> -> vector<8x8xf32>
    %81 = tpu.concatenate %29, %46, %63, %80 in 1 : vector<8x8xf32>, vector<8x8xf32>, vector<8x8xf32>, vector<8x8xf32> -> vector<8x32xf32>
    %82 = arith.truncf %81 : vector<8x32xf32> to vector<8x32xbf16>
    %c0_19 = arith.constant 0 : index
    %c0_20 = arith.constant 0 : index
    %83 = vector.load %arg3[%c0_19, %c0_20] : memref<32x32xbf16, #tpu.memory_space<vmem>>, vector<32x32xbf16>
    %cst_21 = arith.constant dense<0.000000e+00> : vector<8x32xf32>
    %84 = tpu.matmul %82, %83, %cst_21 {dimension_numbers = #tpu.dot_dimension_numbers<[1], [0], [0], [1], [0, 0, 1, 1], [], []>} : vector<8x32xbf16>, vector<32x32xbf16>, vector<8x32xf32> -> vector<8x32xf32>
    %c0_22 = arith.constant 0 : index
    %c0_23 = arith.constant 0 : index
    %c0_24 = arith.constant 0 : index
    %85 = vector.load %arg5[%c0_22, %c0_23, %c0_24] : memref<1x8x32xbf16, #tpu.memory_space<vmem>>, vector<1x8x32xbf16>
    %86 = vector.shape_cast %85 : vector<1x8x32xbf16> to vector<8x32xbf16>
    %87 = arith.extf %86 : vector<8x32xbf16> to vector<8x32xf32>
    %88 = arith.addf %87, %84 : vector<8x32xf32>
    %c0_25 = arith.constant 0 : index
    %c0_26 = arith.constant 0 : index
    %89 = vector.load %arg4[%c0_25, %c0_26] : memref<1x32xf32, #tpu.memory_space<vmem>>, vector<1x32xf32>
    %90 = vector.broadcast %89 : vector<1x32xf32> to vector<8x32xf32>
    %91 = arith.addf %88, %90 : vector<8x32xf32>
    %cst_27 = arith.constant dense<0.000000e+00> : vector<8xf32>
    %92 = vector.multi_reduction <add>, %91, %cst_27 [1] : vector<8x32xf32> to vector<8xf32>
    %93 = vector.shape_cast %92 : vector<8xf32> to vector<8x1xf32>
    %cst_28 = arith.constant 3.200000e+01 : f32
    %94 = vector.broadcast %cst_28 : f32 to vector<8x1xf32>
    %95 = arith.divf %93, %94 : vector<8x1xf32>
    %96 = vector.broadcast %95 : vector<8x1xf32> to vector<8x32xf32>
    %97 = arith.subf %91, %96 : vector<8x32xf32>
    %98 = arith.mulf %97, %97 : vector<8x32xf32>
    %cst_29 = arith.constant dense<0.000000e+00> : vector<8xf32>
    %99 = vector.multi_reduction <add>, %98, %cst_29 [1] : vector<8x32xf32> to vector<8xf32>
    %100 = vector.shape_cast %99 : vector<8xf32> to vector<8x1xf32>
    %cst_30 = arith.constant 3.200000e+01 : f32
    %101 = vector.broadcast %cst_30 : f32 to vector<8x1xf32>
    %102 = arith.divf %100, %101 : vector<8x1xf32>
    %103 = vector.broadcast %95 : vector<8x1xf32> to vector<8x32xf32>
    %104 = arith.subf %91, %103 : vector<8x32xf32>
    %cst_31 = arith.constant 9.99999974E-6 : f32
    %105 = vector.broadcast %cst_31 : f32 to vector<8x1xf32>
    %106 = arith.addf %102, %105 : vector<8x1xf32>
    %107 = math.rsqrt %106 : vector<8x1xf32>
    %108 = vector.broadcast %107 : vector<8x1xf32> to vector<8x32xf32>
    %109 = arith.mulf %104, %108 : vector<8x32xf32>
    %c0_32 = arith.constant 0 : index
    %c0_33 = arith.constant 0 : index
    %110 = vector.load %arg6[%c0_32, %c0_33] : memref<1x32xf32, #tpu.memory_space<vmem>>, vector<1x32xf32>
    %111 = vector.broadcast %110 : vector<1x32xf32> to vector<8x32xf32>
    %112 = arith.mulf %109, %111 : vector<8x32xf32>
    %c0_34 = arith.constant 0 : index
    %c0_35 = arith.constant 0 : index
    %113 = vector.load %arg7[%c0_34, %c0_35] : memref<1x32xf32, #tpu.memory_space<vmem>>, vector<1x32xf32>
    %114 = vector.broadcast %113 : vector<1x32xf32> to vector<8x32xf32>
    %115 = arith.addf %112, %114 : vector<8x32xf32>
    %116 = arith.truncf %115 : vector<8x32xf32> to vector<8x32xbf16>
    %c0_36 = arith.constant 0 : index
    %c0_37 = arith.constant 0 : index
    %c0_38 = arith.constant 0 : index
    %117 = vector.load %arg8[%c0_36, %c0_37, %c0_38] : memref<1x8x32xbf16, #tpu.memory_space<vmem>>, vector<1x8x32xbf16>
    %118 = vector.shape_cast %117 : vector<1x8x32xbf16> to vector<8x32xbf16>
    %119 = vector.shape_cast %116 : vector<8x32xbf16> to vector<1x8x32xbf16>
    tpu.vector_store %arg8[%c0_36, %c0_37, %c0_38], %119 {strides = array<i32>} : memref<1x8x32xbf16, #tpu.memory_space<vmem>>, vector<1x8x32xbf16>,
    return
  }
  func.func @transform_0(%arg0: i32, %arg1: memref<2xi32, #tpu.memory_space<smem>>) -> (i32, i32, i32) {
    %c0_i32 = arith.constant 0 : i32
    %c0_i32_0 = arith.constant 0 : i32
    %c0_i32_1 = arith.constant 0 : i32
    return %arg0, %c0_i32, %c0_i32_0 : i32, i32, i32
  }
  func.func @transform_1(%arg0: i32, %arg1: memref<2xi32, #tpu.memory_space<smem>>) -> (i32, i32) {
    %c0_i32 = arith.constant 0 : i32
    %c0_i32_0 = arith.constant 0 : i32
    %c0_i32_1 = arith.constant 0 : i32
    return %c0_i32, %c0_i32_0 : i32, i32
  }
  func.func @transform_2(%arg0: i32, %arg1: memref<2xi32, #tpu.memory_space<smem>>) -> (i32, i32) {
    %c0_i32 = arith.constant 0 : i32
    %c0_i32_0 = arith.constant 0 : i32
    %c0_i32_1 = arith.constant 0 : i32
    return %c0_i32, %c0_i32_0 : i32, i32
  }
  func.func @transform_3(%arg0: i32, %arg1: memref<2xi32, #tpu.memory_space<smem>>) -> (i32, i32, i32) {
    %c0_i32 = arith.constant 0 : i32
    %c0_i32_0 = arith.constant 0 : i32
    %c0_i32_1 = arith.constant 0 : i32
    return %arg0, %c0_i32, %c0_i32_0 : i32, i32, i32
  }
  func.func @transform_4(%arg0: i32, %arg1: memref<2xi32, #tpu.memory_space<smem>>) -> (i32, i32) {
    %c0_i32 = arith.constant 0 : i32
    %c0_i32_0 = arith.constant 0 : i32
    %c0_i32_1 = arith.constant 0 : i32
    return %c0_i32, %c0_i32_0 : i32, i32
  }
  func.func @transform_5(%arg0: i32, %arg1: memref<2xi32, #tpu.memory_space<smem>>) -> (i32, i32) {
    %c0_i32 = arith.constant 0 : i32
    %c0_i32_0 = arith.constant 0 : i32
    %c0_i32_1 = arith.constant 0 : i32
    return %c0_i32, %c0_i32_0 : i32, i32
  }
  func.func @transform_6(%arg0: i32, %arg1: memref<2xi32, #tpu.memory_space<smem>>) -> (i32, i32, i32) {
    %c0_i32 = arith.constant 0 : i32
    %c0_i32_0 = arith.constant 0 : i32
    %c0_i32_1 = arith.constant 0 : i32
    return %arg0, %c0_i32, %c0_i32_0 : i32, i32, i32
  }
}

module attributes {stable_mosaic.version = 11 : i64} {
  func.func @_matmul_bias_kernel(%arg0: i32, %arg1: i32, %arg2: i32, %arg3: memref<16x32xbf16, #tpu.memory_space<vmem>>, %arg4: memref<32x32xbf16, #tpu.memory_space<vmem>>, %arg5: memref<1x32xf32, #tpu.memory_space<vmem>>, %arg6: memref<16x32xbf16, #tpu.memory_space<vmem>>, %arg7: memref<16x32xf32, #tpu.memory_space<vmem>>) attributes {dimension_semantics = [#tpu.dimension_semantics<parallel>, #tpu.dimension_semantics<parallel>, #tpu.dimension_semantics<arbitrary>], iteration_bounds = array<i64: 1, 1, 1>, scalar_prefetch = 0 : i64, scratch_operands = 1 : i64, tpu.core_type = #tpu.core_type<tc>, window_params = [{transform_indices = @transform_0, window_bounds = array<i64: 16, 32>}, {transform_indices = @transform_1, window_bounds = array<i64: 32, 32>}, {transform_indices = @transform_2, window_bounds = array<i64: 1, 32>}, {transform_indices = @transform_3, window_bounds = array<i64: 16, 32>}]} {
    %c0_i32 = arith.constant 0 : i32
    %0 = arith.cmpi eq, %arg2, %c0_i32 : i32
    %1 = arith.extui %0 : i1 to i32
    %c0_i32_0 = arith.constant 0 : i32
    %2 = arith.cmpi ne, %1, %c0_i32_0 : i32
    scf.if %2 {
      %cst_10 = arith.constant 0.000000e+00 : f32
      %12 = vector.broadcast %cst_10 : f32 to vector<16x32xf32>
      %c0_11 = arith.constant 0 : index
      %c0_12 = arith.constant 0 : index
      %13 = vector.load %arg7[%c0_11, %c0_12] : memref<16x32xf32, #tpu.memory_space<vmem>>, vector<16x32xf32>
      tpu.vector_store %arg7[%c0_11, %c0_12], %12 {strides = array<i32>} : memref<16x32xf32, #tpu.memory_space<vmem>>, vector<16x32xf32>,
    } else {
    }
    %c0 = arith.constant 0 : index
    %c0_1 = arith.constant 0 : index
    %3 = vector.load %arg7[%c0, %c0_1] : memref<16x32xf32, #tpu.memory_space<vmem>>, vector<16x32xf32>
    %c0_2 = arith.constant 0 : index
    %c0_3 = arith.constant 0 : index
    %4 = vector.load %arg3[%c0_2, %c0_3] : memref<16x32xbf16, #tpu.memory_space<vmem>>, vector<16x32xbf16>
    %c0_4 = arith.constant 0 : index
    %c0_5 = arith.constant 0 : index
    %5 = vector.load %arg4[%c0_4, %c0_5] : memref<32x32xbf16, #tpu.memory_space<vmem>>, vector<32x32xbf16>
    %cst = arith.constant dense<0.000000e+00> : vector<16x32xf32>
    %6 = tpu.matmul %4, %5, %cst {dimension_numbers = #tpu.dot_dimension_numbers<[1], [0], [0], [1], [0, 0, 1, 1], [], []>} : vector<16x32xbf16>, vector<32x32xbf16>, vector<16x32xf32> -> vector<16x32xf32>
    %7 = arith.addf %3, %6 : vector<16x32xf32>
    %c0_6 = arith.constant 0 : index
    %c0_7 = arith.constant 0 : index
    %8 = vector.load %arg7[%c0_6, %c0_7] : memref<16x32xf32, #tpu.memory_space<vmem>>, vector<16x32xf32>
    tpu.vector_store %arg7[%c0_6, %c0_7], %7 {strides = array<i32>} : memref<16x32xf32, #tpu.memory_space<vmem>>, vector<16x32xf32>,
    %c0_i32_8 = arith.constant 0 : i32
    %9 = arith.cmpi eq, %arg2, %c0_i32_8 : i32
    %10 = arith.extui %9 : i1 to i32
    %c0_i32_9 = arith.constant 0 : i32
    %11 = arith.cmpi ne, %10, %c0_i32_9 : i32
    scf.if %11 {
      %c0_10 = arith.constant 0 : index
      %c0_11 = arith.constant 0 : index
      %12 = vector.load %arg7[%c0_10, %c0_11] : memref<16x32xf32, #tpu.memory_space<vmem>>, vector<16x32xf32>
      %c0_12 = arith.constant 0 : index
      %c0_13 = arith.constant 0 : index
      %13 = vector.load %arg5[%c0_12, %c0_13] : memref<1x32xf32, #tpu.memory_space<vmem>>, vector<1x32xf32>
      %14 = vector.broadcast %13 : vector<1x32xf32> to vector<16x32xf32>
      %15 = arith.addf %12, %14 : vector<16x32xf32>
      %16 = arith.truncf %15 : vector<16x32xf32> to vector<16x32xbf16>
      %c0_14 = arith.constant 0 : index
      %c0_15 = arith.constant 0 : index
      %17 = vector.load %arg6[%c0_14, %c0_15] : memref<16x32xbf16, #tpu.memory_space<vmem>>, vector<16x32xbf16>
      tpu.vector_store %arg6[%c0_14, %c0_15], %16 {strides = array<i32>} : memref<16x32xbf16, #tpu.memory_space<vmem>>, vector<16x32xbf16>,
    } else {
    }
    return
  }
  func.func @transform_0(%arg0: i32, %arg1: i32, %arg2: i32) -> (i32, i32) {
    %c0_i32 = arith.constant 0 : i32
    return %arg0, %arg2 : i32, i32
  }
  func.func @transform_1(%arg0: i32, %arg1: i32, %arg2: i32) -> (i32, i32) {
    %c0_i32 = arith.constant 0 : i32
    return %arg2, %arg1 : i32, i32
  }
  func.func @transform_2(%arg0: i32, %arg1: i32, %arg2: i32) -> (i32, i32) {
    %c0_i32 = arith.constant 0 : i32
    %c0_i32_0 = arith.constant 0 : i32
    return %c0_i32, %arg1 : i32, i32
  }
  func.func @transform_3(%arg0: i32, %arg1: i32, %arg2: i32) -> (i32, i32) {
    %c0_i32 = arith.constant 0 : i32
    return %arg0, %arg1 : i32, i32
  }
}

module attributes {stable_mosaic.version = 11 : i64} {
  func.func @_attn_block_kernel(%arg0: i32, %arg1: memref<2xi32, #tpu.memory_space<smem>>, %arg2: memref<1x8x32xbf16, #tpu.memory_space<vmem>>, %arg3: memref<1x8x64xbf16, #tpu.memory_space<vmem>>, %arg4: memref<32x32xbf16, #tpu.memory_space<vmem>>, %arg5: memref<1x32xf32, #tpu.memory_space<vmem>>, %arg6: memref<1x8x32xbf16, #tpu.memory_space<vmem>>, %arg7: memref<1x32xf32, #tpu.memory_space<vmem>>, %arg8: memref<1x32xf32, #tpu.memory_space<vmem>>, %arg9: memref<1x8x32xbf16, #tpu.memory_space<vmem>>) attributes {dimension_semantics = [#tpu.dimension_semantics<parallel>], iteration_bounds = array<i64: 2>, scalar_prefetch = 1 : i64, scratch_operands = 0 : i64, tpu.core_type = #tpu.core_type<tc>, window_params = [{transform_indices = @transform_0, window_bounds = array<i64: 1, 8, 32>}, {transform_indices = @transform_1, window_bounds = array<i64: 1, 8, 64>}, {pipeline_mode = #tpu.pipeline_mode<synchronous>, transform_indices = @transform_2, window_bounds = array<i64: 32, 32>}, {pipeline_mode = #tpu.pipeline_mode<synchronous>, transform_indices = @transform_3, window_bounds = array<i64: 1, 32>}, {transform_indices = @transform_4, window_bounds = array<i64: 1, 8, 32>}, {pipeline_mode = #tpu.pipeline_mode<synchronous>, transform_indices = @transform_5, window_bounds = array<i64: 1, 32>}, {pipeline_mode = #tpu.pipeline_mode<synchronous>, transform_indices = @transform_6, window_bounds = array<i64: 1, 32>}, {transform_indices = @transform_7, window_bounds = array<i64: 1, 8, 32>}]} {
    %c0 = arith.constant 0 : index
    %c0_0 = arith.constant 0 : index
    %c0_1 = arith.constant 0 : index
    %0 = vector.load %arg2[%c0, %c0_0, %c0_1] : memref<1x8x32xbf16, #tpu.memory_space<vmem>>, vector<1x8x32xbf16>
    %1 = vector.shape_cast %0 : vector<1x8x32xbf16> to vector<8x32xbf16>
    %c0_2 = arith.constant 0 : index
    %c0_3 = arith.constant 0 : index
    %c0_4 = arith.constant 0 : index
    %2 = vector.load %arg3[%c0_2, %c0_3, %c0_4] : memref<1x8x64xbf16, #tpu.memory_space<vmem>>, vector<1x8x64xbf16>
    %3 = vector.shape_cast %2 : vector<1x8x64xbf16> to vector<8x64xbf16>
    %4 = arith.index_cast %arg0 : i32 to index
    %5 = memref.load %arg1[%4] : memref<2xi32, #tpu.memory_space<smem>>
    %6 = tpu.iota {dimensions = array<i32: 1>} : vector<8x8xi32>
    %7 = vector.broadcast %5 : i32 to vector<8x8xi32>
    %8 = arith.cmpi slt, %6, %7 : vector<8x8xi32>
    %cst = arith.constant 0.000000e+00 : f32
    %cst_5 = arith.constant -1.000000e+09 : f32
    %9 = vector.broadcast %cst : f32 to vector<8x8xf32>
    %10 = vector.broadcast %cst_5 : f32 to vector<8x8xf32>
    %11 = arith.select %8, %9, %10 : vector<8x8xi1>, vector<8x8xf32>
    %12 = vector.extract_strided_slice %1 {offsets = [0, 0], sizes = [8, 8], strides = [1, 1]} : vector<8x32xbf16> to vector<8x8xbf16>
    %13 = vector.extract_strided_slice %3 {offsets = [0, 0], sizes = [8, 8], strides = [1, 1]} : vector<8x64xbf16> to vector<8x8xbf16>
    %14 = vector.extract_strided_slice %3 {offsets = [0, 32], sizes = [8, 8], strides = [1, 1]} : vector<8x64xbf16> to vector<8x8xbf16>
    %cst_6 = arith.constant dense<0.000000e+00> : vector<8x8xf32>
    %15 = tpu.matmul %12, %13, %cst_6 {dimension_numbers = #tpu.dot_dimension_numbers<[1], [1], [0], [0], [0, 0, 1, 0], [], []>} : vector<8x8xbf16>, vector<8x8xbf16>, vector<8x8xf32> -> vector<8x8xf32>
    %16 = arith.addf %15, %11 : vector<8x8xf32>
    %cst_7 = arith.constant dense<0xFF800000> : vector<8xf32>
    %17 = vector.multi_reduction <maximumf>, %16, %cst_7 [1] : vector<8x8xf32> to vector<8xf32>
    %18 = vector.shape_cast %17 : vector<8xf32> to vector<8x1xf32>
    %19 = vector.broadcast %18 : vector<8x1xf32> to vector<8x8xf32>
    %20 = arith.subf %16, %19 : vector<8x8xf32>
    %21 = math.exp %20 : vector<8x8xf32>
    %cst_8 = arith.constant dense<0.000000e+00> : vector<8xf32>
    %22 = vector.multi_reduction <add>, %21, %cst_8 [1] : vector<8x8xf32> to vector<8xf32>
    %23 = vector.shape_cast %22 : vector<8xf32> to vector<8x1xf32>
    %24 = tpu.reciprocal %23 {approx = true} : vector<8x1xf32> -> vector<8x1xf32>
    %25 = vector.broadcast %24 : vector<8x1xf32> to vector<8x8xf32>
    %26 = arith.mulf %21, %25 : vector<8x8xf32>
    %27 = arith.truncf %26 : vector<8x8xf32> to vector<8x8xbf16>
    %cst_9 = arith.constant dense<0.000000e+00> : vector<8x8xf32>
    %28 = tpu.matmul %27, %14, %cst_9 {dimension_numbers = #tpu.dot_dimension_numbers<[1], [0], [0], [1], [0, 0, 1, 1], [], []>} : vector<8x8xbf16>, vector<8x8xbf16>, vector<8x8xf32> -> vector<8x8xf32>
    %29 = vector.extract_strided_slice %1 {offsets = [0, 8], sizes = [8, 8], strides = [1, 1]} : vector<8x32xbf16> to vector<8x8xbf16>
    %30 = vector.extract_strided_slice %3 {offsets = [0, 8], sizes = [8, 8], strides = [1, 1]} : vector<8x64xbf16> to vector<8x8xbf16>
    %31 = vector.extract_strided_slice %3 {offsets = [0, 40], sizes = [8, 8], strides = [1, 1]} : vector<8x64xbf16> to vector<8x8xbf16>
    %cst_10 = arith.constant dense<0.000000e+00> : vector<8x8xf32>
    %32 = tpu.matmul %29, %30, %cst_10 {dimension_numbers = #tpu.dot_dimension_numbers<[1], [1], [0], [0], [0, 0, 1, 0], [], []>} : vector<8x8xbf16>, vector<8x8xbf16>, vector<8x8xf32> -> vector<8x8xf32>
    %33 = arith.addf %32, %11 : vector<8x8xf32>
    %cst_11 = arith.constant dense<0xFF800000> : vector<8xf32>
    %34 = vector.multi_reduction <maximumf>, %33, %cst_11 [1] : vector<8x8xf32> to vector<8xf32>
    %35 = vector.shape_cast %34 : vector<8xf32> to vector<8x1xf32>
    %36 = vector.broadcast %35 : vector<8x1xf32> to vector<8x8xf32>
    %37 = arith.subf %33, %36 : vector<8x8xf32>
    %38 = math.exp %37 : vector<8x8xf32>
    %cst_12 = arith.constant dense<0.000000e+00> : vector<8xf32>
    %39 = vector.multi_reduction <add>, %38, %cst_12 [1] : vector<8x8xf32> to vector<8xf32>
    %40 = vector.shape_cast %39 : vector<8xf32> to vector<8x1xf32>
    %41 = tpu.reciprocal %40 {approx = true} : vector<8x1xf32> -> vector<8x1xf32>
    %42 = vector.broadcast %41 : vector<8x1xf32> to vector<8x8xf32>
    %43 = arith.mulf %38, %42 : vector<8x8xf32>
    %44 = arith.truncf %43 : vector<8x8xf32> to vector<8x8xbf16>
    %cst_13 = arith.constant dense<0.000000e+00> : vector<8x8xf32>
    %45 = tpu.matmul %44, %31, %cst_13 {dimension_numbers = #tpu.dot_dimension_numbers<[1], [0], [0], [1], [0, 0, 1, 1], [], []>} : vector<8x8xbf16>, vector<8x8xbf16>, vector<8x8xf32> -> vector<8x8xf32>
    %46 = vector.extract_strided_slice %1 {offsets = [0, 16], sizes = [8, 8], strides = [1, 1]} : vector<8x32xbf16> to vector<8x8xbf16>
    %47 = vector.extract_strided_slice %3 {offsets = [0, 16], sizes = [8, 8], strides = [1, 1]} : vector<8x64xbf16> to vector<8x8xbf16>
    %48 = vector.extract_strided_slice %3 {offsets = [0, 48], sizes = [8, 8], strides = [1, 1]} : vector<8x64xbf16> to vector<8x8xbf16>
    %cst_14 = arith.constant dense<0.000000e+00> : vector<8x8xf32>
    %49 = tpu.matmul %46, %47, %cst_14 {dimension_numbers = #tpu.dot_dimension_numbers<[1], [1], [0], [0], [0, 0, 1, 0], [], []>} : vector<8x8xbf16>, vector<8x8xbf16>, vector<8x8xf32> -> vector<8x8xf32>
    %50 = arith.addf %49, %11 : vector<8x8xf32>
    %cst_15 = arith.constant dense<0xFF800000> : vector<8xf32>
    %51 = vector.multi_reduction <maximumf>, %50, %cst_15 [1] : vector<8x8xf32> to vector<8xf32>
    %52 = vector.shape_cast %51 : vector<8xf32> to vector<8x1xf32>
    %53 = vector.broadcast %52 : vector<8x1xf32> to vector<8x8xf32>
    %54 = arith.subf %50, %53 : vector<8x8xf32>
    %55 = math.exp %54 : vector<8x8xf32>
    %cst_16 = arith.constant dense<0.000000e+00> : vector<8xf32>
    %56 = vector.multi_reduction <add>, %55, %cst_16 [1] : vector<8x8xf32> to vector<8xf32>
    %57 = vector.shape_cast %56 : vector<8xf32> to vector<8x1xf32>
    %58 = tpu.reciprocal %57 {approx = true} : vector<8x1xf32> -> vector<8x1xf32>
    %59 = vector.broadcast %58 : vector<8x1xf32> to vector<8x8xf32>
    %60 = arith.mulf %55, %59 : vector<8x8xf32>
    %61 = arith.truncf %60 : vector<8x8xf32> to vector<8x8xbf16>
    %cst_17 = arith.constant dense<0.000000e+00> : vector<8x8xf32>
    %62 = tpu.matmul %61, %48, %cst_17 {dimension_numbers = #tpu.dot_dimension_numbers<[1], [0], [0], [1], [0, 0, 1, 1], [], []>} : vector<8x8xbf16>, vector<8x8xbf16>, vector<8x8xf32> -> vector<8x8xf32>
    %63 = vector.extract_strided_slice %1 {offsets = [0, 24], sizes = [8, 8], strides = [1, 1]} : vector<8x32xbf16> to vector<8x8xbf16>
    %64 = vector.extract_strided_slice %3 {offsets = [0, 24], sizes = [8, 8], strides = [1, 1]} : vector<8x64xbf16> to vector<8x8xbf16>
    %65 = vector.extract_strided_slice %3 {offsets = [0, 56], sizes = [8, 8], strides = [1, 1]} : vector<8x64xbf16> to vector<8x8xbf16>
    %cst_18 = arith.constant dense<0.000000e+00> : vector<8x8xf32>
    %66 = tpu.matmul %63, %64, %cst_18 {dimension_numbers = #tpu.dot_dimension_numbers<[1], [1], [0], [0], [0, 0, 1, 0], [], []>} : vector<8x8xbf16>, vector<8x8xbf16>, vector<8x8xf32> -> vector<8x8xf32>
    %67 = arith.addf %66, %11 : vector<8x8xf32>
    %cst_19 = arith.constant dense<0xFF800000> : vector<8xf32>
    %68 = vector.multi_reduction <maximumf>, %67, %cst_19 [1] : vector<8x8xf32> to vector<8xf32>
    %69 = vector.shape_cast %68 : vector<8xf32> to vector<8x1xf32>
    %70 = vector.broadcast %69 : vector<8x1xf32> to vector<8x8xf32>
    %71 = arith.subf %67, %70 : vector<8x8xf32>
    %72 = math.exp %71 : vector<8x8xf32>
    %cst_20 = arith.constant dense<0.000000e+00> : vector<8xf32>
    %73 = vector.multi_reduction <add>, %72, %cst_20 [1] : vector<8x8xf32> to vector<8xf32>
    %74 = vector.shape_cast %73 : vector<8xf32> to vector<8x1xf32>
    %75 = tpu.reciprocal %74 {approx = true} : vector<8x1xf32> -> vector<8x1xf32>
    %76 = vector.broadcast %75 : vector<8x1xf32> to vector<8x8xf32>
    %77 = arith.mulf %72, %76 : vector<8x8xf32>
    %78 = arith.truncf %77 : vector<8x8xf32> to vector<8x8xbf16>
    %cst_21 = arith.constant dense<0.000000e+00> : vector<8x8xf32>
    %79 = tpu.matmul %78, %65, %cst_21 {dimension_numbers = #tpu.dot_dimension_numbers<[1], [0], [0], [1], [0, 0, 1, 1], [], []>} : vector<8x8xbf16>, vector<8x8xbf16>, vector<8x8xf32> -> vector<8x8xf32>
    %80 = tpu.concatenate %28, %45, %62, %79 in 1 : vector<8x8xf32>, vector<8x8xf32>, vector<8x8xf32>, vector<8x8xf32> -> vector<8x32xf32>
    %81 = arith.truncf %80 : vector<8x32xf32> to vector<8x32xbf16>
    %c0_22 = arith.constant 0 : index
    %c0_23 = arith.constant 0 : index
    %82 = vector.load %arg4[%c0_22, %c0_23] : memref<32x32xbf16, #tpu.memory_space<vmem>>, vector<32x32xbf16>
    %cst_24 = arith.constant dense<0.000000e+00> : vector<8x32xf32>
    %83 = tpu.matmul %81, %82, %cst_24 {dimension_numbers = #tpu.dot_dimension_numbers<[1], [0], [0], [1], [0, 0, 1, 1], [], []>} : vector<8x32xbf16>, vector<32x32xbf16>, vector<8x32xf32> -> vector<8x32xf32>
    %c0_25 = arith.constant 0 : index
    %c0_26 = arith.constant 0 : index
    %c0_27 = arith.constant 0 : index
    %84 = vector.load %arg6[%c0_25, %c0_26, %c0_27] : memref<1x8x32xbf16, #tpu.memory_space<vmem>>, vector<1x8x32xbf16>
    %85 = vector.shape_cast %84 : vector<1x8x32xbf16> to vector<8x32xbf16>
    %86 = arith.extf %85 : vector<8x32xbf16> to vector<8x32xf32>
    %87 = arith.addf %86, %83 : vector<8x32xf32>
    %c0_28 = arith.constant 0 : index
    %c0_29 = arith.constant 0 : index
    %88 = vector.load %arg5[%c0_28, %c0_29] : memref<1x32xf32, #tpu.memory_space<vmem>>, vector<1x32xf32>
    %89 = vector.broadcast %88 : vector<1x32xf32> to vector<8x32xf32>
    %90 = arith.addf %87, %89 : vector<8x32xf32>
    %cst_30 = arith.constant dense<0.000000e+00> : vector<8xf32>
    %91 = vector.multi_reduction <add>, %90, %cst_30 [1] : vector<8x32xf32> to vector<8xf32>
    %92 = vector.shape_cast %91 : vector<8xf32> to vector<8x1xf32>
    %cst_31 = arith.constant 3.200000e+01 : f32
    %93 = vector.broadcast %cst_31 : f32 to vector<8x1xf32>
    %94 = arith.divf %92, %93 : vector<8x1xf32>
    %95 = vector.broadcast %94 : vector<8x1xf32> to vector<8x32xf32>
    %96 = arith.subf %90, %95 : vector<8x32xf32>
    %97 = arith.mulf %96, %96 : vector<8x32xf32>
    %cst_32 = arith.constant dense<0.000000e+00> : vector<8xf32>
    %98 = vector.multi_reduction <add>, %97, %cst_32 [1] : vector<8x32xf32> to vector<8xf32>
    %99 = vector.shape_cast %98 : vector<8xf32> to vector<8x1xf32>
    %cst_33 = arith.constant 3.200000e+01 : f32
    %100 = vector.broadcast %cst_33 : f32 to vector<8x1xf32>
    %101 = arith.divf %99, %100 : vector<8x1xf32>
    %102 = vector.broadcast %94 : vector<8x1xf32> to vector<8x32xf32>
    %103 = arith.subf %90, %102 : vector<8x32xf32>
    %cst_34 = arith.constant 9.99999974E-6 : f32
    %104 = vector.broadcast %cst_34 : f32 to vector<8x1xf32>
    %105 = arith.addf %101, %104 : vector<8x1xf32>
    %106 = math.rsqrt %105 : vector<8x1xf32>
    %107 = vector.broadcast %106 : vector<8x1xf32> to vector<8x32xf32>
    %108 = arith.mulf %103, %107 : vector<8x32xf32>
    %c0_35 = arith.constant 0 : index
    %c0_36 = arith.constant 0 : index
    %109 = vector.load %arg7[%c0_35, %c0_36] : memref<1x32xf32, #tpu.memory_space<vmem>>, vector<1x32xf32>
    %110 = vector.broadcast %109 : vector<1x32xf32> to vector<8x32xf32>
    %111 = arith.mulf %108, %110 : vector<8x32xf32>
    %c0_37 = arith.constant 0 : index
    %c0_38 = arith.constant 0 : index
    %112 = vector.load %arg8[%c0_37, %c0_38] : memref<1x32xf32, #tpu.memory_space<vmem>>, vector<1x32xf32>
    %113 = vector.broadcast %112 : vector<1x32xf32> to vector<8x32xf32>
    %114 = arith.addf %111, %113 : vector<8x32xf32>
    %115 = arith.truncf %114 : vector<8x32xf32> to vector<8x32xbf16>
    %c0_39 = arith.constant 0 : index
    %c0_40 = arith.constant 0 : index
    %c0_41 = arith.constant 0 : index
    %116 = vector.load %arg9[%c0_39, %c0_40, %c0_41] : memref<1x8x32xbf16, #tpu.memory_space<vmem>>, vector<1x8x32xbf16>
    %117 = vector.shape_cast %116 : vector<1x8x32xbf16> to vector<8x32xbf16>
    %118 = vector.shape_cast %115 : vector<8x32xbf16> to vector<1x8x32xbf16>
    tpu.vector_store %arg9[%c0_39, %c0_40, %c0_41], %118 {strides = array<i32>} : memref<1x8x32xbf16, #tpu.memory_space<vmem>>, vector<1x8x32xbf16>,
    return
  }
  func.func @transform_0(%arg0: i32, %arg1: memref<2xi32, #tpu.memory_space<smem>>) -> (i32, i32, i32) {
    %c0_i32 = arith.constant 0 : i32
    %c0_i32_0 = arith.constant 0 : i32
    %c0_i32_1 = arith.constant 0 : i32
    return %arg0, %c0_i32, %c0_i32_0 : i32, i32, i32
  }
  func.func @transform_1(%arg0: i32, %arg1: memref<2xi32, #tpu.memory_space<smem>>) -> (i32, i32, i32) {
    %c0_i32 = arith.constant 0 : i32
    %c0_i32_0 = arith.constant 0 : i32
    %c0_i32_1 = arith.constant 0 : i32
    return %arg0, %c0_i32, %c0_i32_0 : i32, i32, i32
  }
  func.func @transform_2(%arg0: i32, %arg1: memref<2xi32, #tpu.memory_space<smem>>) -> (i32, i32) {
    %c0_i32 = arith.constant 0 : i32
    %c0_i32_0 = arith.constant 0 : i32
    %c0_i32_1 = arith.constant 0 : i32
    return %c0_i32, %c0_i32_0 : i32, i32
  }
  func.func @transform_3(%arg0: i32, %arg1: memref<2xi32, #tpu.memory_space<smem>>) -> (i32, i32) {
    %c0_i32 = arith.constant 0 : i32
    %c0_i32_0 = arith.constant 0 : i32
    %c0_i32_1 = arith.constant 0 : i32
    return %c0_i32, %c0_i32_0 : i32, i32
  }
  func.func @transform_4(%arg0: i32, %arg1: memref<2xi32, #tpu.memory_space<smem>>) -> (i32, i32, i32) {
    %c0_i32 = arith.constant 0 : i32
    %c0_i32_0 = arith.constant 0 : i32
    %c0_i32_1 = arith.constant 0 : i32
    return %arg0, %c0_i32, %c0_i32_0 : i32, i32, i32
  }
  func.func @transform_5(%arg0: i32, %arg1: memref<2xi32, #tpu.memory_space<smem>>) -> (i32, i32) {
    %c0_i32 = arith.constant 0 : i32
    %c0_i32_0 = arith.constant 0 : i32
    %c0_i32_1 = arith.constant 0 : i32
    return %c0_i32, %c0_i32_0 : i32, i32
  }
  func.func @transform_6(%arg0: i32, %arg1: memref<2xi32, #tpu.memory_space<smem>>) -> (i32, i32) {
    %c0_i32 = arith.constant 0 : i32
    %c0_i32_0 = arith.constant 0 : i32
    %c0_i32_1 = arith.constant 0 : i32
    return %c0_i32, %c0_i32_0 : i32, i32
  }
  func.func @transform_7(%arg0: i32, %arg1: memref<2xi32, #tpu.memory_space<smem>>) -> (i32, i32, i32) {
    %c0_i32 = arith.constant 0 : i32
    %c0_i32_0 = arith.constant 0 : i32
    %c0_i32_1 = arith.constant 0 : i32
    return %arg0, %c0_i32, %c0_i32_0 : i32, i32, i32
  }
}

module attributes {stable_mosaic.version = 11 : i64} {
  func.func @_ffn_add_ln_kernel(%arg0: i32, %arg1: i32, %arg2: memref<16x32xbf16, #tpu.memory_space<vmem>>, %arg3: memref<32x128xbf16, #tpu.memory_space<vmem>>, %arg4: memref<1x128xf32, #tpu.memory_space<vmem>>, %arg5: memref<128x32xbf16, #tpu.memory_space<vmem>>, %arg6: memref<1x32xf32, #tpu.memory_space<vmem>>, %arg7: memref<1x32xf32, #tpu.memory_space<vmem>>, %arg8: memref<1x32xf32, #tpu.memory_space<vmem>>, %arg9: memref<16x32xbf16, #tpu.memory_space<vmem>>, %arg10: memref<16x32xf32, #tpu.memory_space<vmem>>) attributes {dimension_semantics = [#tpu.dimension_semantics<parallel>, #tpu.dimension_semantics<arbitrary>], iteration_bounds = array<i64: 1, 1>, scalar_prefetch = 0 : i64, scratch_operands = 1 : i64, tpu.core_type = #tpu.core_type<tc>, window_params = [{transform_indices = @transform_0, window_bounds = array<i64: 16, 32>}, {transform_indices = @transform_1, window_bounds = array<i64: 32, 128>}, {transform_indices = @transform_2, window_bounds = array<i64: 1, 128>}, {transform_indices = @transform_3, window_bounds = array<i64: 128, 32>}, {pipeline_mode = #tpu.pipeline_mode<synchronous>, transform_indices = @transform_4, window_bounds = array<i64: 1, 32>}, {pipeline_mode = #tpu.pipeline_mode<synchronous>, transform_indices = @transform_5, window_bounds = array<i64: 1, 32>}, {pipeline_mode = #tpu.pipeline_mode<synchronous>, transform_indices = @transform_6, window_bounds = array<i64: 1, 32>}, {transform_indices = @transform_7, window_bounds = array<i64: 16, 32>}]} {
    %c0_i32 = arith.constant 0 : i32
    %0 = arith.cmpi eq, %arg1, %c0_i32 : i32
    %1 = arith.extui %0 : i1 to i32
    %c0_i32_0 = arith.constant 0 : i32
    %2 = arith.cmpi ne, %1, %c0_i32_0 : i32
    scf.if %2 {
      %cst_16 = arith.constant 0.000000e+00 : f32
      %20 = vector.broadcast %cst_16 : f32 to vector<16x32xf32>
      %c0_17 = arith.constant 0 : index
      %c0_18 = arith.constant 0 : index
      %21 = vector.load %arg10[%c0_17, %c0_18] : memref<16x32xf32, #tpu.memory_space<vmem>>, vector<16x32xf32>
      tpu.vector_store %arg10[%c0_17, %c0_18], %20 {strides = array<i32>} : memref<16x32xf32, #tpu.memory_space<vmem>>, vector<16x32xf32>,
    } else {
    }
    %c0 = arith.constant 0 : index
    %c0_1 = arith.constant 0 : index
    %3 = vector.load %arg2[%c0, %c0_1] : memref<16x32xbf16, #tpu.memory_space<vmem>>, vector<16x32xbf16>
    %c0_2 = arith.constant 0 : index
    %c0_3 = arith.constant 0 : index
    %4 = vector.load %arg3[%c0_2, %c0_3] : memref<32x128xbf16, #tpu.memory_space<vmem>>, vector<32x128xbf16>
    %cst = arith.constant dense<0.000000e+00> : vector<16x128xf32>
    %5 = tpu.matmul %3, %4, %cst {dimension_numbers = #tpu.dot_dimension_numbers<[1], [0], [0], [1], [0, 0, 1, 1], [], []>} : vector<16x32xbf16>, vector<32x128xbf16>, vector<16x128xf32> -> vector<16x128xf32>
    %c0_4 = arith.constant 0 : index
    %c0_5 = arith.constant 0 : index
    %6 = vector.load %arg4[%c0_4, %c0_5] : memref<1x128xf32, #tpu.memory_space<vmem>>, vector<1x128xf32>
    %7 = vector.broadcast %6 : vector<1x128xf32> to vector<16x128xf32>
    %8 = arith.addf %5, %7 : vector<16x128xf32>
    %cst_6 = arith.constant 0.000000e+00 : f32
    %9 = vector.broadcast %cst_6 : f32 to vector<16x128xf32>
    %10 = arith.maximumf %8, %9 : vector<16x128xf32>
    %c0_7 = arith.constant 0 : index
    %c0_8 = arith.constant 0 : index
    %11 = vector.load %arg10[%c0_7, %c0_8] : memref<16x32xf32, #tpu.memory_space<vmem>>, vector<16x32xf32>
    %12 = arith.truncf %10 : vector<16x128xf32> to vector<16x128xbf16>
    %c0_9 = arith.constant 0 : index
    %c0_10 = arith.constant 0 : index
    %13 = vector.load %arg5[%c0_9, %c0_10] : memref<128x32xbf16, #tpu.memory_space<vmem>>, vector<128x32xbf16>
    %cst_11 = arith.constant dense<0.000000e+00> : vector<16x32xf32>
    %14 = tpu.matmul %12, %13, %cst_11 {dimension_numbers = #tpu.dot_dimension_numbers<[1], [0], [0], [1], [0, 0, 1, 1], [], []>} : vector<16x128xbf16>, vector<128x32xbf16>, vector<16x32xf32> -> vector<16x32xf32>
    %15 = arith.addf %11, %14 : vector<16x32xf32>
    %c0_12 = arith.constant 0 : index
    %c0_13 = arith.constant 0 : index
    %16 = vector.load %arg10[%c0_12, %c0_13] : memref<16x32xf32, #tpu.memory_space<vmem>>, vector<16x32xf32>
    tpu.vector_store %arg10[%c0_12, %c0_13], %15 {strides = array<i32>} : memref<16x32xf32, #tpu.memory_space<vmem>>, vector<16x32xf32>,
    %c0_i32_14 = arith.constant 0 : i32
    %17 = arith.cmpi eq, %arg1, %c0_i32_14 : i32
    %18 = arith.extui %17 : i1 to i32
    %c0_i32_15 = arith.constant 0 : i32
    %19 = arith.cmpi ne, %18, %c0_i32_15 : i32
    scf.if %19 {
      %c0_16 = arith.constant 0 : index
      %c0_17 = arith.constant 0 : index
      %20 = vector.load %arg2[%c0_16, %c0_17] : memref<16x32xbf16, #tpu.memory_space<vmem>>, vector<16x32xbf16>
      %21 = arith.extf %20 : vector<16x32xbf16> to vector<16x32xf32>
      %c0_18 = arith.constant 0 : index
      %c0_19 = arith.constant 0 : index
      %22 = vector.load %arg10[%c0_18, %c0_19] : memref<16x32xf32, #tpu.memory_space<vmem>>, vector<16x32xf32>
      %23 = arith.addf %21, %22 : vector<16x32xf32>
      %c0_20 = arith.constant 0 : index
      %c0_21 = arith.constant 0 : index
      %24 = vector.load %arg6[%c0_20, %c0_21] : memref<1x32xf32, #tpu.memory_space<vmem>>, vector<1x32xf32>
      %25 = vector.broadcast %24 : vector<1x32xf32> to vector<16x32xf32>
      %26 = arith.addf %23, %25 : vector<16x32xf32>
      %cst_22 = arith.constant dense<0.000000e+00> : vector<16xf32>
      %27 = vector.multi_reduction <add>, %26, %cst_22 [1] : vector<16x32xf32> to vector<16xf32>
      %28 = vector.shape_cast %27 : vector<16xf32> to vector<16x1xf32>
      %cst_23 = arith.constant 3.200000e+01 : f32
      %29 = vector.broadcast %cst_23 : f32 to vector<16x1xf32>
      %30 = arith.divf %28, %29 : vector<16x1xf32>
      %31 = vector.broadcast %30 : vector<16x1xf32> to vector<16x32xf32>
      %32 = arith.subf %26, %31 : vector<16x32xf32>
      %33 = arith.mulf %32, %32 : vector<16x32xf32>
      %cst_24 = arith.constant dense<0.000000e+00> : vector<16xf32>
      %34 = vector.multi_reduction <add>, %33, %cst_24 [1] : vector<16x32xf32> to vector<16xf32>
      %35 = vector.shape_cast %34 : vector<16xf32> to vector<16x1xf32>
      %cst_25 = arith.constant 3.200000e+01 : f32
      %36 = vector.broadcast %cst_25 : f32 to vector<16x1xf32>
      %37 = arith.divf %35, %36 : vector<16x1xf32>
      %38 = vector.broadcast %30 : vector<16x1xf32> to vector<16x32xf32>
      %39 = arith.subf %26, %38 : vector<16x32xf32>
      %cst_26 = arith.constant 9.99999974E-6 : f32
      %40 = vector.broadcast %cst_26 : f32 to vector<16x1xf32>
      %41 = arith.addf %37, %40 : vector<16x1xf32>
      %42 = math.rsqrt %41 : vector<16x1xf32>
      %43 = vector.broadcast %42 : vector<16x1xf32> to vector<16x32xf32>
      %44 = arith.mulf %39, %43 : vector<16x32xf32>
      %c0_27 = arith.constant 0 : index
      %c0_28 = arith.constant 0 : index
      %45 = vector.load %arg7[%c0_27, %c0_28] : memref<1x32xf32, #tpu.memory_space<vmem>>, vector<1x32xf32>
      %46 = vector.broadcast %45 : vector<1x32xf32> to vector<16x32xf32>
      %47 = arith.mulf %44, %46 : vector<16x32xf32>
      %c0_29 = arith.constant 0 : index
      %c0_30 = arith.constant 0 : index
      %48 = vector.load %arg8[%c0_29, %c0_30] : memref<1x32xf32, #tpu.memory_space<vmem>>, vector<1x32xf32>
      %49 = vector.broadcast %48 : vector<1x32xf32> to vector<16x32xf32>
      %50 = arith.addf %47, %49 : vector<16x32xf32>
      %51 = arith.truncf %50 : vector<16x32xf32> to vector<16x32xbf16>
      %c0_31 = arith.constant 0 : index
      %c0_32 = arith.constant 0 : index
      %52 = vector.load %arg9[%c0_31, %c0_32] : memref<16x32xbf16, #tpu.memory_space<vmem>>, vector<16x32xbf16>
      tpu.vector_store %arg9[%c0_31, %c0_32], %51 {strides = array<i32>} : memref<16x32xbf16, #tpu.memory_space<vmem>>, vector<16x32xbf16>,
    } else {
    }
    return
  }
  func.func @transform_0(%arg0: i32, %arg1: i32) -> (i32, i32) {
    %c0_i32 = arith.constant 0 : i32
    %c0_i32_0 = arith.constant 0 : i32
    return %arg0, %c0_i32 : i32, i32
  }
  func.func @transform_1(%arg0: i32, %arg1: i32) -> (i32, i32) {
    %c0_i32 = arith.constant 0 : i32
    %c0_i32_0 = arith.constant 0 : i32
    return %c0_i32, %arg1 : i32, i32
  }
  func.func @transform_2(%arg0: i32, %arg1: i32) -> (i32, i32) {
    %c0_i32 = arith.constant 0 : i32
    %c0_i32_0 = arith.constant 0 : i32
    return %c0_i32, %arg1 : i32, i32
  }
  func.func @transform_3(%arg0: i32, %arg1: i32) -> (i32, i32) {
    %c0_i32 = arith.constant 0 : i32
    %c0_i32_0 = arith.constant 0 : i32
    return %arg1, %c0_i32 : i32, i32
  }
  func.func @transform_4(%arg0: i32, %arg1: i32) -> (i32, i32) {
    %c0_i32 = arith.constant 0 : i32
    %c0_i32_0 = arith.constant 0 : i32
    %c0_i32_1 = arith.constant 0 : i32
    return %c0_i32, %c0_i32_0 : i32, i32
  }
  func.func @transform_5(%arg0: i32, %arg1: i32) -> (i32, i32) {
    %c0_i32 = arith.constant 0 : i32
    %c0_i32_0 = arith.constant 0 : i32
    %c0_i32_1 = arith.constant 0 : i32
    return %c0_i32, %c0_i32_0 : i32, i32
  }
  func.func @transform_6(%arg0: i32, %arg1: i32) -> (i32, i32) {
    %c0_i32 = arith.constant 0 : i32
    %c0_i32_0 = arith.constant 0 : i32
    %c0_i32_1 = arith.constant 0 : i32
    return %c0_i32, %c0_i32_0 : i32, i32
  }
  func.func @transform_7(%arg0: i32, %arg1: i32) -> (i32, i32) {
    %c0_i32 = arith.constant 0 : i32
    %c0_i32_0 = arith.constant 0 : i32
    return %arg0, %c0_i32 : i32, i32
  }
}

</mosaic_0001>

<bundles_post_ra>
// kernel: transformer_forward.18
= control target key start
LH: loop header
LB: loop body
LE: loop exit
PB: predicated region body
PF: predicated region fallthrough
CT: control target
= control target key end

     0   :  { %vm19_vm0 = vcmask 785408   ;;  %v151_v0 = vmov 0.0   ;;  %vm152_vm1 = vmmov 0   ;;  %vm47_vm2 = vcmask 261120   ;;  %s195_s1 = inlined_call_operand.vmem [shape: bf16[32,96], index: 1, kind: input, shape index: {}]   ;;  %s196_s0 = inlined_call_operand.vmem [shape: bf16[16,32], index: 0, kind: input, shape index: {}]   ;;  %s197_s2 = inlined_call_operand.vmem [shape: f32[1,96], index: 2, kind: input, shape index: {}]   ;;  %s198_s3 = inlined_call_operand.vmem [shape: bf16[16,96], index: 3, kind: output, shape index: {}]  }
   0x1   :  { %138 = vmatprep.subr.bf16.mxu0 %v151_v0  ;;  %v148_v1 = vld [vmem:[%s195_s1] sm:$0xff]   ;;  %142 = vmatprep.mubr.msk.bf16.mxu0 %vm152_vm1, %v151_v0  ;;  %20 = vst.msk [vmem:[#allocation2] sm:$0xff] %vm19_vm0, %v151_v0  ;;  %21 = vst.msk [vmem:[#allocation2 + $0x8] sm:$0xff] %vm19_vm0, %v151_v0  ;;  %v149_v2 = vld [vmem:[%s195_s1 + $0x8] sm:$0xff]   ;;  %vm119_vm3 = vcmask 781312  }
   0x2   :  { %139 = vmatpush3.bf16.msra.mxu0 %v148_v1  ;;  %v150_v3 = vld [vmem:[%s196_s0] sm:$0xff]  }
   0x3   :  { %140 = vmatprep.subr.bf16.mxu0 %v151_v0  ;;  %v130_v12 = vld [vmem:[%s197_s2] ss:$0 sm:$0xff] }
   0x6   :  { %141 = vmatpush3.bf16.msra.mxu0 %v149_v2 }
   0x8   :  { %v22_v4 = vld [vmem:[#allocation2] sm:$0xff]  ;;  %v23_v6 = vld [vmem:[#allocation2 + $0x8] sm:$0xff] }
   0x9   :  { %143 = vmatmul.mubr.msk.bf16.vlgmr.msra.gmra.mrb[0].mxu0 %vm47_vm2, %v150_v3 }
  0xdc   :  { %v85_v5 = vpop.f32.mrb[0].mxu0 }
  0xdd   :  { %v92_v7 = vadd.f32 %v85_v5, %v22_v4  ;;  %v144_v8 = vpop.f32.mrb[1].mxu0 }
  0xde   :  { %v88_v9 = vpop.f32.mrb[2].mxu0 }
  0xdf   :  { %95 = vst.msk [vmem:[#allocation2] sm:$0xff] %vm19_vm0, %v92_v7  ;;  %v93_v10 = vadd.f32 %v88_v9, %v23_v6  ;;  %v145_v11 = vpop.f32.mrb[3].mxu0 }
  0xe1   :  { %96 = vst.msk [vmem:[#allocation2 + $0x8] sm:$0xff] %vm19_vm0, %v93_v10 }
  0xe6   :  { %v100_v13 = vld [vmem:[#allocation2] sm:$0xff] }
  0xe7   :  { %v109_v14 = vadd.f32 %v130_v12, %v100_v13 }
  0xe8   :  { %v101_v15 = vld [vmem:[#allocation2 + $0x8] sm:$0xff] }
  0xe9   :  { %v133_v16 = vpack.c.bf16 %v109_v14, %v109_v14  ;;  %v110_v17 = vadd.f32 %v130_v12, %v101_v15 }
  0xeb   :  { %120 = vst.msk [vmem:[%s198_s3] sm:$0xf] %vm119_vm3, %v133_v16  ;;  %v134_v18 = vpack.c.bf16 %v110_v17, %v110_v17 }
  0xed   :  { %121 = vst.msk [vmem:[%s198_s3 + $0x4] sm:$0xf] %vm119_vm3, %v134_v18 }

// kernel: transformer_forward.20
= control target key start
LH: loop header
LB: loop body
LE: loop exit
PB: predicated region body
PF: predicated region fallthrough
CT: control target
= control target key end

     0   :  { %vm31_vm0 = vcmask 261120   ;;  %v384_v0 = vmov 0.0   ;;  %vm385_vm1 = vmmov 0   ;;  %vm296_vm2 = vcmask 257024   ;;  %s489_s1 = inlined_call_operand.vmem [shape: bf16[32,128], index: 1, kind: input, shape index: {}]   ;;  %s490_s3 = inlined_call_operand.vmem [shape: bf16[128,32], index: 3, kind: input, shape index: {}]   ;;  %s491_s0 = inlined_call_operand.vmem [shape: bf16[16,32], index: 0, kind: input, shape index: {}]   ;;  %s492_s2 = inlined_call_operand.vmem [shape: f32[1,128], index: 2, kind: input, shape index: {}]   ;;  %s493_s4 = inlined_call_operand.vmem [shape: f32[1,32], index: 4, kind: input, shape index: {}]   ;;  %s494_s5 = inlined_call_operand.vmem [shape: f32[1,32], index: 5, kind: input, shape index: {}]   ;;  %s495_s6 = inlined_call_operand.vmem [shape: f32[1,32], index: 6, kind: input, shape index: {}]   ;;  %s496_s7 = inlined_call_operand.vmem [shape: bf16[16,32], index: 7, kind: output, shape index: {}]  }
   0x1   :  { %339 = vmatprep.subr.bf16.mxu0 %v384_v0  ;;  %v369_v1 = vld [vmem:[%s489_s1] sm:$0xff]   ;;  %343 = vmatprep.mubr.msk.bf16.mxu0 %vm385_vm1, %v384_v0  ;;  %32 = vst.msk [vmem:[#allocation2] sm:$0xff] %vm31_vm0, %v384_v0  ;;  %33 = vst.msk [vmem:[#allocation2 + $0x8] sm:$0xff] %vm31_vm0, %v384_v0  ;;  %v370_v2 = vld [vmem:[%s489_s1 + $0x8] sm:$0xff]  }
   0x2   :  { %347 = vmatprep.subr.bf16.mxu1 %v384_v0  ;;  %363 = vmatprep.mubr.msk.bf16.mxu1 %vm385_vm1, %v384_v0  ;;  %v372_v3 = vld [vmem:[%s490_s3] sm:$0xff]   ;;  %v373_v5 = vld [vmem:[%s490_s3 + $0x8] sm:$0xff]   ;;  %v374_v6 = vld [vmem:[%s490_s3 + $0x10] sm:$0xff]  }
   0x3   :  { %340 = vmatpush3.bf16.msra.mxu0 %v369_v1  ;;  %v371_v4 = vld [vmem:[%s491_s0] sm:$0xff]   ;;  %348 = vmatpush3.bf16.msra.mxu1 %v372_v3  ;;  %v375_v7 = vld [vmem:[%s490_s3 + $0x18] sm:$0xff]   ;;  %v377_v9 = vld [vmem:[%s490_s3 + $0x28] sm:$0xff]  }
   0x4   :  { %341 = vmatprep.subr.bf16.mxu0 %v384_v0  ;;  %349 = vmatprep.subr.bf16.mxu1 %v384_v0  ;;  %v376_v8 = vld [vmem:[%s490_s3 + $0x20] sm:$0xff]   ;;  %v378_v10 = vld [vmem:[%s490_s3 + $0x30] sm:$0xff]   ;;  %v379_v11 = vld [vmem:[%s490_s3 + $0x38] sm:$0xff]  }
   0x5   :  { %v303_v12 = vld [vmem:[%s492_s2] ss:$0 sm:$0xff] }
   0x6   :  { %v324_v30 = vld [vmem:[%s491_s0] sm:$0xff]  }
   0x7   :  { %342 = vmatpush3.bf16.msra.mxu0 %v370_v2  ;;  %350 = vmatpush3.bf16.msra.mxu1 %v373_v5  ;;  %v325_v31 = vunpack.c.l.bf16 %v324_v30  ;;  %v326_v32 = vunpack.c.h.bf16 %v324_v30  ;;  %v316_v34 = vld [vmem:[%s493_s4] ss:$0 sm:$0xff] }
   0x8   :  { %351 = vmatprep.subr.bf16.mxu1 %v384_v0  ;;  %v111_v22 = vld [vmem:[#allocation2] sm:$0xff]  ;;  %v112_v24 = vld [vmem:[#allocation2 + $0x8] sm:$0xff] }
   0x9   :  { %v317_v59 = vld [vmem:[%s494_s5] ss:$0 sm:$0xff] }
   0xa   :  { %344 = vmatmul.mubr.msk.bf16.vlgmr.msra.gmra.mrb[0].mxu0 %vm31_vm0, %v371_v4  ;;  %v318_v61 = vld [vmem:[%s495_s6] ss:$0 sm:$0xff] }
   0xb   :  { %352 = vmatpush3.bf16.msra.mxu1 %v374_v6 }
   0xc   :  { %353 = vmatprep.subr.bf16.mxu1 %v384_v0 }
   0xf   :  { %354 = vmatpush3.bf16.msra.mxu1 %v375_v7 }
  0x10   :  { %355 = vmatprep.subr.bf16.mxu1 %v384_v0 }
  0x13   :  { %356 = vmatpush3.bf16.msra.mxu1 %v376_v8 }
  0x14   :  { %357 = vmatprep.subr.bf16.mxu1 %v384_v0 }
  0x17   :  { %358 = vmatpush3.bf16.msra.mxu1 %v377_v9 }
  0x18   :  { %359 = vmatprep.subr.bf16.mxu1 %v384_v0 }
  0x1b   :  { %360 = vmatpush3.bf16.msra.mxu1 %v378_v10 }
  0x1c   :  { %361 = vmatprep.subr.bf16.mxu1 %v384_v0 }
  0x1f   :  { %362 = vmatpush3.bf16.msra.mxu1 %v379_v11 }
  0xdd   :  { %v102_v13 = vpop.f32.mrb[0].mxu0 }
  0xde   :  { %v103_v14 = vadd.f32 %v303_v12, %v102_v13  ;;  %v345_v15 = vpop.f32.mrb[1].mxu0 }
  0xdf   :  { %v105_v16 = vpop.f32.mrb[2].mxu0 }
  0xe0   :  { %v106_v17 = vadd.f32 %v303_v12, %v105_v16  ;;  %v346_v18 = vpop.f32.mrb[3].mxu0  ;;  %v109_v19 = vmax.f32 %v103_v14, 0.0 }
  0xe2   :  { %v110_v20 = vmax.f32 %v106_v17, 0.0 }
  0xe4   :  { %v113_v21 = vpack.c.bf16 %v110_v20, %v109_v19 }
  0xe6   :  { %364 = vmatmul.mubr.bf16.vlgmr.msra.gmra.mrb[0].mxu1 %v113_v21 }
 0x1b9   :  { %v212_v23 = vpop.f32.mrb[0].mxu1 }
 0x1ba   :  { %v219_v25 = vadd.f32 %v212_v23, %v111_v22  ;;  %v365_v26 = vpop.f32.mrb[1].mxu1 }
 0x1bb   :  { %v215_v27 = vpop.f32.mrb[2].mxu1 }
 0x1bc   :  { %221 = vst.msk [vmem:[#allocation2] sm:$0xff] %vm31_vm0, %v219_v25  ;;  %v220_v28 = vadd.f32 %v215_v27, %v112_v24  ;;  %v366_v29 = vpop.f32.mrb[3].mxu1 }
 0x1be   :  { %222 = vst.msk [vmem:[#allocation2 + $0x8] sm:$0xff] %vm31_vm0, %v220_v28 }
 0x1c3   :  { %v230_v33 = vld [vmem:[#allocation2] sm:$0xff] }
 0x1c4   :  { %v232_v35 = vadd.f32 %v325_v31, %v230_v33 }
 0x1c5   :  { %v231_v36 = vld [vmem:[#allocation2 + $0x8] sm:$0xff] }
 0x1c6   :  { %v241_v37 = vadd.f32 %v316_v34, %v232_v35  ;;  %v233_v38 = vadd.f32 %v326_v32, %v231_v36 }
 0x1c8   :  { %v243_v39 = vsel %vm31_vm0, %v241_v37, 0.0  ;;  %v242_v40 = vadd.f32 %v316_v34, %v233_v38 }
 0x1c9   :  { %244 = vadd.xlane.f32.xlu0 %v243_v39 }
 0x1ca   :  { %v246_v41 = vsel %vm31_vm0, %v242_v40, 0.0 }
 0x1cd   :  { %247 = vadd.xlane.f32.xlu0 %v246_v41 }
 0x256   :  { %v245_v42 = vpop.xlane.xlu0 %244 }
 0x257   :  { %v250_v43 = vmul.f32 0.03125, %v245_v42 }
 0x259   :  { %v252_v44 = vsub.f32 %v241_v37, %v250_v43 }
 0x25a   :  { %v248_v45 = vpop.xlane.xlu0 %247 }
 0x25b   :  { %v251_v46 = vmul.f32 0.03125, %v248_v45  ;;  %v254_v47 = vmul.f32 %v252_v44, %v252_v44 }
 0x25d   :  { %v253_v48 = vsub.f32 %v242_v40, %v251_v46  ;;  %v256_v49 = vsel %vm31_vm0, %v254_v47, 0.0 }
 0x25e   :  { %257 = vadd.xlane.f32.xlu1 %v256_v49 }
 0x25f   :  { %v255_v50 = vmul.f32 %v253_v48, %v253_v48 }
 0x261   :  { %v259_v51 = vsel %vm31_vm0, %v255_v50, 0.0 }
 0x262   :  { %260 = vadd.xlane.f32.xlu1 %v259_v51 }
 0x2eb   :  { %v258_v52 = vpop.xlane.xlu1 %257 }
 0x2ec   :  { %v262_v53 = vmul.f32 0.03125, %v258_v52 }
 0x2ee   :  { %v264_v54 = vadd.f32 1e-05, %v262_v53 }
 0x2ef   :  { %v261_v55 = vpop.xlane.xlu1 %260 }
 0x2f0   :  { %380 = vrsqrt.f32 %v264_v54  ;;  %v263_v56 = vmul.f32 0.03125, %v261_v55 }
 0x2f2   :  { %v265_v57 = vadd.f32 1e-05, %v263_v56 }
 0x2f4   :  { %382 = vrsqrt.f32 %v265_v57 }
 0x2fa   :  { %v381_v58 = vpop.eup %380 }
 0x2fb   :  { %v268_v60 = vmul.f32 %v381_v58, %v252_v44 }
 0x2fd   :  { %v277_v62 = vmul.f32 %v317_v59, %v268_v60 }
 0x2fe   :  { %v383_v63 = vpop.eup %382 }
 0x2ff   :  { %v286_v0 = vadd.f32 %v318_v61, %v277_v62  ;;  %v269_v1 = vmul.f32 %v383_v63, %v253_v48 }
 0x301   :  { %v321_v2 = vpack.c.bf16 %v286_v0, %v286_v0  ;;  %v278_v3 = vmul.f32 %v317_v59, %v269_v1 }
 0x303   :  { %297 = vst.msk [vmem:[%s496_s7] sm:$0xf] %vm296_vm2, %v321_v2  ;;  %v287_v4 = vadd.f32 %v318_v61, %v278_v3 }
 0x305   :  { %v322_v5 = vpack.c.bf16 %v287_v4, %v287_v4 }
 0x307   :  { %298 = vst.msk [vmem:[%s496_s7 + $0x4] sm:$0xf] %vm296_vm2, %v322_v5 }

// kernel: transformer_forward.19
= control target key start
LH: loop header
LB: loop body
LE: loop exit
PB: predicated region body
PF: predicated region fallthrough
CT: control target
= control target key end

     0   :  { %s1262_s0 = inlined_call_operand.vmem [shape: s32[2], index: 0, kind: input, shape index: {}]   ;;  %s1263_s1 = inlined_call_operand.vmem [shape: bf16[2,8,96], index: 1, kind: input, shape index: {}]   ;;  %s1264_s2 = inlined_call_operand.vmem [shape: bf16[32,32], index: 2, kind: input, shape index: {}]   ;;  %s1265_s3 = inlined_call_operand.vmem [shape: f32[1,32], index: 3, kind: input, shape index: {}]   ;;  %s1266_s4 = inlined_call_operand.vmem [shape: bf16[2,8,32], index: 4, kind: input, shape index: {}]   ;;  %s1267_s5 = inlined_call_operand.vmem [shape: f32[1,32], index: 5, kind: input, shape index: {}]   ;;  %s1268_s6 = inlined_call_operand.vmem [shape: f32[1,32], index: 6, kind: input, shape index: {}]   ;;  %s1269_s7 = inlined_call_operand.vmem [shape: bf16[2,8,32], index: 7, kind: output, shape index: {}]  }
   0x1   :  { %s12_s26 = sshll.u32 %s1262_s0, 4  ;;  %s13_s26 = int_to_ptr.vmem [resolvable:$true] %s12_s26 }
   0x2   :  { %s1056_s27 = scalar_lea.vmem %s13_s26, 16  ;;  %p1061_p1 = scmp.lt.s32.totalorder %s13_s26, %s13_s26 }
   0x3   :  { %p1057_p0 = scmp.ne.s32.totalorder %s13_s26, %s1056_s27  ;;  %p1062_p2 = scmp.lt.s32.totalorder %s1056_s27, %s1056_s27 }
   0x5   :  { %p1063_p3 = por %p1062_p2, %p1061_p1 }
   0x7   :  { %p1064_p4 = pnand %p1063_p3, %p1057_p0 }
   0x9   :  { %1067 = shalt.err (!%p1064_p4)  }
   0xa   :  { %s1078_s28 = smov [#allocation3]  }
   0xb   :  { %15 = dma.vmem_to_smem %s13_s26, 16, %s1078_s28, [#allocation2] }
   0xc   :  { %1072 = dma.done.wait [#allocation2], 16 }
   0xd   :  { %1073 = vsyncadd [#allocation2], 4294967280 }
   0xe   :  { %17 = sfence }
   0xf   :  { %s1139_s29 = smov 0  }
  0x10 LB: > { %s1145_s0 = sadd.s32 4294967295, %s1076_s29   ;;  %p913_p5 = scmp.ge.s32.totalorder %s1076_s29, 1  ;;  %s1076_s29 = sphi %s1139_s29, %s23_s29  }
  0x11   : > { %p227_p6 = scmp.lt.s32.totalorder %s1076_s29, 3 }
  0x13   : > { %p228_p7 = pnand %p913_p5, %p227_p6 }
  0x14   : > { %p259_p8 = scmp.lt.s32.totalorder (!%p228_p7), %s1145_s0, 1  ;;  %v1079_v0 = vmov (!%p228_p7), 0.0   ;;  %vm1080_vm0 = vmmov (!%p228_p7), 0   ;;  %s1081_s12 = smov (!%p228_p7), 96   ;;  %vm284_vm1 = vcmask (!%p228_p7), 64512   ;;  %v274_v5 = vlaneseq (!%p228_p7) }
  0x15   : > { %231 = sbr.rel (%p228_p7) target bundleno = 2149 (0x865), region = 44  ;;  %953 = vmatprep.subr.bf16.mxu0 (!%p228_p7), %v1079_v0  ;;  %955 = vmatprep.mubr.msk.bf16.mxu0 (!%p228_p7), %vm1080_vm0, %v1079_v0  ;;  %s1082_s13 = smov (!%p228_p7), 64   ;;  %v1084_v8 = vmov (!%p228_p7), -1e+09   ;;  %vm348_vm3 = vcmask (!%p228_p7), 1043456   ;;  %vm735_vm4 = vcmask (!%p228_p7), 130048  }
  0x16   : > { %959 = vmatprep.subr.bf16.mxu1 (!%p228_p7), %v1079_v0  ;;  %961 = vmatprep.mubr.msk.bf16.mxu1 (!%p228_p7), %vm1080_vm0, %v1079_v0  ;;  %s1083_s14 = smov (!%p228_p7), 88   ;;  %s273_s15 = sld [smem:[#allocation3 + %s1145_s0]] (!%p228_p7)  ;;  %v275_v6 = vand.u32 (!%p228_p7), 127, %v274_v5  ;;  %vm737_vm5 = vcmask (!%p228_p7), 195584   ;;  %vm756_vm6 = vcmask (!%p228_p7), 261120   ;;  %vm842_vm7 = vcmask (!%p228_p7), 257024  }
  0x17   : > { %s1085_s16 = smov (!%p228_p7), 72   ;;  %s1086_s17 = smov (!%p228_p7), 120  }
  0x18   : > { %s1087_s18 = smov (!%p228_p7), 80   ;;  %s1088_s19 = smov (!%p228_p7), 112  }
  0x19   : > { %s1089_s20 = smov (!%p228_p7), 104   ;;  %s1090_s21 = smov (!%p228_p7), 56  }
  0x1a   : > { %s1091_s22 = smov (!%p228_p7), 48   ;;  %s1092_s23 = smov (!%p228_p7), 40  }
  0x1b   : > { %s1093_s24 = smov (!%p228_p7), 8  }
  0x1c   : > { %s260_s30 = scalar_select %p259_p8, %s1145_s0, 1  ;;  %v276_v7 = vstv %s273_s15 }
  0x1d   : > { %vm277_vm2 = vcmp.lt.s32.totalorder %v275_v6, %v276_v7  ;;  %s1094_s0 = smov 16  }
  0x1e   : > { %s1157_s8 = sshll.u32 %s260_s30, 2  ;;  %v1174_v9 = vsel %vm277_vm2, 0.0, %v1084_v8  ;;  %s1095_s30 = smov 24  }
  0x1f   : > { %s262_s11 = scalar_lea.vmem %s1263_s1, %s1157_s8 }
  0x20   : > { %v272_v1 = vld [vmem:[%s262_s11] sm:$0xf]  ;;  %s266_s11 = scalar_lea.vmem %s1266_s4, %s1157_s8 }
  0x21   : > { %v1163_v2 = vcombine.low %v272_v1, %v272_v1 }
  0x23   : > { %282 = vrot.lane.b32.xlu0 %v1163_v2, %s1081_s12  ;;  %343 = vrot.lane.b32.xlu1 %v1163_v2, %s1082_s13 }
  0x27   : > { %394 = vrot.lane.b32.xlu1 %v1163_v2, %s1083_s14 }
  0x95   : > { %v283_v3 = vpop.permute.xlu0 %282  ;;  %v344_v16 = vpop.permute.xlu1 %343 }
  0x96   : > { %v289_v4 = vsel %vm284_vm1, %v283_v3, 0  ;;  %v350_v17 = vsel %vm348_vm3, %v344_v16, 0 }
  0x97   : > { %954 = vmatpush3.bf16.xpose.msra.mxu0 %v289_v4  ;;  %960 = vmatpush3.bf16.msra.mxu1 %v350_v17 }
  0x98   : > { %971 = vmatprep.subr.bf16.mxu0 %v1079_v0  ;;  %965 = vmatprep.subr.bf16.mxu1 %v1079_v0 }
  0x99   : > { %v395_v23 = vpop.permute.xlu1 %394 }
  0x9a   : > { %v400_v29 = vsel %vm284_vm1, %v395_v23, 0 }
  0x9e   : > { %956 = vmatmul.mubr.msk.bf16.vlgmr.msra.gmra.mrb[0].mxu0 %vm284_vm1, %v272_v1 }
  0x9f   : > { %973 = vmatprep.mubr.msk.bf16.mxu0 %vm1080_vm0, %v1079_v0 }
 0x171   : > { %v325_v10 = vpop.f32.mrb[0].mxu0 }
 0x172   : > { %v326_v11 = vadd.f32 %v325_v10, %v1174_v9  ;;  %v957_v12 = vpop.f32.mrb[1].mxu0 }
 0x173   : > { %v328_v13 = vpop.f32.mrb[2].mxu0 }
 0x174   : > { %v958_v14 = vpop.f32.mrb[3].mxu0  ;;  %v331_v15 = vsel %vm284_vm1, %v326_v11, -inf }
 0x175   : > { %332 = vmax.xlane.f32.xlu0 %v331_v15 }
 0x18b   : > { %614 = vrot.lane.b32.xlu0 %v1163_v2, %s1085_s16 }
 0x202   : > { %v333_v18 = vpop.xlane.xlu0 %332 }
 0x203   : > { %v334_v19 = vsub.f32 %v326_v11, %v333_v18 }
 0x205   : > { %v335_v20 = vmul.f32 1.442695, %v334_v19 }
 0x206   : > { %v615_v32 = vpop.permute.xlu0 %614 }
 0x207   : > { %1038 = vpow2.f32 %v335_v20  ;;  %v620_v34 = vsel %vm284_vm1, %v615_v32, 0  ;;  %v1036_v32 = vld [vmem:[%s1264_s2] sm:$0xff]  }
 0x211   : > { %v1039_v21 = vpop.eup %1038 }
 0x212   : > { %v337_v22 = vsel %vm284_vm1, %v1039_v21, 0.0 }
 0x213   : > { %338 = vadd.xlane.f32.xlu1 %v337_v22 }
 0x224   : > { %392 = vrot.lane.b32.xlu1 %v1163_v2, %s1086_s17 }
 0x228   : > { %504 = vrot.lane.b32.xlu1 %v1163_v2, %s1087_s18 }
 0x22c   : > { %502 = vrot.lane.b32.xlu1 %v1163_v2, %s1088_s19 }
 0x230   : > { %612 = vrot.lane.b32.xlu1 %v1163_v2, %s1089_s20  ;;  %s270_s20 = scalar_lea.vmem %s1269_s7, %s1157_s8 }
 0x2a0   : > { %v339_v24 = vpop.xlane.xlu1 %338 }
 0x2a1   : > { %1040 = vrcp.f32 %v339_v24 }
 0x2a4   : > { %v393_v27 = vpop.permute.xlu1 %392 }
 0x2a8   : > { %v505_v30 = vpop.permute.xlu1 %504 }
 0x2a9   : > { %v510_v31 = vsel %vm284_vm1, %v505_v30, 0 }
 0x2ab   : > { %v1041_v25 = vpop.eup %1040 }
 0x2ac   : > { %v341_v26 = vmul.f32 %v1041_v25, %v1039_v21  ;;  %v503_v33 = vpop.permute.xlu1 %502 }
 0x2ae   : > { %v342_v28 = vpack.c.bf16 %v341_v26, %v341_v26 }
 0x2b0   : > { %962 = vmatmul.mubr.msk.bf16.vlgmr.msra.gmra.mrb[0].mxu1 %vm284_vm1, %v342_v28  ;;  %v613_v35 = vpop.permute.xlu1 %612 }
 0x2b1   : > { %966 = vmatpush3.bf16.xpose.msra.mxu1 %v400_v29  ;;  %967 = vmatprep.mubr.msk.bf16.mxu1 %vm1080_vm0, %v1079_v0 }
 0x2b2   : > { %977 = vmatprep.subr.bf16.mxu1 %v1079_v0 }
 0x2b8   : > { %968 = vmatmul.mubr.msk.bf16.vlgmr.msra.gmra.mrb[4].mxu1 %vm284_vm1, %v393_v27 }
 0x2b9   : > { %978 = vmatpush3.bf16.xpose.msra.mxu1 %v510_v31  ;;  %979 = vmatprep.mubr.msk.bf16.mxu1 %vm1080_vm0, %v1079_v0 }
 0x2ba   : > { %989 = vmatprep.subr.bf16.mxu1 %v1079_v0 }
 0x2c0   : > { %980 = vmatmul.mubr.msk.bf16.vlgmr.msra.gmra.mrb[8].mxu1 %vm284_vm1, %v503_v33  ;;  %v1037_v33 = vld [vmem:[%s1264_s2 + $0x8] sm:$0xff]  }
 0x2c1   : > { %990 = vmatpush3.bf16.xpose.msra.mxu1 %v620_v34  ;;  %991 = vmatprep.mubr.msk.bf16.mxu1 %vm1080_vm0, %v1079_v0 }
 0x2c2   : > { %1001 = vmatprep.subr.bf16.mxu1 %v1079_v0 }
 0x2c8   : > { %992 = vmatmul.mubr.msk.bf16.vlgmr.msra.gmra.mrb[12].mxu1 %vm284_vm1, %v613_v35 }
 0x2c9   : > { %1005 = vmatprep.mubr.msk.bf16.mxu1 %vm1080_vm0, %v1079_v0  ;;  %1002 = vmatpush3.bf16.msra.mxu1 %v1036_v32 }
 0x2ca   : > { %1003 = vmatprep.subr.bf16.mxu1 %v1079_v0 }
 0x2cd   : > { %1004 = vmatpush3.bf16.msra.mxu1 %v1037_v33 }
 0x383   : > { %v1204_v36 = vpop.f32.mrb[0].mxu1 }
 0x384   : > { %v963_v37 = vpop.f32.mrb[1].mxu1 }
 0x385   : > { %v389_v38 = vpop.f32.mrb[2].mxu1 }
 0x386   : > { %v964_v39 = vpop.f32.mrb[3].mxu1 }
 0x38b   : > { %v436_v40 = vpop.f32.mrb[4].mxu1 }
 0x38c   : > { %v437_v41 = vadd.f32 %v436_v40, %v1174_v9  ;;  %v969_v42 = vpop.f32.mrb[5].mxu1 }
 0x38d   : > { %v439_v43 = vpop.f32.mrb[6].mxu1 }
 0x38e   : > { %v970_v44 = vpop.f32.mrb[7].mxu1  ;;  %v442_v45 = vsel %vm284_vm1, %v437_v41, -inf }
 0x38f   : > { %443 = vmax.xlane.f32.xlu1 %v442_v45 }
 0x393   : > { %v546_v46 = vpop.f32.mrb[8].mxu1 }
 0x394   : > { %v547_v47 = vadd.f32 %v546_v46, %v1174_v9  ;;  %v981_v48 = vpop.f32.mrb[9].mxu1 }
 0x395   : > { %v549_v49 = vpop.f32.mrb[10].mxu1 }
 0x396   : > { %v552_v50 = vsel %vm284_vm1, %v547_v47, -inf  ;;  %v982_v51 = vpop.f32.mrb[11].mxu1  ;;  %v800_v49 = vld [vmem:[%s266_s11] sm:$0xf] }
 0x397   : > { %553 = vmax.xlane.f32.xlu0 %v552_v50  ;;  %v801_v50 = vunpack.c.l.bf16 %v800_v49 }
 0x39b   : > { %v656_v52 = vpop.f32.mrb[12].mxu1 }
 0x39c   : > { %v657_v53 = vadd.f32 %v656_v52, %v1174_v9  ;;  %v993_v54 = vpop.f32.mrb[13].mxu1  ;;  %v929_v52 = vld [vmem:[%s1265_s3] ss:$0 sm:$0xff] }
 0x39d   : > { %v659_v55 = vpop.f32.mrb[14].mxu1 }
 0x39e   : > { %v662_v56 = vsel %vm284_vm1, %v657_v53, -inf  ;;  %v994_v57 = vpop.f32.mrb[15].mxu1 }
 0x39f   : > { %663 = vmax.xlane.f32.xlu1 %v662_v56 }
 0x41c   : > { %v444_v58 = vpop.xlane.xlu1 %443 }
 0x41d   : > { %v445_v59 = vsub.f32 %v437_v41, %v444_v58 }
 0x41f   : > { %v446_v60 = vmul.f32 1.442695, %v445_v59 }
 0x421   : > { %1042 = vpow2.f32 %v446_v60 }
 0x424   : > { %v554_v6 = vpop.xlane.xlu0 %553 }
 0x425   : > { %v555_v7 = vsub.f32 %v547_v47, %v554_v6 }
 0x427   : > { %v556_v8 = vmul.f32 1.442695, %v555_v7  ;;  %v931_v7 = vld [vmem:[%s1268_s6] ss:$0 sm:$0xff] }
 0x42b   : > { %v1043_v61 = vpop.eup %1042 }
 0x42c   : > { %v664_v62 = vpop.xlane.xlu1 %663  ;;  %v448_v63 = vsel %vm284_vm1, %v1043_v61, 0.0 }
 0x42d   : > { %v665_v1 = vsub.f32 %v657_v53, %v664_v62  ;;  %449 = vadd.xlane.f32.xlu1 %v448_v63 }
 0x42f   : > { %v666_v3 = vmul.f32 1.442695, %v665_v1 }
 0x431   : > { %1044 = vpow2.f32 %v666_v3 }
 0x432   : > { %1046 = vpow2.f32 %v556_v8 }
 0x43b   : > { %v1045_v4 = vpop.eup %1044 }
 0x43c   : > { %v668_v5 = vsel %vm284_vm1, %v1045_v4, 0.0  ;;  %v1047_v9 = vpop.eup %1046 }
 0x43d   : > { %669 = vadd.xlane.f32.xlu0 %v668_v5  ;;  %v558_v10 = vsel %vm284_vm1, %v1047_v9, 0.0  ;;  %v930_v5 = vld [vmem:[%s1267_s5] ss:$0 sm:$0xff] }
 0x43e   : > { %454 = vrot.lane.b32.xlu1 %v1163_v2, %s1090_s21 }
 0x453   : > { %564 = vrot.lane.b32.xlu0 %v1163_v2, %s1091_s22 }
 0x462   : > { %559 = vadd.xlane.f32.xlu1 %v558_v10 }
 0x473   : > { %674 = vrot.lane.b32.xlu1 %v1163_v2, %s1092_s23 }
 0x4ba   : > { %v450_v11 = vpop.xlane.xlu1 %449 }
 0x4bb   : > { %1048 = vrcp.f32 %v450_v11 }
 0x4be   : > { %v455_v12 = vpop.permute.xlu1 %454 }
 0x4bf   : > { %v460_v13 = vsel %vm348_vm3, %v455_v12, 0 }
 0x4c0   : > { %972 = vmatpush3.bf16.msra.mxu0 %v460_v13 }
 0x4c1   : > { %983 = vmatprep.subr.bf16.mxu0 %v1079_v0 }
 0x4c5   : > { %v1049_v14 = vpop.eup %1048 }
 0x4c6   : > { %v452_v15 = vmul.f32 %v1049_v14, %v1043_v61 }
 0x4c8   : > { %v453_v16 = vpack.c.bf16 %v452_v15, %v452_v15 }
 0x4ca   : > { %974 = vmatmul.mubr.msk.bf16.vlgmr.msra.gmra.mrb[4].mxu0 %vm284_vm1, %v453_v16  ;;  %v670_v17 = vpop.xlane.xlu0 %669 }
 0x4cb   : > { %985 = vmatprep.mubr.msk.bf16.mxu0 %vm1080_vm0, %v1079_v0 }
 0x4ce   : > { %v565_v18 = vpop.permute.xlu0 %564 }
 0x4cf   : > { %v570_v2 = vsel %vm348_vm3, %v565_v18, 0 }
 0x4d0   : > { %984 = vmatpush3.bf16.msra.mxu0 %v570_v2 }
 0x4d1   : > { %995 = vmatprep.subr.bf16.mxu0 %v1079_v0 }
 0x4ef   : > { %v560_v19 = vpop.xlane.xlu1 %559 }
 0x4f0   : > { %1050 = vrcp.f32 %v560_v19 }
 0x4f1   : > { %1052 = vrcp.f32 %v670_v17 }
 0x4f3   : > { %v675_v21 = vpop.permute.xlu1 %674 }
 0x4f4   : > { %v680_v23 = vsel %vm348_vm3, %v675_v21, 0 }
 0x4fa   : > { %v1051_v20 = vpop.eup %1050 }
 0x4fb   : > { %v562_v22 = vmul.f32 %v1051_v20, %v1047_v9  ;;  %v1053_v25 = vpop.eup %1052 }
 0x4fc   : > { %v672_v26 = vmul.f32 %v1053_v25, %v1045_v4 }
 0x4fd   : > { %v563_v24 = vpack.c.bf16 %v562_v22, %v562_v22 }
 0x4fe   : > { %v673_v27 = vpack.c.bf16 %v672_v26, %v672_v26 }
 0x4ff   : > { %986 = vmatmul.mubr.msk.bf16.vlgmr.msra.gmra.mrb[8].mxu0 %vm284_vm1, %v563_v24 }
 0x500   : > { %996 = vmatpush3.bf16.msra.mxu0 %v680_v23  ;;  %997 = vmatprep.mubr.msk.bf16.mxu0 %vm1080_vm0, %v1079_v0 }
 0x507   : > { %998 = vmatmul.mubr.msk.bf16.vlgmr.msra.gmra.mrb[12].mxu0 %vm284_vm1, %v673_v27 }
 0x59d   : > { %v496_v28 = vpop.f32.mrb[4].mxu0 }
 0x59e   : > { %723 = vrot.lane.b32.xlu1 %v496_v28, %s1093_s24  ;;  %v975_v29 = vpop.f32.mrb[5].mxu0 }
 0x59f   : > { %v499_v30 = vpop.f32.mrb[6].mxu0 }
 0x5a0   : > { %v976_v31 = vpop.f32.mrb[7].mxu0 }
 0x5d2   : > { %v606_v34 = vpop.f32.mrb[8].mxu0 }
 0x5d3   : > { %727 = vrot.lane.b32.xlu0 %v606_v34, %s1094_s0  ;;  %v987_v35 = vpop.f32.mrb[9].mxu0 }
 0x5d4   : > { %v609_v37 = vpop.f32.mrb[10].mxu0 }
 0x5d5   : > { %v988_v38 = vpop.f32.mrb[11].mxu0 }
 0x5da   : > { %v716_v39 = vpop.f32.mrb[12].mxu0 }
 0x5db   : > { %731 = vrot.lane.b32.xlu1 %v716_v39, %s1095_s30  ;;  %v999_v40 = vpop.f32.mrb[13].mxu0 }
 0x5dc   : > { %v719_v41 = vpop.f32.mrb[14].mxu0 }
 0x5dd   : > { %v1000_v42 = vpop.f32.mrb[15].mxu0 }
 0x610   : > { %v724_v43 = vpop.permute.xlu1 %723 }
 0x611   : > { %v734_v0 = vsel %vm284_vm1, %v1204_v36, %v724_v43 }
 0x645   : > { %v728_v44 = vpop.permute.xlu0 %727 }
 0x646   : > { %v736_v45 = vsel %vm735_vm4, %v734_v0, %v728_v44 }
 0x64d   : > { %v732_v46 = vpop.permute.xlu1 %731 }
 0x64e   : > { %v738_v47 = vsel %vm737_vm5, %v736_v45, %v732_v46 }
 0x64f   : > { %v739_v48 = vpack.c.bf16 %v738_v47, %v738_v47 }
 0x651   : > { %1006 = vmatmul.mubr.msk.bf16.vlgmr.msra.gmra.mrb[16].mxu1 %vm756_vm6, %v739_v48 }
 0x724   : > { %v794_v51 = vpop.f32.mrb[16].mxu1 }
 0x725   : > { %v802_v53 = vadd.f32 %v801_v50, %v794_v51  ;;  %v1007_v36 = vpop.f32.mrb[17].mxu1 }
 0x726   : > { %v797_v54 = vpop.f32.mrb[18].mxu1 }
 0x727   : > { %v1008_v55 = vpop.f32.mrb[19].mxu1  ;;  %v810_v56 = vadd.f32 %v929_v52, %v802_v53 }
 0x729   : > { %v811_v57 = vsel %vm756_vm6, %v810_v56, 0.0 }
 0x72a   : > { %812 = vadd.xlane.f32.xlu0 %v811_v57 }
 0x7b7   : > { %v813_v58 = vpop.xlane.xlu0 %812 }
 0x7b8   : > { %v815_v59 = vmul.f32 0.03125, %v813_v58 }
 0x7ba   : > { %v816_v60 = vsub.f32 %v810_v56, %v815_v59 }
 0x7bc   : > { %v817_v61 = vmul.f32 %v816_v60, %v816_v60 }
 0x7be   : > { %v818_v62 = vsel %vm756_vm6, %v817_v61, 0.0 }
 0x7bf   : > { %819 = vadd.xlane.f32.xlu1 %v818_v62 }
 0x84c   : > { %v820_v63 = vpop.xlane.xlu1 %819 }
 0x84d   : > { %v821_v1 = vmul.f32 0.03125, %v820_v63 }
 0x84f   : > { %v822_v3 = vadd.f32 1e-05, %v821_v1 }
 0x851   : > { %1054 = vrsqrt.f32 %v822_v3 }
 0x85b   : > { %v1055_v4 = vpop.eup %1054 }
 0x85c   : > { %v824_v6 = vmul.f32 %v1055_v4, %v816_v60 }
 0x85e   : > { %v832_v8 = vmul.f32 %v930_v5, %v824_v6 }
 0x860   : > { %v840_v9 = vadd.f32 %v931_v7, %v832_v8 }
 0x862   : > { %v841_v10 = vpack.c.bf16 %v840_v9, %v840_v9 }
 0x864   : > { %843 = vst.msk [vmem:[%s270_s20] sm:$0xf] %vm842_vm7, %v841_v10 }
 0x865 PF: > { %s23_s29 = sadd.s32 1, %s1076_s29  }
 0x866   : > { %p20_p9 = scmp.ge.s32.totalorder %s23_s29, 4  }
 0x868   :  { %22 = sbr.rel (!%p20_p9) target bundleno = 16 (0x10), region = 77 }

// kernel: transformer_forward.27
= control target key start
LH: loop header
LB: loop body
LE: loop exit
PB: predicated region body
PF: predicated region fallthrough
CT: control target
= control target key end

     0   :  { %vm19_vm0 = vcmask 523264   ;;  %v151_v0 = vmov 0.0   ;;  %vm152_vm1 = vmmov 0   ;;  %vm47_vm2 = vcmask 261120   ;;  %s195_s1 = inlined_call_operand.vmem [shape: bf16[32,64], index: 1, kind: input, shape index: {}]   ;;  %s196_s0 = inlined_call_operand.vmem [shape: bf16[16,32], index: 0, kind: input, shape index: {}]   ;;  %s197_s2 = inlined_call_operand.vmem [shape: f32[1,64], index: 2, kind: input, shape index: {}]   ;;  %s198_s3 = inlined_call_operand.vmem [shape: bf16[16,64], index: 3, kind: output, shape index: {}]  }
   0x1   :  { %138 = vmatprep.subr.bf16.mxu0 %v151_v0  ;;  %v148_v1 = vld [vmem:[%s195_s1] sm:$0xff]   ;;  %142 = vmatprep.mubr.msk.bf16.mxu0 %vm152_vm1, %v151_v0  ;;  %20 = vst.msk [vmem:[#allocation2] sm:$0xff] %vm19_vm0, %v151_v0  ;;  %21 = vst.msk [vmem:[#allocation2 + $0x8] sm:$0xff] %vm19_vm0, %v151_v0  ;;  %v149_v2 = vld [vmem:[%s195_s1 + $0x8] sm:$0xff]   ;;  %vm119_vm3 = vcmask 519168  }
   0x2   :  { %139 = vmatpush3.bf16.msra.mxu0 %v148_v1  ;;  %v150_v3 = vld [vmem:[%s196_s0] sm:$0xff]  }
   0x3   :  { %140 = vmatprep.subr.bf16.mxu0 %v151_v0  ;;  %v130_v12 = vld [vmem:[%s197_s2] ss:$0 sm:$0xff] }
   0x6   :  { %141 = vmatpush3.bf16.msra.mxu0 %v149_v2 }
   0x8   :  { %v22_v4 = vld [vmem:[#allocation2] sm:$0xff]  ;;  %v23_v6 = vld [vmem:[#allocation2 + $0x8] sm:$0xff] }
   0x9   :  { %143 = vmatmul.mubr.msk.bf16.vlgmr.msra.gmra.mrb[0].mxu0 %vm47_vm2, %v150_v3 }
  0xdc   :  { %v85_v5 = vpop.f32.mrb[0].mxu0 }
  0xdd   :  { %v92_v7 = vadd.f32 %v85_v5, %v22_v4  ;;  %v144_v8 = vpop.f32.mrb[1].mxu0 }
  0xde   :  { %v88_v9 = vpop.f32.mrb[2].mxu0 }
  0xdf   :  { %95 = vst.msk [vmem:[#allocation2] sm:$0xff] %vm19_vm0, %v92_v7  ;;  %v93_v10 = vadd.f32 %v88_v9, %v23_v6  ;;  %v145_v11 = vpop.f32.mrb[3].mxu0 }
  0xe1   :  { %96 = vst.msk [vmem:[#allocation2 + $0x8] sm:$0xff] %vm19_vm0, %v93_v10 }
  0xe6   :  { %v100_v13 = vld [vmem:[#allocation2] sm:$0xff] }
  0xe7   :  { %v109_v14 = vadd.f32 %v130_v12, %v100_v13 }
  0xe8   :  { %v101_v15 = vld [vmem:[#allocation2 + $0x8] sm:$0xff] }
  0xe9   :  { %v133_v16 = vpack.c.bf16 %v109_v14, %v109_v14  ;;  %v110_v17 = vadd.f32 %v130_v12, %v101_v15 }
  0xeb   :  { %120 = vst.msk [vmem:[%s198_s3] sm:$0xf] %vm119_vm3, %v133_v16  ;;  %v134_v18 = vpack.c.bf16 %v110_v17, %v110_v17 }
  0xed   :  { %121 = vst.msk [vmem:[%s198_s3 + $0x4] sm:$0xf] %vm119_vm3, %v134_v18 }

// kernel: transformer_forward.26
= control target key start
LH: loop header
LB: loop body
LE: loop exit
PB: predicated region body
PF: predicated region fallthrough
CT: control target
= control target key end

     0   :  { %vm19_vm0 = vcmask 261120   ;;  %v150_v0 = vmov 0.0   ;;  %vm151_vm1 = vmmov 0   ;;  %vm118_vm2 = vcmask 257024   ;;  %s195_s1 = inlined_call_operand.vmem [shape: bf16[32,32], index: 1, kind: input, shape index: {}]   ;;  %s196_s0 = inlined_call_operand.vmem [shape: bf16[16,32], index: 0, kind: input, shape index: {}]   ;;  %s197_s2 = inlined_call_operand.vmem [shape: f32[1,32], index: 2, kind: input, shape index: {}]   ;;  %s198_s3 = inlined_call_operand.vmem [shape: bf16[16,32], index: 3, kind: output, shape index: {}]  }
   0x1   :  { %137 = vmatprep.subr.bf16.mxu0 %v150_v0  ;;  %v147_v1 = vld [vmem:[%s195_s1] sm:$0xff]   ;;  %141 = vmatprep.mubr.msk.bf16.mxu0 %vm151_vm1, %v150_v0  ;;  %20 = vst.msk [vmem:[#allocation2] sm:$0xff] %vm19_vm0, %v150_v0  ;;  %21 = vst.msk [vmem:[#allocation2 + $0x8] sm:$0xff] %vm19_vm0, %v150_v0  ;;  %v148_v2 = vld [vmem:[%s195_s1 + $0x8] sm:$0xff]  }
   0x2   :  { %138 = vmatpush3.bf16.msra.mxu0 %v147_v1  ;;  %v149_v3 = vld [vmem:[%s196_s0] sm:$0xff]  }
   0x3   :  { %139 = vmatprep.subr.bf16.mxu0 %v150_v0  ;;  %v129_v12 = vld [vmem:[%s197_s2] ss:$0 sm:$0xff] }
   0x6   :  { %140 = vmatpush3.bf16.msra.mxu0 %v148_v2 }
   0x8   :  { %v22_v4 = vld [vmem:[#allocation2] sm:$0xff]  ;;  %v23_v6 = vld [vmem:[#allocation2 + $0x8] sm:$0xff] }
   0x9   :  { %142 = vmatmul.mubr.msk.bf16.vlgmr.msra.gmra.mrb[0].mxu0 %vm19_vm0, %v149_v3 }
  0xdc   :  { %v85_v5 = vpop.f32.mrb[0].mxu0 }
  0xdd   :  { %v92_v7 = vadd.f32 %v85_v5, %v22_v4  ;;  %v143_v8 = vpop.f32.mrb[1].mxu0 }
  0xde   :  { %v88_v9 = vpop.f32.mrb[2].mxu0 }
  0xdf   :  { %94 = vst.msk [vmem:[#allocation2] sm:$0xff] %vm19_vm0, %v92_v7  ;;  %v93_v10 = vadd.f32 %v88_v9, %v23_v6  ;;  %v144_v11 = vpop.f32.mrb[3].mxu0 }
  0xe1   :  { %95 = vst.msk [vmem:[#allocation2 + $0x8] sm:$0xff] %vm19_vm0, %v93_v10 }
  0xe6   :  { %v99_v13 = vld [vmem:[#allocation2] sm:$0xff] }
  0xe7   :  { %v108_v14 = vadd.f32 %v129_v12, %v99_v13 }
  0xe8   :  { %v100_v15 = vld [vmem:[#allocation2 + $0x8] sm:$0xff] }
  0xe9   :  { %v132_v16 = vpack.c.bf16 %v108_v14, %v108_v14  ;;  %v109_v17 = vadd.f32 %v129_v12, %v100_v15 }
  0xeb   :  { %119 = vst.msk [vmem:[%s198_s3] sm:$0xf] %vm118_vm2, %v132_v16  ;;  %v133_v18 = vpack.c.bf16 %v109_v17, %v109_v17 }
  0xed   :  { %120 = vst.msk [vmem:[%s198_s3 + $0x4] sm:$0xf] %vm118_vm2, %v133_v18 }

// kernel: transformer_forward.25
= control target key start
LH: loop header
LB: loop body
LE: loop exit
PB: predicated region body
PF: predicated region fallthrough
CT: control target
= control target key end

     0   :  { %s1266_s0 = inlined_call_operand.vmem [shape: s32[2], index: 0, kind: input, shape index: {}]   ;;  %s1267_s1 = inlined_call_operand.vmem [shape: bf16[2,8,96], index: 1, kind: input, shape index: {}]   ;;  %s1268_s2 = inlined_call_operand.vmem [shape: bf16[32,32], index: 2, kind: input, shape index: {}]   ;;  %s1269_s3 = inlined_call_operand.vmem [shape: f32[1,32], index: 3, kind: input, shape index: {}]   ;;  %s1270_s4 = inlined_call_operand.vmem [shape: bf16[2,8,32], index: 4, kind: input, shape index: {}]   ;;  %s1271_s5 = inlined_call_operand.vmem [shape: f32[1,32], index: 5, kind: input, shape index: {}]   ;;  %s1272_s6 = inlined_call_operand.vmem [shape: f32[1,32], index: 6, kind: input, shape index: {}]   ;;  %s1273_s7 = inlined_call_operand.vmem [shape: bf16[2,8,32], index: 7, kind: output, shape index: {}]  }
   0x1   :  { %s12_s26 = sshll.u32 %s1266_s0, 4  ;;  %s13_s26 = int_to_ptr.vmem [resolvable:$true] %s12_s26 }
   0x2   :  { %s1060_s27 = scalar_lea.vmem %s13_s26, 16  ;;  %p1065_p1 = scmp.lt.s32.totalorder %s13_s26, %s13_s26 }
   0x3   :  { %p1061_p0 = scmp.ne.s32.totalorder %s13_s26, %s1060_s27  ;;  %p1066_p2 = scmp.lt.s32.totalorder %s1060_s27, %s1060_s27 }
   0x5   :  { %p1067_p3 = por %p1066_p2, %p1065_p1 }
   0x7   :  { %p1068_p4 = pnand %p1067_p3, %p1061_p0 }
   0x9   :  { %1071 = shalt.err (!%p1068_p4)  }
   0xa   :  { %s1082_s28 = smov [#allocation3]  }
   0xb   :  { %15 = dma.vmem_to_smem %s13_s26, 16, %s1082_s28, [#allocation2] }
   0xc   :  { %1076 = dma.done.wait [#allocation2], 16 }
   0xd   :  { %1077 = vsyncadd [#allocation2], 4294967280 }
   0xe   :  { %17 = sfence }
   0xf   :  { %s1143_s29 = smov 0  }
  0x10 LB: > { %s1149_s0 = sadd.s32 4294967295, %s1080_s29   ;;  %p917_p5 = scmp.ge.s32.totalorder %s1080_s29, 1  ;;  %s1080_s29 = sphi %s1143_s29, %s23_s29  }
  0x11   : > { %p227_p6 = scmp.lt.s32.totalorder %s1080_s29, 3 }
  0x13   : > { %p228_p7 = pnand %p917_p5, %p227_p6 }
  0x14   : > { %p259_p8 = scmp.lt.s32.totalorder (!%p228_p7), %s1149_s0, 1  ;;  %v1083_v0 = vmov (!%p228_p7), 0.0   ;;  %vm1084_vm0 = vmmov (!%p228_p7), 0   ;;  %s1085_s12 = smov (!%p228_p7), 96   ;;  %vm288_vm1 = vcmask (!%p228_p7), 64512   ;;  %v274_v5 = vlaneseq (!%p228_p7) }
  0x15   : > { %231 = sbr.rel (%p228_p7) target bundleno = 2149 (0x865), region = 44  ;;  %957 = vmatprep.subr.bf16.mxu0 (!%p228_p7), %v1083_v0  ;;  %959 = vmatprep.mubr.msk.bf16.mxu0 (!%p228_p7), %vm1084_vm0, %v1083_v0  ;;  %s1086_s13 = smov (!%p228_p7), 64   ;;  %v1088_v9 = vmov (!%p228_p7), -1e+09   ;;  %vm352_vm5 = vcmask (!%p228_p7), 1043456   ;;  %vm739_vm6 = vcmask (!%p228_p7), 130048  }
  0x16   : > { %963 = vmatprep.subr.bf16.mxu1 (!%p228_p7), %v1083_v0  ;;  %965 = vmatprep.mubr.msk.bf16.mxu1 (!%p228_p7), %vm1084_vm0, %v1083_v0  ;;  %s1087_s14 = smov (!%p228_p7), 88   ;;  %s273_s15 = sld [smem:[#allocation3 + %s1149_s0]] (!%p228_p7)  ;;  %v275_v6 = vand.u32 (!%p228_p7), 127, %v274_v5  ;;  %v279_v7 = vshrl.u32 (!%p228_p7), %v274_v5, 7  ;;  %vm741_vm7 = vcmask (!%p228_p7), 195584   ;;  %vm760_vm8 = vcmask (!%p228_p7), 261120  }
  0x17   : > { %s1089_s16 = smov (!%p228_p7), 72   ;;  %s1090_s17 = smov (!%p228_p7), 120   ;;  %vm846_vm9 = vcmask (!%p228_p7), 257024  }
  0x18   : > { %vm280_vm3 = vcmp.le.s32.totalorder (!%p228_p7), %v275_v6, %v279_v7  ;;  %s1091_s18 = smov (!%p228_p7), 80   ;;  %s1092_s19 = smov (!%p228_p7), 112  }
  0x19   : > { %s1093_s20 = smov (!%p228_p7), 104   ;;  %s1094_s21 = smov (!%p228_p7), 56  }
  0x1a   : > { %s1095_s22 = smov (!%p228_p7), 48   ;;  %s1096_s23 = smov (!%p228_p7), 40  }
  0x1b   : > { %s1097_s24 = smov (!%p228_p7), 8  }
  0x1c   : > { %s260_s30 = scalar_select %p259_p8, %s1149_s0, 1  ;;  %v276_v8 = vstv %s273_s15 }
  0x1d   : > { %vm277_vm2 = vcmp.lt.s32.totalorder %v275_v6, %v276_v8  ;;  %s1098_s0 = smov 16  }
  0x1e   : > { %s1161_s8 = sshll.u32 %s260_s30, 2  ;;  %vm281_vm4 = vmand %vm277_vm2, %vm280_vm3  ;;  %s1099_s30 = smov 24  }
  0x1f   : > { %s262_s11 = scalar_lea.vmem %s1267_s1, %s1161_s8  ;;  %v1178_v10 = vsel %vm281_vm4, 0.0, %v1088_v9 }
  0x20   : > { %v272_v1 = vld [vmem:[%s262_s11] sm:$0xf]  ;;  %s266_s11 = scalar_lea.vmem %s1270_s4, %s1161_s8 }
  0x21   : > { %v1167_v2 = vcombine.low %v272_v1, %v272_v1 }
  0x23   : > { %286 = vrot.lane.b32.xlu0 %v1167_v2, %s1085_s12  ;;  %347 = vrot.lane.b32.xlu1 %v1167_v2, %s1086_s13 }
  0x27   : > { %398 = vrot.lane.b32.xlu1 %v1167_v2, %s1087_s14 }
  0x95   : > { %v287_v3 = vpop.permute.xlu0 %286  ;;  %v348_v17 = vpop.permute.xlu1 %347 }
  0x96   : > { %v293_v4 = vsel %vm288_vm1, %v287_v3, 0  ;;  %v354_v18 = vsel %vm352_vm5, %v348_v17, 0 }
  0x97   : > { %958 = vmatpush3.bf16.xpose.msra.mxu0 %v293_v4  ;;  %964 = vmatpush3.bf16.msra.mxu1 %v354_v18 }
  0x98   : > { %975 = vmatprep.subr.bf16.mxu0 %v1083_v0  ;;  %969 = vmatprep.subr.bf16.mxu1 %v1083_v0 }
  0x99   : > { %v399_v24 = vpop.permute.xlu1 %398 }
  0x9a   : > { %v404_v30 = vsel %vm288_vm1, %v399_v24, 0 }
  0x9e   : > { %960 = vmatmul.mubr.msk.bf16.vlgmr.msra.gmra.mrb[0].mxu0 %vm288_vm1, %v272_v1 }
  0x9f   : > { %977 = vmatprep.mubr.msk.bf16.mxu0 %vm1084_vm0, %v1083_v0 }
 0x171   : > { %v329_v11 = vpop.f32.mrb[0].mxu0 }
 0x172   : > { %v330_v12 = vadd.f32 %v329_v11, %v1178_v10  ;;  %v961_v13 = vpop.f32.mrb[1].mxu0 }
 0x173   : > { %v332_v14 = vpop.f32.mrb[2].mxu0 }
 0x174   : > { %v962_v15 = vpop.f32.mrb[3].mxu0  ;;  %v335_v16 = vsel %vm288_vm1, %v330_v12, -inf }
 0x175   : > { %336 = vmax.xlane.f32.xlu0 %v335_v16 }
 0x18b   : > { %618 = vrot.lane.b32.xlu0 %v1167_v2, %s1089_s16 }
 0x202   : > { %v337_v19 = vpop.xlane.xlu0 %336 }
 0x203   : > { %v338_v20 = vsub.f32 %v330_v12, %v337_v19 }
 0x205   : > { %v339_v21 = vmul.f32 1.442695, %v338_v20 }
 0x206   : > { %v619_v33 = vpop.permute.xlu0 %618 }
 0x207   : > { %1042 = vpow2.f32 %v339_v21  ;;  %v624_v35 = vsel %vm288_vm1, %v619_v33, 0  ;;  %v1040_v33 = vld [vmem:[%s1268_s2] sm:$0xff]  }
 0x211   : > { %v1043_v22 = vpop.eup %1042 }
 0x212   : > { %v341_v23 = vsel %vm288_vm1, %v1043_v22, 0.0 }
 0x213   : > { %342 = vadd.xlane.f32.xlu1 %v341_v23 }
 0x224   : > { %396 = vrot.lane.b32.xlu1 %v1167_v2, %s1090_s17 }
 0x228   : > { %508 = vrot.lane.b32.xlu1 %v1167_v2, %s1091_s18 }
 0x22c   : > { %506 = vrot.lane.b32.xlu1 %v1167_v2, %s1092_s19 }
 0x230   : > { %616 = vrot.lane.b32.xlu1 %v1167_v2, %s1093_s20  ;;  %s270_s20 = scalar_lea.vmem %s1273_s7, %s1161_s8 }
 0x2a0   : > { %v343_v25 = vpop.xlane.xlu1 %342 }
 0x2a1   : > { %1044 = vrcp.f32 %v343_v25 }
 0x2a4   : > { %v397_v28 = vpop.permute.xlu1 %396 }
 0x2a8   : > { %v509_v31 = vpop.permute.xlu1 %508 }
 0x2a9   : > { %v514_v32 = vsel %vm288_vm1, %v509_v31, 0 }
 0x2ab   : > { %v1045_v26 = vpop.eup %1044 }
 0x2ac   : > { %v345_v27 = vmul.f32 %v1045_v26, %v1043_v22  ;;  %v507_v34 = vpop.permute.xlu1 %506 }
 0x2ae   : > { %v346_v29 = vpack.c.bf16 %v345_v27, %v345_v27 }
 0x2b0   : > { %966 = vmatmul.mubr.msk.bf16.vlgmr.msra.gmra.mrb[0].mxu1 %vm288_vm1, %v346_v29  ;;  %v617_v36 = vpop.permute.xlu1 %616 }
 0x2b1   : > { %970 = vmatpush3.bf16.xpose.msra.mxu1 %v404_v30  ;;  %971 = vmatprep.mubr.msk.bf16.mxu1 %vm1084_vm0, %v1083_v0 }
 0x2b2   : > { %981 = vmatprep.subr.bf16.mxu1 %v1083_v0 }
 0x2b8   : > { %972 = vmatmul.mubr.msk.bf16.vlgmr.msra.gmra.mrb[4].mxu1 %vm288_vm1, %v397_v28 }
 0x2b9   : > { %982 = vmatpush3.bf16.xpose.msra.mxu1 %v514_v32  ;;  %983 = vmatprep.mubr.msk.bf16.mxu1 %vm1084_vm0, %v1083_v0 }
 0x2ba   : > { %993 = vmatprep.subr.bf16.mxu1 %v1083_v0 }
 0x2c0   : > { %984 = vmatmul.mubr.msk.bf16.vlgmr.msra.gmra.mrb[8].mxu1 %vm288_vm1, %v507_v34  ;;  %v1041_v34 = vld [vmem:[%s1268_s2 + $0x8] sm:$0xff]  }
 0x2c1   : > { %994 = vmatpush3.bf16.xpose.msra.mxu1 %v624_v35  ;;  %995 = vmatprep.mubr.msk.bf16.mxu1 %vm1084_vm0, %v1083_v0 }
 0x2c2   : > { %1005 = vmatprep.subr.bf16.mxu1 %v1083_v0 }
 0x2c8   : > { %996 = vmatmul.mubr.msk.bf16.vlgmr.msra.gmra.mrb[12].mxu1 %vm288_vm1, %v617_v36 }
 0x2c9   : > { %1009 = vmatprep.mubr.msk.bf16.mxu1 %vm1084_vm0, %v1083_v0  ;;  %1006 = vmatpush3.bf16.msra.mxu1 %v1040_v33 }
 0x2ca   : > { %1007 = vmatprep.subr.bf16.mxu1 %v1083_v0 }
 0x2cd   : > { %1008 = vmatpush3.bf16.msra.mxu1 %v1041_v34 }
 0x383   : > { %v1208_v37 = vpop.f32.mrb[0].mxu1 }
 0x384   : > { %v967_v38 = vpop.f32.mrb[1].mxu1 }
 0x385   : > { %v393_v39 = vpop.f32.mrb[2].mxu1 }
 0x386   : > { %v968_v40 = vpop.f32.mrb[3].mxu1 }
 0x38b   : > { %v440_v41 = vpop.f32.mrb[4].mxu1 }
 0x38c   : > { %v441_v42 = vadd.f32 %v440_v41, %v1178_v10  ;;  %v973_v43 = vpop.f32.mrb[5].mxu1 }
 0x38d   : > { %v443_v44 = vpop.f32.mrb[6].mxu1 }
 0x38e   : > { %v974_v45 = vpop.f32.mrb[7].mxu1  ;;  %v446_v46 = vsel %vm288_vm1, %v441_v42, -inf }
 0x38f   : > { %447 = vmax.xlane.f32.xlu1 %v446_v46 }
 0x393   : > { %v550_v47 = vpop.f32.mrb[8].mxu1 }
 0x394   : > { %v551_v48 = vadd.f32 %v550_v47, %v1178_v10  ;;  %v985_v49 = vpop.f32.mrb[9].mxu1 }
 0x395   : > { %v553_v50 = vpop.f32.mrb[10].mxu1 }
 0x396   : > { %v556_v51 = vsel %vm288_vm1, %v551_v48, -inf  ;;  %v986_v52 = vpop.f32.mrb[11].mxu1  ;;  %v804_v50 = vld [vmem:[%s266_s11] sm:$0xf] }
 0x397   : > { %557 = vmax.xlane.f32.xlu0 %v556_v51  ;;  %v805_v51 = vunpack.c.l.bf16 %v804_v50 }
 0x39b   : > { %v660_v53 = vpop.f32.mrb[12].mxu1 }
 0x39c   : > { %v661_v54 = vadd.f32 %v660_v53, %v1178_v10  ;;  %v997_v55 = vpop.f32.mrb[13].mxu1  ;;  %v933_v53 = vld [vmem:[%s1269_s3] ss:$0 sm:$0xff] }
 0x39d   : > { %v663_v56 = vpop.f32.mrb[14].mxu1 }
 0x39e   : > { %v666_v57 = vsel %vm288_vm1, %v661_v54, -inf  ;;  %v998_v58 = vpop.f32.mrb[15].mxu1 }
 0x39f   : > { %667 = vmax.xlane.f32.xlu1 %v666_v57 }
 0x41c   : > { %v448_v59 = vpop.xlane.xlu1 %447 }
 0x41d   : > { %v449_v60 = vsub.f32 %v441_v42, %v448_v59 }
 0x41f   : > { %v450_v61 = vmul.f32 1.442695, %v449_v60 }
 0x421   : > { %1046 = vpow2.f32 %v450_v61 }
 0x424   : > { %v558_v7 = vpop.xlane.xlu0 %557 }
 0x425   : > { %v559_v8 = vsub.f32 %v551_v48, %v558_v7 }
 0x427   : > { %v560_v9 = vmul.f32 1.442695, %v559_v8  ;;  %v935_v8 = vld [vmem:[%s1272_s6] ss:$0 sm:$0xff] }
 0x42b   : > { %v1047_v62 = vpop.eup %1046 }
 0x42c   : > { %v668_v63 = vpop.xlane.xlu1 %667  ;;  %v452_v1 = vsel %vm288_vm1, %v1047_v62, 0.0 }
 0x42d   : > { %v669_v3 = vsub.f32 %v661_v54, %v668_v63  ;;  %453 = vadd.xlane.f32.xlu1 %v452_v1 }
 0x42f   : > { %v670_v4 = vmul.f32 1.442695, %v669_v3 }
 0x431   : > { %1048 = vpow2.f32 %v670_v4 }
 0x432   : > { %1050 = vpow2.f32 %v560_v9 }
 0x43b   : > { %v1049_v5 = vpop.eup %1048 }
 0x43c   : > { %v672_v6 = vsel %vm288_vm1, %v1049_v5, 0.0  ;;  %v1051_v10 = vpop.eup %1050 }
 0x43d   : > { %673 = vadd.xlane.f32.xlu0 %v672_v6  ;;  %v562_v11 = vsel %vm288_vm1, %v1051_v10, 0.0  ;;  %v934_v6 = vld [vmem:[%s1271_s5] ss:$0 sm:$0xff] }
 0x43e   : > { %458 = vrot.lane.b32.xlu1 %v1167_v2, %s1094_s21 }
 0x453   : > { %568 = vrot.lane.b32.xlu0 %v1167_v2, %s1095_s22 }
 0x462   : > { %563 = vadd.xlane.f32.xlu1 %v562_v11 }
 0x473   : > { %678 = vrot.lane.b32.xlu1 %v1167_v2, %s1096_s23 }
 0x4ba   : > { %v454_v12 = vpop.xlane.xlu1 %453 }
 0x4bb   : > { %1052 = vrcp.f32 %v454_v12 }
 0x4be   : > { %v459_v13 = vpop.permute.xlu1 %458 }
 0x4bf   : > { %v464_v14 = vsel %vm352_vm5, %v459_v13, 0 }
 0x4c0   : > { %976 = vmatpush3.bf16.msra.mxu0 %v464_v14 }
 0x4c1   : > { %987 = vmatprep.subr.bf16.mxu0 %v1083_v0 }
 0x4c5   : > { %v1053_v15 = vpop.eup %1052 }
 0x4c6   : > { %v456_v16 = vmul.f32 %v1053_v15, %v1047_v62 }
 0x4c8   : > { %v457_v17 = vpack.c.bf16 %v456_v16, %v456_v16 }
 0x4ca   : > { %978 = vmatmul.mubr.msk.bf16.vlgmr.msra.gmra.mrb[4].mxu0 %vm288_vm1, %v457_v17  ;;  %v674_v18 = vpop.xlane.xlu0 %673 }
 0x4cb   : > { %989 = vmatprep.mubr.msk.bf16.mxu0 %vm1084_vm0, %v1083_v0 }
 0x4ce   : > { %v569_v19 = vpop.permute.xlu0 %568 }
 0x4cf   : > { %v574_v2 = vsel %vm352_vm5, %v569_v19, 0 }
 0x4d0   : > { %988 = vmatpush3.bf16.msra.mxu0 %v574_v2 }
 0x4d1   : > { %999 = vmatprep.subr.bf16.mxu0 %v1083_v0 }
 0x4ef   : > { %v564_v20 = vpop.xlane.xlu1 %563 }
 0x4f0   : > { %1054 = vrcp.f32 %v564_v20 }
 0x4f1   : > { %1056 = vrcp.f32 %v674_v18 }
 0x4f3   : > { %v679_v22 = vpop.permute.xlu1 %678 }
 0x4f4   : > { %v684_v24 = vsel %vm352_vm5, %v679_v22, 0 }
 0x4fa   : > { %v1055_v21 = vpop.eup %1054 }
 0x4fb   : > { %v566_v23 = vmul.f32 %v1055_v21, %v1051_v10  ;;  %v1057_v26 = vpop.eup %1056 }
 0x4fc   : > { %v676_v27 = vmul.f32 %v1057_v26, %v1049_v5 }
 0x4fd   : > { %v567_v25 = vpack.c.bf16 %v566_v23, %v566_v23 }
 0x4fe   : > { %v677_v28 = vpack.c.bf16 %v676_v27, %v676_v27 }
 0x4ff   : > { %990 = vmatmul.mubr.msk.bf16.vlgmr.msra.gmra.mrb[8].mxu0 %vm288_vm1, %v567_v25 }
 0x500   : > { %1000 = vmatpush3.bf16.msra.mxu0 %v684_v24  ;;  %1001 = vmatprep.mubr.msk.bf16.mxu0 %vm1084_vm0, %v1083_v0 }
 0x507   : > { %1002 = vmatmul.mubr.msk.bf16.vlgmr.msra.gmra.mrb[12].mxu0 %vm288_vm1, %v677_v28 }
 0x59d   : > { %v500_v29 = vpop.f32.mrb[4].mxu0 }
 0x59e   : > { %727 = vrot.lane.b32.xlu1 %v500_v29, %s1097_s24  ;;  %v979_v30 = vpop.f32.mrb[5].mxu0 }
 0x59f   : > { %v503_v31 = vpop.f32.mrb[6].mxu0 }
 0x5a0   : > { %v980_v32 = vpop.f32.mrb[7].mxu0 }
 0x5d2   : > { %v610_v35 = vpop.f32.mrb[8].mxu0 }
 0x5d3   : > { %731 = vrot.lane.b32.xlu0 %v610_v35, %s1098_s0  ;;  %v991_v36 = vpop.f32.mrb[9].mxu0 }
 0x5d4   : > { %v613_v38 = vpop.f32.mrb[10].mxu0 }
 0x5d5   : > { %v992_v39 = vpop.f32.mrb[11].mxu0 }
 0x5da   : > { %v720_v40 = vpop.f32.mrb[12].mxu0 }
 0x5db   : > { %735 = vrot.lane.b32.xlu1 %v720_v40, %s1099_s30  ;;  %v1003_v41 = vpop.f32.mrb[13].mxu0 }
 0x5dc   : > { %v723_v42 = vpop.f32.mrb[14].mxu0 }
 0x5dd   : > { %v1004_v43 = vpop.f32.mrb[15].mxu0 }
 0x610   : > { %v728_v44 = vpop.permute.xlu1 %727 }
 0x611   : > { %v738_v0 = vsel %vm288_vm1, %v1208_v37, %v728_v44 }
 0x645   : > { %v732_v45 = vpop.permute.xlu0 %731 }
 0x646   : > { %v740_v46 = vsel %vm739_vm6, %v738_v0, %v732_v45 }
 0x64d   : > { %v736_v47 = vpop.permute.xlu1 %735 }
 0x64e   : > { %v742_v48 = vsel %vm741_vm7, %v740_v46, %v736_v47 }
 0x64f   : > { %v743_v49 = vpack.c.bf16 %v742_v48, %v742_v48 }
 0x651   : > { %1010 = vmatmul.mubr.msk.bf16.vlgmr.msra.gmra.mrb[16].mxu1 %vm760_vm8, %v743_v49 }
 0x724   : > { %v798_v52 = vpop.f32.mrb[16].mxu1 }
 0x725   : > { %v806_v54 = vadd.f32 %v805_v51, %v798_v52  ;;  %v1011_v37 = vpop.f32.mrb[17].mxu1 }
 0x726   : > { %v801_v55 = vpop.f32.mrb[18].mxu1 }
 0x727   : > { %v1012_v56 = vpop.f32.mrb[19].mxu1  ;;  %v814_v57 = vadd.f32 %v933_v53, %v806_v54 }
 0x729   : > { %v815_v58 = vsel %vm760_vm8, %v814_v57, 0.0 }
 0x72a   : > { %816 = vadd.xlane.f32.xlu0 %v815_v58 }
 0x7b7   : > { %v817_v59 = vpop.xlane.xlu0 %816 }
 0x7b8   : > { %v819_v60 = vmul.f32 0.03125, %v817_v59 }
 0x7ba   : > { %v820_v61 = vsub.f32 %v814_v57, %v819_v60 }
 0x7bc   : > { %v821_v62 = vmul.f32 %v820_v61, %v820_v61 }
 0x7be   : > { %v822_v63 = vsel %vm760_vm8, %v821_v62, 0.0 }
 0x7bf   : > { %823 = vadd.xlane.f32.xlu1 %v822_v63 }
 0x84c   : > { %v824_v1 = vpop.xlane.xlu1 %823 }
 0x84d   : > { %v825_v3 = vmul.f32 0.03125, %v824_v1 }
 0x84f   : > { %v826_v4 = vadd.f32 1e-05, %v825_v3 }
 0x851   : > { %1058 = vrsqrt.f32 %v826_v4 }
 0x85b   : > { %v1059_v5 = vpop.eup %1058 }
 0x85c   : > { %v828_v7 = vmul.f32 %v1059_v5, %v820_v61 }
 0x85e   : > { %v836_v9 = vmul.f32 %v934_v6, %v828_v7 }
 0x860   : > { %v844_v10 = vadd.f32 %v935_v8, %v836_v9 }
 0x862   : > { %v845_v11 = vpack.c.bf16 %v844_v10, %v844_v10 }
 0x864   : > { %847 = vst.msk [vmem:[%s270_s20] sm:$0xf] %vm846_vm9, %v845_v11 }
 0x865 PF: > { %s23_s29 = sadd.s32 1, %s1080_s29  }
 0x866   : > { %p20_p9 = scmp.ge.s32.totalorder %s23_s29, 4  }
 0x868   :  { %22 = sbr.rel (!%p20_p9) target bundleno = 16 (0x10), region = 77 }

// kernel: transformer_forward.35
= control target key start
LH: loop header
LB: loop body
LE: loop exit
PB: predicated region body
PF: predicated region fallthrough
CT: control target
= control target key end

     0   :  { %v424_v1 = vmov 0.0   ;;  %vm425_vm0 = vmmov 0   ;;  %vm32_vm1 = vcmask 261120   ;;  %s538_s0 = inlined_call_operand.vmem [shape: bf16[16,32], index: 0, kind: input, shape index: {}]   ;;  %s539_s1 = inlined_call_operand.vmem [shape: bf16[32,128], index: 1, kind: input, shape index: {}]   ;;  %s540_s2 = inlined_call_operand.vmem [shape: f32[1,128], index: 2, kind: input, shape index: {}]   ;;  %s541_s3 = inlined_call_operand.vmem [shape: bf16[128,32], index: 3, kind: input, shape index: {}]   ;;  %s542_s4 = inlined_call_operand.vmem [shape: f32[1,32], index: 4, kind: input, shape index: {}]   ;;  %s543_s5 = inlined_call_operand.vmem [shape: f32[1,32], index: 5, kind: input, shape index: {}]   ;;  %s544_s6 = inlined_call_operand.vmem [shape: f32[1,32], index: 6, kind: input, shape index: {}]   ;;  %s545_s7 = inlined_call_operand.hbm [shape: bf16[16,32], index: 7, kind: output, shape index: {}]  }
   0x1   :  { %v385_v0 = vld [vmem:[%s539_s1] sm:$0xff]   ;;  %352 = vmatprep.subr.bf16.mxu0 %v424_v1  ;;  %360 = vmatprep.subr.bf16.mxu1 %v424_v1  ;;  %v386_v2 = vld [vmem:[%s539_s1 + $0x8] sm:$0xff]   ;;  %33 = vst.msk [vmem:[#allocation2] sm:$0xff] %vm32_vm1, %v424_v1  ;;  %34 = vst.msk [vmem:[#allocation2 + $0x8] sm:$0xff] %vm32_vm1, %v424_v1 }
   0x2   :  { %353 = vmatpush3.bf16.msra.mxu0 %v385_v0  ;;  %356 = vmatprep.mubr.msk.bf16.mxu0 %vm425_vm0, %v424_v1  ;;  %v388_v3 = vld [vmem:[%s541_s3] sm:$0xff]   ;;  %v389_v5 = vld [vmem:[%s541_s3 + $0x8] sm:$0xff]   ;;  %v390_v6 = vld [vmem:[%s541_s3 + $0x10] sm:$0xff]  }
   0x3   :  { %354 = vmatprep.subr.bf16.mxu0 %v424_v1  ;;  %376 = vmatprep.mubr.msk.bf16.mxu1 %vm425_vm0, %v424_v1  ;;  %v387_v4 = vld [vmem:[%s538_s0] sm:$0xff]  }
   0x4   :  { %361 = vmatpush3.bf16.msra.mxu1 %v388_v3 }
   0x5   :  { %362 = vmatprep.subr.bf16.mxu1 %v424_v1 }
   0x6   :  { %355 = vmatpush3.bf16.msra.mxu0 %v386_v2 }
   0x8   :  { %363 = vmatpush3.bf16.msra.mxu1 %v389_v5 }
   0x9   :  { %357 = vmatmul.mubr.msk.bf16.vlgmr.msra.gmra.mrb[0].mxu0 %vm32_vm1, %v387_v4  ;;  %364 = vmatprep.subr.bf16.mxu1 %v424_v1 }
   0xa   :  { %12 = vsyncpa [#allocation4], 0  ;;  %v391_v7 = vld [vmem:[%s541_s3 + $0x18] sm:$0xff]   ;;  %v392_v8 = vld [vmem:[%s541_s3 + $0x20] sm:$0xff]   ;;  %vm297_vm2 = vcmask 257024   ;;  %s426_s28 = smov [#allocation3]  }
   0xb   :  { %v393_v9 = vld [vmem:[%s541_s3 + $0x28] sm:$0xff]   ;;  %v394_v10 = vld [vmem:[%s541_s3 + $0x30] sm:$0xff]   ;;  %v395_v11 = vld [vmem:[%s541_s3 + $0x38] sm:$0xff]   ;;  %s305_s29 = sshll.u32 %s426_s28, 4  ;;  %s306_s29 = int_to_ptr.vmem [resolvable:$true] %s305_s29 }
   0xc   :  { %365 = vmatpush3.bf16.msra.mxu1 %v390_v6  ;;  %v316_v12 = vld [vmem:[%s540_s2] ss:$0 sm:$0xff]  ;;  %v113_v24 = vld [vmem:[#allocation2 + $0x8] sm:$0xff]  ;;  %p405_p1 = scmp.lt.s32.totalorder %s306_s29, %s306_s29 }
   0xd   :  { %366 = vmatprep.subr.bf16.mxu1 %v424_v1  ;;  %v112_v22 = vld [vmem:[#allocation2] sm:$0xff] }
   0xe   :  { %v337_v30 = vld [vmem:[%s538_s0] sm:$0xff]  }
   0xf   :  { %v338_v31 = vunpack.c.l.bf16 %v337_v30  ;;  %v339_v32 = vunpack.c.h.bf16 %v337_v30  ;;  %v329_v34 = vld [vmem:[%s542_s4] ss:$0 sm:$0xff] }
  0x10   :  { %367 = vmatpush3.bf16.msra.mxu1 %v391_v7  ;;  %v330_v59 = vld [vmem:[%s543_s5] ss:$0 sm:$0xff]  ;;  %s400_s5 = scalar_lea.vmem %s306_s29, 128 }
  0x11   :  { %368 = vmatprep.subr.bf16.mxu1 %v424_v1  ;;  %v331_v61 = vld [vmem:[%s544_s6] ss:$0 sm:$0xff]  ;;  %p401_p0 = scmp.ne.s32.totalorder %s306_s29, %s400_s5  ;;  %p406_p2 = scmp.lt.s32.totalorder %s400_s5, %s400_s5 }
  0x13   :  { %p407_p3 = por %p406_p2, %p405_p1 }
  0x14   :  { %369 = vmatpush3.bf16.msra.mxu1 %v392_v8 }
  0x15   :  { %370 = vmatprep.subr.bf16.mxu1 %v424_v1  ;;  %p408_p4 = pnand %p407_p3, %p401_p0 }
  0x18   :  { %371 = vmatpush3.bf16.msra.mxu1 %v393_v9 }
  0x19   :  { %372 = vmatprep.subr.bf16.mxu1 %v424_v1 }
  0x1c   :  { %373 = vmatpush3.bf16.msra.mxu1 %v394_v10 }
  0x1d   :  { %374 = vmatprep.subr.bf16.mxu1 %v424_v1 }
  0x20   :  { %375 = vmatpush3.bf16.msra.mxu1 %v395_v11 }
  0xdc   :  { %v103_v13 = vpop.f32.mrb[0].mxu0 }
  0xdd   :  { %v104_v14 = vadd.f32 %v316_v12, %v103_v13  ;;  %v358_v15 = vpop.f32.mrb[1].mxu0 }
  0xde   :  { %v106_v16 = vpop.f32.mrb[2].mxu0 }
  0xdf   :  { %v107_v17 = vadd.f32 %v316_v12, %v106_v16  ;;  %v359_v18 = vpop.f32.mrb[3].mxu0  ;;  %v110_v19 = vmax.f32 %v104_v14, 0.0 }
  0xe1   :  { %v111_v20 = vmax.f32 %v107_v17, 0.0 }
  0xe3   :  { %v114_v21 = vpack.c.bf16 %v111_v20, %v110_v19 }
  0xe5   :  { %377 = vmatmul.mubr.bf16.vlgmr.msra.gmra.mrb[0].mxu1 %v114_v21 }
 0x1b8   :  { %v213_v23 = vpop.f32.mrb[0].mxu1 }
 0x1b9   :  { %v220_v25 = vadd.f32 %v213_v23, %v112_v22  ;;  %v378_v26 = vpop.f32.mrb[1].mxu1 }
 0x1ba   :  { %v216_v27 = vpop.f32.mrb[2].mxu1 }
 0x1bb   :  { %222 = vst.msk [vmem:[#allocation2] sm:$0xff] %vm32_vm1, %v220_v25  ;;  %v221_v28 = vadd.f32 %v216_v27, %v113_v24  ;;  %v379_v29 = vpop.f32.mrb[3].mxu1 }
 0x1bd   :  { %223 = vst.msk [vmem:[#allocation2 + $0x8] sm:$0xff] %vm32_vm1, %v221_v28 }
 0x1c2   :  { %v231_v33 = vld [vmem:[#allocation2] sm:$0xff] }
 0x1c3   :  { %v233_v35 = vadd.f32 %v338_v31, %v231_v33 }
 0x1c4   :  { %v232_v36 = vld [vmem:[#allocation2 + $0x8] sm:$0xff] }
 0x1c5   :  { %v242_v37 = vadd.f32 %v329_v34, %v233_v35  ;;  %v234_v38 = vadd.f32 %v339_v32, %v232_v36 }
 0x1c7   :  { %v244_v39 = vsel %vm32_vm1, %v242_v37, 0.0  ;;  %v243_v40 = vadd.f32 %v329_v34, %v234_v38 }
 0x1c8   :  { %245 = vadd.xlane.f32.xlu0 %v244_v39 }
 0x1c9   :  { %v247_v41 = vsel %vm32_vm1, %v243_v40, 0.0 }
 0x1cc   :  { %248 = vadd.xlane.f32.xlu0 %v247_v41 }
 0x255   :  { %v246_v42 = vpop.xlane.xlu0 %245 }
 0x256   :  { %v251_v43 = vmul.f32 0.03125, %v246_v42 }
 0x258   :  { %v253_v44 = vsub.f32 %v242_v37, %v251_v43 }
 0x259   :  { %v249_v45 = vpop.xlane.xlu0 %248 }
 0x25a   :  { %v252_v46 = vmul.f32 0.03125, %v249_v45  ;;  %v255_v47 = vmul.f32 %v253_v44, %v253_v44 }
 0x25c   :  { %v254_v48 = vsub.f32 %v243_v40, %v252_v46  ;;  %v257_v49 = vsel %vm32_vm1, %v255_v47, 0.0 }
 0x25d   :  { %258 = vadd.xlane.f32.xlu1 %v257_v49 }
 0x25e   :  { %v256_v50 = vmul.f32 %v254_v48, %v254_v48 }
 0x260   :  { %v260_v51 = vsel %vm32_vm1, %v256_v50, 0.0 }
 0x261   :  { %261 = vadd.xlane.f32.xlu1 %v260_v51 }
 0x2ea   :  { %v259_v52 = vpop.xlane.xlu1 %258 }
 0x2eb   :  { %v263_v53 = vmul.f32 0.03125, %v259_v52 }
 0x2ed   :  { %v265_v54 = vadd.f32 1e-05, %v263_v53 }
 0x2ee   :  { %v262_v55 = vpop.xlane.xlu1 %261 }
 0x2ef   :  { %396 = vrsqrt.f32 %v265_v54  ;;  %v264_v56 = vmul.f32 0.03125, %v262_v55 }
 0x2f1   :  { %v266_v57 = vadd.f32 1e-05, %v264_v56 }
 0x2f3   :  { %398 = vrsqrt.f32 %v266_v57 }
 0x2f9   :  { %v397_v58 = vpop.eup %396 }
 0x2fa   :  { %v269_v60 = vmul.f32 %v397_v58, %v253_v44 }
 0x2fc   :  { %v278_v62 = vmul.f32 %v330_v59, %v269_v60 }
 0x2fd   :  { %v399_v63 = vpop.eup %398 }
 0x2fe   :  { %v270_v0 = vmul.f32 %v399_v63, %v254_v48  ;;  %v287_v1 = vadd.f32 %v331_v61, %v278_v62 }
 0x300   :  { %v279_v2 = vmul.f32 %v330_v59, %v270_v0  ;;  %v334_v3 = vpack.c.bf16 %v287_v1, %v287_v1 }
 0x302   :  { %v288_v4 = vadd.f32 %v331_v61, %v279_v2  ;;  %298 = vst.msk [vmem:[#allocation3] sm:$0xf] %vm297_vm2, %v334_v3 }
 0x304   :  { %v335_v5 = vpack.c.bf16 %v288_v4, %v288_v4 }
 0x306   :  { %299 = vst.msk [vmem:[#allocation3 + $0x4] sm:$0xf] %vm297_vm2, %v335_v5 }
 0x307   :  { %411 = shalt.err (!%p408_p4)
}
 0x308   :  { %s412_s8 = scalar_lea.hbm %s545_s7, 128 }
 0x309   :  { %p413_p5 = scmp.ne.s32.totalorder %s545_s7, %s412_s8  ;;  %p416_p6 = scmp.lt.u32.totalorder %s412_s8, %s545_s7 }
 0x30b   :  { %p418_p7 = pnand %p416_p6, %p413_p5 }
 0x30d   :  { %421 = shalt.err (!%p418_p7)
}
 0x30e   :  { %s427_s12 = smov 64   ;;  %s428_s13 = smov 4  }
 0x30f   :  { %311 = dma.vmem_to_hbm [thread:$0]  %s306_s29, 128, %s545_s7, [#allocation4], %s427_s12, %s427_s12, %s428_s13  }
 0x310   :  { %422 = dma.done.wait [#allocation4], 128  }
 0x311   :  { %423 = vsyncadd [#allocation4], 4294967168 }
 0x312   :  { %315 = vsyncpa [#allocation4], 1 }

// kernel: transformer_forward.28
= control target key start
LH: loop header
LB: loop body
LE: loop exit
PB: predicated region body
PF: predicated region fallthrough
CT: control target
= control target key end

     0   :  { %s1315_s0 = inlined_call_operand.vmem [shape: s32[2], index: 0, kind: input, shape index: {}]   ;;  %s1316_s1 = inlined_call_operand.vmem [shape: bf16[2,8,32], index: 1, kind: input, shape index: {}]   ;;  %s1317_s2 = inlined_call_operand.vmem [shape: bf16[2,8,64], index: 2, kind: input, shape index: {}]   ;;  %s1318_s3 = inlined_call_operand.vmem [shape: bf16[32,32], index: 3, kind: input, shape index: {}]   ;;  %s1319_s4 = inlined_call_operand.vmem [shape: f32[1,32], index: 4, kind: input, shape index: {}]   ;;  %s1320_s5 = inlined_call_operand.vmem [shape: bf16[2,8,32], index: 5, kind: input, shape index: {}]   ;;  %s1321_s6 = inlined_call_operand.vmem [shape: f32[1,32], index: 6, kind: input, shape index: {}]   ;;  %s1322_s7 = inlined_call_operand.vmem [shape: f32[1,32], index: 7, kind: input, shape index: {}]   ;;  %s1323_s8 = inlined_call_operand.vmem [shape: bf16[2,8,32], index: 8, kind: output, shape index: {}]  }
   0x1   :  { %s13_s29 = sshll.u32 %s1315_s0, 4  ;;  %s14_s29 = int_to_ptr.vmem [resolvable:$true] %s13_s29 }
   0x2   :  { %s1113_s30 = scalar_lea.vmem %s14_s29, 16  ;;  %p1118_p1 = scmp.lt.s32.totalorder %s14_s29, %s14_s29 }
   0x3   :  { %p1114_p0 = scmp.ne.s32.totalorder %s14_s29, %s1113_s30  ;;  %p1119_p2 = scmp.lt.s32.totalorder %s1113_s30, %s1113_s30 }
   0x5   :  { %p1120_p3 = por %p1119_p2, %p1118_p1 }
   0x7   :  { %p1121_p4 = pnand %p1120_p3, %p1114_p0 }
   0x9   :  { %1124 = shalt.err (!%p1121_p4)  }
   0xa   :  { %s1135_s9 = smov [#allocation3]  }
   0xb   :  { %16 = dma.vmem_to_smem %s14_s29, 16, %s1135_s9, [#allocation2] }
   0xc   :  { %1129 = dma.done.wait [#allocation2], 16 }
   0xd   :  { %1130 = vsyncadd [#allocation2], 4294967280 }
   0xe   :  { %18 = sfence }
   0xf   :  { %s1197_s10 = smov 0  }
  0x10 LB: > { %s967_s0 = sadd.s32 4294967295, %s1133_s10   ;;  %p971_p5 = scmp.ge.s32.totalorder %s1133_s10, 1  ;;  %s1133_s10 = sphi %s1197_s10, %s24_s10  }
  0x11   : > { %p261_p6 = scmp.lt.s32.totalorder %s1133_s10, 3 }
  0x13   : > { %p262_p7 = pnand %p971_p5, %p261_p6 }
  0x14   : > { %p299_p8 = scmp.lt.s32.totalorder (!%p262_p7), %s967_s0, 1  ;;  %v1136_v0 = vmov (!%p262_p7), 0.0   ;;  %vm1137_vm0 = vmmov (!%p262_p7), 0   ;;  %vm324_vm1 = vcmask (!%p262_p7), 64512   ;;  %s318_s19 = sld [smem:[#allocation3 + %s967_s0]] (!%p262_p7)  ;;  %v319_v4 = vlaneseq (!%p262_p7) }
  0x15   : > { %265 = sbr.rel (%p262_p7) target bundleno = 1988 (0x7c4), region = 48  ;;  %1013 = vmatprep.subr.bf16.mxu0 (!%p262_p7), %v1136_v0  ;;  %1015 = vmatprep.mubr.msk.bf16.mxu0 (!%p262_p7), %vm1137_vm0, %v1136_v0  ;;  %v1138_v7 = vmov (!%p262_p7), -1e+09   ;;  %s1139_s20 = smov (!%p262_p7), 96   ;;  %vm391_vm3 = vcmask (!%p262_p7), 1043456   ;;  %vm781_vm4 = vcmask (!%p262_p7), 130048  }
  0x16   : > { %1019 = vmatprep.subr.bf16.mxu1 (!%p262_p7), %v1136_v0  ;;  %1021 = vmatprep.mubr.msk.bf16.mxu1 (!%p262_p7), %vm1137_vm0, %v1136_v0  ;;  %v320_v5 = vand.u32 (!%p262_p7), 127, %v319_v4  ;;  %s1140_s21 = smov (!%p262_p7), 120   ;;  %s1141_s22 = smov (!%p262_p7), 112   ;;  %vm783_vm5 = vcmask (!%p262_p7), 195584   ;;  %vm802_vm6 = vcmask (!%p262_p7), 261120   ;;  %vm888_vm7 = vcmask (!%p262_p7), 257024  }
  0x17   : > { %s1142_s23 = smov (!%p262_p7), 104   ;;  %s1143_s24 = smov (!%p262_p7), 88  }
  0x18   : > { %s1144_s25 = smov (!%p262_p7), 72   ;;  %s1145_s26 = smov (!%p262_p7), 80  }
  0x19   : > { %s1146_s29 = smov (!%p262_p7), 8  }
  0x1a   : > { %v321_v6 = vstv (!%p262_p7), %s318_s19 }
  0x1b   : > { %vm322_vm2 = vcmp.lt.s32.totalorder (!%p262_p7), %v320_v5, %v321_v6 }
  0x1c   : > { %s300_s11 = scalar_select %p299_p8, %s967_s0, 1  ;;  %v1226_v8 = vsel %vm322_vm2, 0.0, %v1138_v7 }
  0x1d   : > { %s1147_s0 = smov 16  }
  0x1e   : > { %s1211_s12 = sshll.u32 %s300_s11, 2  ;;  %s1148_s11 = smov 24  }
  0x1f   : > { %s306_s15 = scalar_lea.vmem %s1317_s2, %s1211_s12  ;;  %s302_s18 = scalar_lea.vmem %s1316_s1, %s1211_s12 }
  0x20   : > { %v317_v1 = vld [vmem:[%s306_s15] sm:$0xf]  ;;  %s310_s15 = scalar_lea.vmem %s1320_s5, %s1211_s12 }
  0x21   : > { %v329_v2 = vsel %vm324_vm1, %v317_v1, 0  ;;  %v316_v3 = vld [vmem:[%s302_s18] sm:$0xf]  ;;  %v1230_v15 = vcombine.low %v317_v1, %v317_v1 }
  0x22   : > { %1014 = vmatpush3.bf16.xpose.msra.mxu0 %v329_v2  ;;  %v979_v16 = vcombine.low %v316_v3, %v316_v3 }
  0x23   : > { %1031 = vmatprep.subr.bf16.mxu0 %v1136_v0  ;;  %386 = vrot.lane.b32.xlu1 %v1230_v15, %s1139_s20 }
  0x27   : > { %440 = vrot.lane.b32.xlu1 %v1230_v15, %s1140_s21 }
  0x29   : > { %1016 = vmatmul.mubr.msk.bf16.vlgmr.msra.gmra.mrb[0].mxu0 %vm324_vm1, %v316_v3 }
  0x2a   : > { %1033 = vmatprep.mubr.msk.bf16.mxu0 %vm1137_vm0, %v1136_v0 }
  0x2b   : > { %550 = vrot.lane.b32.xlu1 %v1230_v15, %s1141_s22 }
  0x2f   : > { %548 = vrot.lane.b32.xlu1 %v979_v16, %s1141_s22 }
  0x33   : > { %660 = vrot.lane.b32.xlu1 %v1230_v15, %s1142_s23 }
  0x37   : > { %658 = vrot.lane.b32.xlu1 %v979_v16, %s1142_s23 }
  0x95   : > { %v387_v22 = vpop.permute.xlu1 %386 }
  0x96   : > { %v393_v23 = vsel %vm391_vm3, %v387_v22, 0 }
  0x97   : > { %1020 = vmatpush3.bf16.msra.mxu1 %v393_v23 }
  0x98   : > { %1025 = vmatprep.subr.bf16.mxu1 %v1136_v0 }
  0x99   : > { %v441_v26 = vpop.permute.xlu1 %440 }
  0x9a   : > { %v446_v28 = vsel %vm324_vm1, %v441_v26, 0 }
  0x9d   : > { %v551_v30 = vpop.permute.xlu1 %550 }
  0x9e   : > { %v556_v33 = vsel %vm324_vm1, %v551_v30, 0 }
  0xa1   : > { %v549_v32 = vpop.permute.xlu1 %548 }
  0xa5   : > { %v661_v34 = vpop.permute.xlu1 %660 }
  0xa6   : > { %v666_v35 = vsel %vm324_vm1, %v661_v34, 0  ;;  %v1094_v34 = vld [vmem:[%s1318_s3 + $0x8] sm:$0xff]  }
  0xa9   : > { %v659_v36 = vpop.permute.xlu1 %658 }
  0xfc   : > { %v365_v9 = vpop.f32.mrb[0].mxu0 }
  0xfd   : > { %v366_v10 = vadd.f32 %v365_v9, %v1226_v8  ;;  %v1017_v11 = vpop.f32.mrb[1].mxu0 }
  0xfe   : > { %v368_v12 = vpop.f32.mrb[2].mxu0 }
  0xff   : > { %v1018_v13 = vpop.f32.mrb[3].mxu0  ;;  %v371_v14 = vsel %vm324_vm1, %v366_v10, -inf }
 0x100   : > { %372 = vmax.xlane.f32.xlu0 %v371_v14 }
 0x18d   : > { %v373_v17 = vpop.xlane.xlu0 %372 }
 0x18e   : > { %v374_v18 = vsub.f32 %v366_v10, %v373_v17 }
 0x190   : > { %v375_v19 = vmul.f32 1.442695, %v374_v18 }
 0x192   : > { %1095 = vpow2.f32 %v375_v19 }
 0x19c   : > { %v1096_v20 = vpop.eup %1095 }
 0x19d   : > { %v377_v21 = vsel %vm324_vm1, %v1096_v20, 0.0 }
 0x19e   : > { %378 = vadd.xlane.f32.xlu0 %v377_v21 }
 0x1b4   : > { %438 = vrot.lane.b32.xlu0 %v979_v16, %s1140_s21 }
 0x22b   : > { %v379_v24 = vpop.xlane.xlu0 %378 }
 0x22c   : > { %1097 = vrcp.f32 %v379_v24 }
 0x22f   : > { %v439_v31 = vpop.permute.xlu0 %438 }
 0x236   : > { %v1098_v25 = vpop.eup %1097 }
 0x237   : > { %v381_v27 = vmul.f32 %v1098_v25, %v1096_v20 }
 0x239   : > { %v382_v29 = vpack.c.bf16 %v381_v27, %v381_v27 }
 0x23b   : > { %1022 = vmatmul.mubr.msk.bf16.vlgmr.msra.gmra.mrb[0].mxu1 %vm324_vm1, %v382_v29  ;;  %v1093_v29 = vld [vmem:[%s1318_s3] sm:$0xff]  }
 0x23c   : > { %1026 = vmatpush3.bf16.xpose.msra.mxu1 %v446_v28  ;;  %1027 = vmatprep.mubr.msk.bf16.mxu1 %vm1137_vm0, %v1136_v0 }
 0x23d   : > { %1037 = vmatprep.subr.bf16.mxu1 %v1136_v0 }
 0x243   : > { %1028 = vmatmul.mubr.msk.bf16.vlgmr.msra.gmra.mrb[4].mxu1 %vm324_vm1, %v439_v31 }
 0x244   : > { %1038 = vmatpush3.bf16.xpose.msra.mxu1 %v556_v33  ;;  %1039 = vmatprep.mubr.msk.bf16.mxu1 %vm1137_vm0, %v1136_v0 }
 0x245   : > { %1049 = vmatprep.subr.bf16.mxu1 %v1136_v0 }
 0x24b   : > { %1040 = vmatmul.mubr.msk.bf16.vlgmr.msra.gmra.mrb[8].mxu1 %vm324_vm1, %v549_v32 }
 0x24c   : > { %1050 = vmatpush3.bf16.xpose.msra.mxu1 %v666_v35  ;;  %1051 = vmatprep.mubr.msk.bf16.mxu1 %vm1137_vm0, %v1136_v0 }
 0x24d   : > { %1061 = vmatprep.subr.bf16.mxu1 %v1136_v0 }
 0x253   : > { %1052 = vmatmul.mubr.msk.bf16.vlgmr.msra.gmra.mrb[12].mxu1 %vm324_vm1, %v659_v36 }
 0x254   : > { %1065 = vmatprep.mubr.msk.bf16.mxu1 %vm1137_vm0, %v1136_v0  ;;  %1062 = vmatpush3.bf16.msra.mxu1 %v1093_v29 }
 0x255   : > { %1063 = vmatprep.subr.bf16.mxu1 %v1136_v0 }
 0x258   : > { %1064 = vmatpush3.bf16.msra.mxu1 %v1094_v34 }
 0x30e   : > { %v1257_v37 = vpop.f32.mrb[0].mxu1 }
 0x30f   : > { %v1023_v38 = vpop.f32.mrb[1].mxu1 }
 0x310   : > { %v432_v39 = vpop.f32.mrb[2].mxu1 }
 0x311   : > { %v1024_v40 = vpop.f32.mrb[3].mxu1 }
 0x316   : > { %v482_v41 = vpop.f32.mrb[4].mxu1 }
 0x317   : > { %v483_v42 = vadd.f32 %v482_v41, %v1226_v8  ;;  %v1029_v43 = vpop.f32.mrb[5].mxu1 }
 0x318   : > { %v485_v44 = vpop.f32.mrb[6].mxu1 }
 0x319   : > { %v1030_v45 = vpop.f32.mrb[7].mxu1  ;;  %v488_v46 = vsel %vm324_vm1, %v483_v42, -inf }
 0x31a   : > { %489 = vmax.xlane.f32.xlu1 %v488_v46 }
 0x31e   : > { %v592_v47 = vpop.f32.mrb[8].mxu1 }
 0x31f   : > { %v593_v48 = vadd.f32 %v592_v47, %v1226_v8  ;;  %v1041_v49 = vpop.f32.mrb[9].mxu1 }
 0x320   : > { %v595_v50 = vpop.f32.mrb[10].mxu1 }
 0x321   : > { %v1042_v51 = vpop.f32.mrb[11].mxu1  ;;  %v598_v52 = vsel %vm324_vm1, %v593_v48, -inf  ;;  %v846_v50 = vld [vmem:[%s310_s15] sm:$0xf] }
 0x322   : > { %599 = vmax.xlane.f32.xlu0 %v598_v52  ;;  %v847_v51 = vunpack.c.l.bf16 %v846_v50 }
 0x326   : > { %v702_v53 = vpop.f32.mrb[12].mxu1 }
 0x327   : > { %v703_v54 = vadd.f32 %v702_v53, %v1226_v8  ;;  %v1053_v55 = vpop.f32.mrb[13].mxu1  ;;  %v989_v53 = vld [vmem:[%s1319_s4] ss:$0 sm:$0xff] }
 0x328   : > { %v705_v56 = vpop.f32.mrb[14].mxu1 }
 0x329   : > { %v1054_v57 = vpop.f32.mrb[15].mxu1  ;;  %v708_v58 = vsel %vm324_vm1, %v703_v54, -inf }
 0x32a   : > { %709 = vmax.xlane.f32.xlu1 %v708_v58 }
 0x33b   : > { %500 = vrot.lane.b32.xlu1 %v1230_v15, %s1143_s24  ;;  %s314_s24 = scalar_lea.vmem %s1323_s8, %s1211_s12 }
 0x3a7   : > { %v490_v59 = vpop.xlane.xlu1 %489 }
 0x3a8   : > { %v491_v60 = vsub.f32 %v483_v42, %v490_v59 }
 0x3aa   : > { %v492_v61 = vmul.f32 1.442695, %v491_v60 }
 0x3ac   : > { %1099 = vpow2.f32 %v492_v61 }
 0x3af   : > { %v600_v62 = vpop.xlane.xlu0 %599 }
 0x3b0   : > { %v601_v63 = vsub.f32 %v593_v48, %v600_v62 }
 0x3b2   : > { %v602_v1 = vmul.f32 1.442695, %v601_v63 }
 0x3b4   : > { %1101 = vpow2.f32 %v602_v1 }
 0x3b6   : > { %v1100_v2 = vpop.eup %1099 }
 0x3b7   : > { %v710_v3 = vpop.xlane.xlu1 %709  ;;  %v494_v4 = vsel %vm324_vm1, %v1100_v2, 0.0 }
 0x3b8   : > { %v711_v5 = vsub.f32 %v703_v54, %v710_v3  ;;  %495 = vadd.xlane.f32.xlu0 %v494_v4 }
 0x3ba   : > { %v712_v6 = vmul.f32 1.442695, %v711_v5  ;;  %v990_v5 = vld [vmem:[%s1321_s6] ss:$0 sm:$0xff] }
 0x3bb   : > { %v501_v7 = vpop.permute.xlu1 %500 }
 0x3bc   : > { %1103 = vpow2.f32 %v712_v6  ;;  %v506_v8 = vsel %vm391_vm3, %v501_v7, 0  ;;  %v991_v7 = vld [vmem:[%s1322_s7] ss:$0 sm:$0xff] }
 0x3bd   : > { %1032 = vmatpush3.bf16.msra.mxu0 %v506_v8 }
 0x3be   : > { %v1102_v9 = vpop.eup %1101  ;;  %1043 = vmatprep.subr.bf16.mxu0 %v1136_v0 }
 0x3bf   : > { %v604_v10 = vsel %vm324_vm1, %v1102_v9, 0.0 }
 0x3c0   : > { %605 = vadd.xlane.f32.xlu1 %v604_v10 }
 0x3c6   : > { %v1104_v11 = vpop.eup %1103 }
 0x3c7   : > { %v714_v12 = vsel %vm324_vm1, %v1104_v11, 0.0 }
 0x3c8   : > { %715 = vadd.xlane.f32.xlu0 %v714_v12 }
 0x3d1   : > { %720 = vrot.lane.b32.xlu1 %v1230_v15, %s1144_s25 }
 0x3de   : > { %610 = vrot.lane.b32.xlu0 %v1230_v15, %s1145_s26 }
 0x445   : > { %v496_v13 = vpop.xlane.xlu0 %495 }
 0x446   : > { %1105 = vrcp.f32 %v496_v13 }
 0x44d   : > { %v606_v14 = vpop.xlane.xlu1 %605 }
 0x44e   : > { %1107 = vrcp.f32 %v606_v14 }
 0x450   : > { %v1106_v16 = vpop.eup %1105 }
 0x451   : > { %v498_v17 = vmul.f32 %v1106_v16, %v1100_v2  ;;  %v721_v23 = vpop.permute.xlu1 %720 }
 0x452   : > { %v726_v25 = vsel %vm391_vm3, %v721_v23, 0 }
 0x453   : > { %v499_v18 = vpack.c.bf16 %v498_v17, %v498_v17 }
 0x455   : > { %v716_v19 = vpop.xlane.xlu0 %715  ;;  %1034 = vmatmul.mubr.msk.bf16.vlgmr.msra.gmra.mrb[4].mxu0 %vm324_vm1, %v499_v18 }
 0x456   : > { %1109 = vrcp.f32 %v716_v19  ;;  %1045 = vmatprep.mubr.msk.bf16.mxu0 %vm1137_vm0, %v1136_v0 }
 0x458   : > { %v1108_v20 = vpop.eup %1107 }
 0x459   : > { %v608_v21 = vmul.f32 %v1108_v20, %v1102_v9  ;;  %v611_v22 = vpop.permute.xlu0 %610 }
 0x45a   : > { %v616_v15 = vsel %vm391_vm3, %v611_v22, 0 }
 0x45b   : > { %1044 = vmatpush3.bf16.msra.mxu0 %v616_v15  ;;  %v609_v24 = vpack.c.bf16 %v608_v21, %v608_v21 }
 0x45c   : > { %1055 = vmatprep.subr.bf16.mxu0 %v1136_v0 }
 0x45e   : > { %1046 = vmatmul.mubr.msk.bf16.vlgmr.msra.gmra.mrb[8].mxu0 %vm324_vm1, %v609_v24 }
 0x45f   : > { %1056 = vmatpush3.bf16.msra.mxu0 %v726_v25  ;;  %1057 = vmatprep.mubr.msk.bf16.mxu0 %vm1137_vm0, %v1136_v0 }
 0x460   : > { %v1110_v26 = vpop.eup %1109 }
 0x461   : > { %v718_v27 = vmul.f32 %v1110_v26, %v1104_v11 }
 0x463   : > { %v719_v28 = vpack.c.bf16 %v718_v27, %v718_v27 }
 0x466   : > { %1058 = vmatmul.mubr.msk.bf16.vlgmr.msra.gmra.mrb[12].mxu0 %vm324_vm1, %v719_v28 }
 0x528   : > { %v542_v30 = vpop.f32.mrb[4].mxu0 }
 0x529   : > { %769 = vrot.lane.b32.xlu1 %v542_v30, %s1146_s29  ;;  %v1035_v31 = vpop.f32.mrb[5].mxu0 }
 0x52a   : > { %v545_v32 = vpop.f32.mrb[6].mxu0 }
 0x52b   : > { %v1036_v33 = vpop.f32.mrb[7].mxu0 }
 0x531   : > { %v652_v35 = vpop.f32.mrb[8].mxu0 }
 0x532   : > { %773 = vrot.lane.b32.xlu0 %v652_v35, %s1147_s0  ;;  %v1047_v36 = vpop.f32.mrb[9].mxu0 }
 0x533   : > { %v655_v38 = vpop.f32.mrb[10].mxu0 }
 0x534   : > { %v1048_v39 = vpop.f32.mrb[11].mxu0 }
 0x539   : > { %v762_v40 = vpop.f32.mrb[12].mxu0 }
 0x53a   : > { %777 = vrot.lane.b32.xlu1 %v762_v40, %s1148_s11  ;;  %v1059_v0 = vpop.f32.mrb[13].mxu0 }
 0x53b   : > { %v765_v41 = vpop.f32.mrb[14].mxu0 }
 0x53c   : > { %v1060_v42 = vpop.f32.mrb[15].mxu0 }
 0x59b   : > { %v770_v43 = vpop.permute.xlu1 %769 }
 0x59c   : > { %v780_v45 = vsel %vm324_vm1, %v1257_v37, %v770_v43 }
 0x5a4   : > { %v774_v44 = vpop.permute.xlu0 %773 }
 0x5a5   : > { %v782_v46 = vsel %vm781_vm4, %v780_v45, %v774_v44 }
 0x5ac   : > { %v778_v47 = vpop.permute.xlu1 %777 }
 0x5ad   : > { %v784_v48 = vsel %vm783_vm5, %v782_v46, %v778_v47 }
 0x5ae   : > { %v785_v49 = vpack.c.bf16 %v784_v48, %v784_v48 }
 0x5b0   : > { %1066 = vmatmul.mubr.msk.bf16.vlgmr.msra.gmra.mrb[16].mxu1 %vm802_vm6, %v785_v49 }
 0x683   : > { %v840_v52 = vpop.f32.mrb[16].mxu1 }
 0x684   : > { %v848_v54 = vadd.f32 %v847_v51, %v840_v52  ;;  %v1067_v37 = vpop.f32.mrb[17].mxu1 }
 0x685   : > { %v843_v55 = vpop.f32.mrb[18].mxu1 }
 0x686   : > { %v1068_v56 = vpop.f32.mrb[19].mxu1  ;;  %v856_v57 = vadd.f32 %v989_v53, %v848_v54 }
 0x688   : > { %v857_v58 = vsel %vm802_vm6, %v856_v57, 0.0 }
 0x689   : > { %858 = vadd.xlane.f32.xlu0 %v857_v58 }
 0x716   : > { %v859_v59 = vpop.xlane.xlu0 %858 }
 0x717   : > { %v861_v60 = vmul.f32 0.03125, %v859_v59 }
 0x719   : > { %v862_v61 = vsub.f32 %v856_v57, %v861_v60 }
 0x71b   : > { %v863_v62 = vmul.f32 %v862_v61, %v862_v61 }
 0x71d   : > { %v864_v63 = vsel %vm802_vm6, %v863_v62, 0.0 }
 0x71e   : > { %865 = vadd.xlane.f32.xlu1 %v864_v63 }
 0x7ab   : > { %v866_v1 = vpop.xlane.xlu1 %865 }
 0x7ac   : > { %v867_v2 = vmul.f32 0.03125, %v866_v1 }
 0x7ae   : > { %v868_v3 = vadd.f32 1e-05, %v867_v2 }
 0x7b0   : > { %1111 = vrsqrt.f32 %v868_v3 }
 0x7ba   : > { %v1112_v4 = vpop.eup %1111 }
 0x7bb   : > { %v870_v6 = vmul.f32 %v1112_v4, %v862_v61 }
 0x7bd   : > { %v878_v8 = vmul.f32 %v990_v5, %v870_v6 }
 0x7bf   : > { %v886_v9 = vadd.f32 %v991_v7, %v878_v8 }
 0x7c1   : > { %v887_v10 = vpack.c.bf16 %v886_v9, %v886_v9 }
 0x7c3   : > { %889 = vst.msk [vmem:[%s314_s24] sm:$0xf] %vm888_vm7, %v887_v10 }
 0x7c4 PF: > { %s24_s10 = sadd.s32 1, %s1133_s10  }
 0x7c5   : > { %p21_p9 = scmp.ge.s32.totalorder %s24_s10, 4  }
 0x7c7   :  { %23 = sbr.rel (!%p21_p9) target bundleno = 16 (0x10), region = 84 }

</bundles_post_ra>
